<compile_context>
chip_gen: v7x
topology: tpu7x:2x2x1
jax: 0.10.0
libtpu: 0.0.40
codegen_flags: <defaults>
</compile_context>

<pallas_src>
import functools

import numpy as np
import jax
import jax.numpy as jnp
from jax.experimental import pallas as pl
from jax.experimental.pallas import tpu as pltpu


def _round_up(x, m):
    return ((x + m - 1) // m) * m


# ----------------------------------------------------------------------------
# Pallas kernel: one (image, output-row-tile) of conv + bias (+ BN stats / sigmoid)
# ----------------------------------------------------------------------------
def _conv_kernel(x_ref, w_ref, b_ref, *refs, kk, WWp, M, tm, act, emit_stats):
    """
    x_ref : (S, K)      bf16  width-im2col'd, padded, flattened image (resident
                              across the m-tile axis, re-DMA'd only per image)
    w_ref : (kk, K, Cp) bf16  folded + width-im2col'd weights (resident)
    b_ref : (1, Cp)     f32   bias
    cmask : (tm, 1)     f32   static valid-column pattern   (only if emit_stats)
    o_ref : (tm, Cp)          raw conv output tile (sigmoid on the last layer)
    sum/sq: (1, Cp)     f32   per-(image, tile) BN statistics (only if emit_stats)
    """
    if emit_stats:
        cmask_ref, o_ref, sum_ref, sq_ref = refs
    else:
        (o_ref,) = refs

    cp = w_ref.shape[-1]
    m0 = pl.program_id(1) * tm                       # first output row of this tile

    acc = jnp.zeros((tm, cp), jnp.float32)           # accumulator lives in vregs
    for dh in range(kk):                             # kk sublane-aligned row taps
        start = pl.multiple_of(m0 + dh * WWp, 8)
        xt = x_ref[pl.ds(start, tm), :]              # (tm, K) bf16
        acc = acc + jnp.dot(xt, w_ref[dh], preferred_element_type=jnp.float32)

    y = acc + b_ref[...]                             # (tm, Cp) f32 raw conv output

    if emit_stats:                                   # BN batch stats, valid positions only
        rows = m0 + jax.lax.broadcasted_iota(jnp.int32, (tm, 1), 0)
        yv = jnp.where(rows < M, y * cmask_ref[...], 0.0)
        sum_ref[...] = jnp.sum(yv, axis=0, keepdims=True)
        sq_ref[...] = jnp.sum(yv * yv, axis=0, keepdims=True)

    if act == "sigmoid":                             # numerically stable sigmoid
        e = jnp.exp(-jnp.abs(y))
        p = 1.0 / (1.0 + e)
        y = jnp.where(y >= 0.0, p, 1.0 - p)

    o_ref[...] = y.astype(o_ref.dtype)


# ----------------------------------------------------------------------------
# Pallas wrapper
# ----------------------------------------------------------------------------
def conv2d_pallas(x_flat, w_mat, b_vec, dims, *, act, emit_stats, out_dtype):
    N, S, K = x_flat.shape
    kk, Kw, Cp = w_mat.shape
    assert Kw == K and kk == dims["kk"]
    tm, M, M_pad, WWp, Wo = dims["tm"], dims["M"], dims["M_pad"], dims["WWp"], dims["Wo"]
    Tm = M_pad // tm

    in_specs = [
        pl.BlockSpec((None, S, K), lambda n, t: (n, 0, 0)),   # whole image, resident over t
        pl.BlockSpec((kk, K, Cp), lambda n, t: (0, 0, 0)),    # weights, resident
        pl.BlockSpec((1, Cp), lambda n, t: (0, 0)),           # bias
    ]
    args = [x_flat, w_mat, b_vec.reshape(1, Cp)]

    out_shape = [jax.ShapeDtypeStruct((N, M_pad, Cp), out_dtype)]
    out_specs = [pl.BlockSpec((None, tm, Cp), lambda n, t: (n, t, 0))]
    if emit_stats:
        # tm is a multiple of WWp -> the valid-column pattern is the same for
        # every tile; pass it once as a tiny resident operand (no per-image mask).
        cmask = jnp.asarray((np.arange(tm) % WWp < Wo).astype(np.float32).reshape(tm, 1))
        in_specs.append(pl.BlockSpec((tm, 1), lambda n, t: (0, 0)))
        args.append(cmask)
        stat_shape = jax.ShapeDtypeStruct((N, Tm, 1, Cp), jnp.float32)
        stat_spec = pl.BlockSpec((None, None, 1, Cp), lambda n, t: (n, t, 0, 0))
        out_shape += [stat_shape, stat_shape]
        out_specs += [stat_spec, stat_spec]

    kernel = functools.partial(_conv_kernel, kk=kk, WWp=WWp, M=M, tm=tm,
                               act=act, emit_stats=emit_stats)
    return pl.pallas_call(
        kernel,
        out_shape=tuple(out_shape),
        grid_spec=pltpu.PrefetchScalarGridSpec(
            num_scalar_prefetch=0,
            grid=(N, Tm),
            in_specs=in_specs,
            out_specs=tuple(out_specs),
        ),
        compiler_params=pltpu.CompilerParams(
            dimension_semantics=("parallel", "parallel"),
            vmem_limit_bytes=64 * 1024 * 1024),
    )(*args)


# ----------------------------------------------------------------------------
# Layout prep (plain JAX, fused by XLA with the previous layer's activation)
# ----------------------------------------------------------------------------
def _prep_input(x_nhwc, stride, scale=None, shift=None):
    """(optional folded-BN affine + LeakyReLU) -> zero-pad(1) -> space-to-depth
    fold (stride-2 -> stride-1) -> width-im2col (K = kk*Cin) -> flatten.
    One fused read of the previous raw conv output, one write of the operand."""
    x = x_nhwc.astype(jnp.float32)
    if scale is not None:                            # previous layer's BN + LeakyReLU(0.2)
        x = x * scale + shift
        x = jnp.where(x >= 0.0, x, 0.2 * x)
    N, H, W, C = x.shape
    xp = jnp.pad(x, ((0, 0), (1, 1), (1, 1), (0, 0)))
    if stride == 2:                                  # 4x4/s2 -> 2x2/s1 over 4*C channels
        kk = 2
        Hp, Wp = H + 2, W + 2
        assert Hp % 2 == 0 and Wp % 2 == 0
        xf = xp.reshape(N, Hp // 2, 2, Wp // 2, 2, C)
        xf = xf.transpose(0, 1, 3, 2, 4, 5).reshape(N, Hp // 2, Wp // 2, 4 * C)
    else:
        kk = 4
        xf = xp
    _, HH, WWf, Ce = xf.shape
    Ho, Wo = HH - kk + 1, WWf - kk + 1
    WWp = _round_up(WWf, 8)                          # sublane-aligned row width
    # width-im2col: concat kk column shifts along channels -> kernel only needs
    # kk row taps whose starts are multiples of WWp (multiple of 8).
    xf = jnp.pad(xf, ((0, 0), (0, 0), (0, WWp + kk - 1 - WWf), (0, 0)))
    xw = jnp.concatenate([xf[:, :, dw:dw + WWp, :] for dw in range(kk)], axis=-1)
    x_flat = xw.reshape(N, HH * WWp, kk * Ce)

    M = Ho * WWp                                     # output rows (incl. garbage columns)
    rpt = max(1, min(128 // WWp, Ho))                # whole image rows per tile
    tm = rpt * WWp                                   # -> (tm, 128) f32 acc fits in vregs
    M_pad = _round_up(M, tm)
    S = M_pad + (kk - 1) * WWp                       # rows the last tile may touch
    x_flat = jnp.pad(x_flat, ((0, 0), (0, S - HH * WWp), (0, 0)))
    dims = dict(kk=kk, Ho=Ho, Wo=Wo, WWp=WWp, M=M, M_pad=M_pad, tm=tm)
    return x_flat.astype(jnp.bfloat16), dims


# ----------------------------------------------------------------------------
# Model definition
# ----------------------------------------------------------------------------
_LAYER_CFGS = (
    dict(stride=2, bn=False),    # conv1          (leaky applied in next layer's prep)
    dict(stride=2, bn=True),     # conv2 -> bn2   (leaky in next prep)
    dict(stride=2, bn=True),     # conv3 -> bn3   (leaky in next prep)
    dict(stride=1, bn=True),     # conv4 -> bn4   (leaky in next prep)
    dict(stride=1, bn=False),    # conv5          (sigmoid fused in-kernel)
)


def init_params(key, d=8):
    dims = [(6, d), (d, 2 * d), (2 * d, 4 * d), (4 * d, 8 * d), (8 * d, 1)]
    params = {}
    keys = jax.random.split(key, 3 * len(dims))
    for idx, (cin, cout) in enumerate(dims, start=1):
        kw, kb, kg = keys[3 * (idx - 1):3 * idx]
        params[f"w{idx}"] = 0.02 * jax.random.normal(kw, (4, 4, cin, cout), jnp.float32)
        params[f"b{idx}"] = 0.01 * jax.random.normal(kb, (cout,), jnp.float32)
        if idx in (2, 3, 4):
            g1, g2 = jax.random.split(kg)
            params[f"gamma{idx}"] = 1.0 + 0.1 * jax.random.normal(g1, (cout,), jnp.float32)
            params[f"beta{idx}"] = 0.1 * jax.random.normal(g2, (cout,), jnp.float32)
    return params


def prepare_layers(params):
    """Fold / width-im2col / pad / bf16-cast the weights once."""
    layers = []
    for idx, cfg in enumerate(_LAYER_CFGS, start=1):
        w = params[f"w{idx}"]                        # (4, 4, cin, cout) HWIO
        b = params[f"b{idx}"]
        cin, cout = w.shape[2], w.shape[3]
        cp = _round_up(cout, 128)                    # lane-dense output channels
        if cfg["stride"] == 2:                       # fold 4x4/s2 -> 2x2 over 4*cin
            kk = 2
            wf = w.reshape(2, 2, 2, 2, cin, cout)    # (ah, ph, aw, pw, ci, co)
            wf = wf.transpose(0, 2, 1, 3, 4, 5)      # (ah, aw, ph, pw, ci, co)
            wf = wf.reshape(2, 2, 4 * cin, cout)
        else:
            kk = 4
            wf = w                                   # (dh, dw, ci, co)
        ce = wf.shape[2]
        w2 = wf.reshape(kk, kk * ce, cout)           # width-im2col'd weights (kk, K, cout)
        w2 = jnp.pad(w2, ((0, 0), (0, 0), (0, cp - cout))).astype(jnp.bfloat16)
        arrs = dict(w=w2, b=jnp.pad(b, (0, cp - cout)).astype(jnp.float32), cout=cout)
        if cfg["bn"]:
            arrs["gamma"] = params[f"gamma{idx}"].astype(jnp.float32)
            arrs["beta"] = params[f"beta{idx}"].astype(jnp.float32)
        layers.append(arrs)
    return layers


def discriminator_forward(layer_arrays, inp_nchw, label_nchw):
    x = jnp.concatenate([inp_nchw, label_nchw], axis=1)
    x = jnp.transpose(x, (0, 2, 3, 1)).astype(jnp.float32)      # NCHW -> NHWC
    N = x.shape[0]

    scale = shift = None                                        # layer-1 input: raw image
    for li, (cfg, arrs) in enumerate(zip(_LAYER_CFGS, layer_arrays)):
        last = li == len(_LAYER_CFGS) - 1
        cout = arrs["cout"]                                     # static python int
        x_flat, dims = _prep_input(x, cfg["stride"], scale=scale, shift=shift)
        outs = conv2d_pallas(
            x_flat, arrs["w"], arrs["b"], dims,
            act="sigmoid" if last else "none",
            emit_stats=cfg["bn"], out_dtype=jnp.bfloat16)
        y = outs[0]
        Ho, Wo, WWp, M = dims["Ho"], dims["Wo"], dims["WWp"], dims["M"]
        # only valid positions and real channels are carried forward (real MXU K)
        x = y[:, :M, :].reshape(N, Ho, WWp, -1)[:, :, :Wo, :cout]

        if cfg["bn"]:                                           # fold batch stats -> affine
            _, s_sum, s_sq = outs
            cnt = float(N * Ho * Wo)
            mean = (jnp.sum(s_sum, axis=(0, 1, 2)) / cnt)[:cout]
            var = jnp.maximum((jnp.sum(s_sq, axis=(0, 1, 2)) / cnt)[:cout] - mean * mean, 0.0)
            inv = arrs["gamma"] * jax.lax.rsqrt(var + 1e-5)
            scale = inv.reshape(1, 1, 1, cout)
            shift = (arrs["beta"] - mean * inv).reshape(1, 1, 1, cout)
        else:                                                   # plain LeakyReLU before next conv
            scale = jnp.ones((1, 1, 1, cout), jnp.float32)
            shift = jnp.zeros((1, 1, 1, cout), jnp.float32)

    return jnp.transpose(x.astype(jnp.float32), (0, 3, 1, 2))   # (N, 1, Ho, Wo)


# ----------------------------------------------------------------------------
# Pure-JAX reference (PyTorch training-mode semantics)
# ----------------------------------------------------------------------------
def _reference_forward(params, inp_nchw, label_nchw):
    def conv(x, w, b, stride):
        y = jax.lax.conv_general_dilated(
            x, w, window_strides=(stride, stride), padding=((1, 1), (1, 1)),
            dimension_numbers=("NCHW", "HWIO", "NCHW"),
            precision=jax.lax.Precision.HIGHEST)
        return y + b.reshape(1, -1, 1, 1)

    def bn(x, gamma, beta):
        mean = jnp.mean(x, axis=(0, 2, 3), keepdims=True)
        var = jnp.mean(jnp.square(x - mean), axis=(0, 2, 3), keepdims=True)
        xn = (x - mean) * jax.lax.rsqrt(var + 1e-5)
        return xn * gamma.reshape(1, -1, 1, 1) + beta.reshape(1, -1, 1, 1)

    leaky = lambda v: jnp.where(v >= 0.0, v, 0.2 * v)
    x = jnp.concatenate([inp_nchw, label_nchw], axis=1)
    x = leaky(conv(x, params["w1"], params["b1"], 2))
    x = leaky(bn(conv(x, params["w2"], params["b2"], 2), params["gamma2"], params["beta2"]))
    x = leaky(bn(conv(x, params["w3"], params["b3"], 2), params["gamma3"], params["beta3"]))
    x = leaky(bn(conv(x, params["w4"], params["b4"], 1), params["gamma4"], params["beta4"]))
    return jax.nn.sigmoid(conv(x, params["w5"], params["b5"], 1))


if __name__ == "__main__":
    key = jax.random.PRNGKey(0)
    k_p, k_x, k_l = jax.random.split(key, 3)

    d = 8                      # small d for the test run (module default is 64)
    N, H, W = 2, 32, 32        # 32x32 keeps every conv's spatial extent valid
    inp = jax.random.normal(k_x, (N, 3, H, W), jnp.float32)
    lab = jax.random.normal(k_l, (N, 3, H, W), jnp.float32)

    params = init_params(k_p, d=d)
    layers = prepare_layers(params)

    fwd = jax.jit(functools.partial(discriminator_forward, layers))
    out = fwd(inp, lab)
    jax.block_until_ready(out)

    assert out.shape == (N, 1, 2, 2), out.shape
    assert bool(jnp.all(jnp.isfinite(out)))
    assert bool(jnp.all((out >= 0.0) & (out <= 1.0)))            # sigmoid range

    ref = _reference_forward(params, inp, lab)                   # f32 reference
    err = float(jnp.max(jnp.abs(out - ref)))
    assert err < 3e-2, f"max |pallas - reference| = {err}"
    print("KERNEL_OK")
</pallas_src>

<mosaic_0001>
module attributes {stable_mosaic.version = 11 : i64} {
  func.func @_conv_kernel(%arg0: i32, %arg1: i32, %arg2: memref<1x504x48xbf16, #tpu.memory_space<vmem>>, %arg3: memref<2x48x128xbf16, #tpu.memory_space<vmem>>, %arg4: memref<1x128xf32, #tpu.memory_space<vmem>>, %arg5: memref<1x120x128xbf16, #tpu.memory_space<vmem>>) attributes {dimension_semantics = [#tpu.dimension_semantics<parallel>, #tpu.dimension_semantics<parallel>], iteration_bounds = array<i64: 2, 4>, scalar_prefetch = 0 : i64, scratch_operands = 0 : i64, tpu.core_type = #tpu.core_type<tc>, window_params = [{transform_indices = @transform_0, window_bounds = array<i64: 1, 504, 48>}, {pipeline_mode = #tpu.pipeline_mode<synchronous>, transform_indices = @transform_1, window_bounds = array<i64: 2, 48, 128>}, {pipeline_mode = #tpu.pipeline_mode<synchronous>, transform_indices = @transform_2, window_bounds = array<i64: 1, 128>}, {transform_indices = @transform_3, window_bounds = array<i64: 1, 120, 128>}]} {
    %c120_i32 = arith.constant 120 : i32
    %0 = arith.muli %arg1, %c120_i32 : i32
    %cst = arith.constant 0.000000e+00 : f32
    %1 = vector.broadcast %cst : f32 to vector<120x128xf32>
    %c0_i32 = arith.constant 0 : i32
    %2 = arith.addi %0, %c0_i32 : i32
    %3 = tpu.assume_multiple %2, 8 : i32
    %c0 = arith.constant 0 : index
    %4 = arith.index_cast %3 : i32 to index
    %c0_0 = arith.constant 0 : index
    %5 = vector.load %arg2[%c0, %4, %c0_0] : memref<1x504x48xbf16, #tpu.memory_space<vmem>>, vector<1x120x48xbf16>
    %6 = vector.shape_cast %5 : vector<1x120x48xbf16> to vector<120x48xbf16>
    %c0_1 = arith.constant 0 : index
    %c0_2 = arith.constant 0 : index
    %c0_3 = arith.constant 0 : index
    %7 = vector.load %arg3[%c0_1, %c0_2, %c0_3] : memref<2x48x128xbf16, #tpu.memory_space<vmem>>, vector<1x48x128xbf16>
    %8 = vector.shape_cast %7 : vector<1x48x128xbf16> to vector<48x128xbf16>
    %cst_4 = arith.constant dense<0.000000e+00> : vector<120x128xf32>
    %9 = tpu.matmul %6, %8, %cst_4 {dimension_numbers = #tpu.dot_dimension_numbers<[1], [0], [0], [1], [0, 0, 1, 1], [], []>} : vector<120x48xbf16>, vector<48x128xbf16>, vector<120x128xf32> -> vector<120x128xf32>
    %10 = arith.addf %1, %9 : vector<120x128xf32>
    %c24_i32 = arith.constant 24 : i32
    %11 = arith.addi %0, %c24_i32 : i32
    %12 = tpu.assume_multiple %11, 8 : i32
    %c0_5 = arith.constant 0 : index
    %13 = arith.index_cast %12 : i32 to index
    %c0_6 = arith.constant 0 : index
    %14 = vector.load %arg2[%c0_5, %13, %c0_6] : memref<1x504x48xbf16, #tpu.memory_space<vmem>>, vector<1x120x48xbf16>
    %15 = vector.shape_cast %14 : vector<1x120x48xbf16> to vector<120x48xbf16>
    %c1 = arith.constant 1 : index
    %c0_7 = arith.constant 0 : index
    %c0_8 = arith.constant 0 : index
    %16 = vector.load %arg3[%c1, %c0_7, %c0_8] : memref<2x48x128xbf16, #tpu.memory_space<vmem>>, vector<1x48x128xbf16>
    %17 = vector.shape_cast %16 : vector<1x48x128xbf16> to vector<48x128xbf16>
    %cst_9 = arith.constant dense<0.000000e+00> : vector<120x128xf32>
    %18 = tpu.matmul %15, %17, %cst_9 {dimension_numbers = #tpu.dot_dimension_numbers<[1], [0], [0], [1], [0, 0, 1, 1], [], []>} : vector<120x48xbf16>, vector<48x128xbf16>, vector<120x128xf32> -> vector<120x128xf32>
    %19 = arith.addf %10, %18 : vector<120x128xf32>
    %c0_10 = arith.constant 0 : index
    %c0_11 = arith.constant 0 : index
    %20 = vector.load %arg4[%c0_10, %c0_11] : memref<1x128xf32, #tpu.memory_space<vmem>>, vector<1x128xf32>
    %21 = vector.broadcast %20 : vector<1x128xf32> to vector<120x128xf32>
    %22 = arith.addf %19, %21 : vector<120x128xf32>
    %23 = arith.truncf %22 : vector<120x128xf32> to vector<120x128xbf16>
    %c0_12 = arith.constant 0 : index
    %c0_13 = arith.constant 0 : index
    %c0_14 = arith.constant 0 : index
    %24 = vector.load %arg5[%c0_12, %c0_13, %c0_14] : memref<1x120x128xbf16, #tpu.memory_space<vmem>>, vector<1x120x128xbf16>
    %25 = vector.shape_cast %24 : vector<1x120x128xbf16> to vector<120x128xbf16>
    %26 = vector.shape_cast %23 : vector<120x128xbf16> to vector<1x120x128xbf16>
    tpu.vector_store %arg5[%c0_12, %c0_13, %c0_14], %26 {strides = array<i32>} : memref<1x120x128xbf16, #tpu.memory_space<vmem>>, vector<1x120x128xbf16>,
    return
  }
  func.func @transform_0(%arg0: i32, %arg1: i32) -> (i32, i32, i32) {
    %c0_i32 = arith.constant 0 : i32
    %c0_i32_0 = arith.constant 0 : i32
    %c0_i32_1 = arith.constant 0 : i32
    return %arg0, %c0_i32, %c0_i32_0 : i32, i32, i32
  }
  func.func @transform_1(%arg0: i32, %arg1: i32) -> (i32, i32, i32) {
    %c0_i32 = arith.constant 0 : i32
    %c0_i32_0 = arith.constant 0 : i32
    %c0_i32_1 = arith.constant 0 : i32
    %c0_i32_2 = arith.constant 0 : i32
    return %c0_i32, %c0_i32_0, %c0_i32_1 : i32, i32, i32
  }
  func.func @transform_2(%arg0: i32, %arg1: i32) -> (i32, i32) {
    %c0_i32 = arith.constant 0 : i32
    %c0_i32_0 = arith.constant 0 : i32
    %c0_i32_1 = arith.constant 0 : i32
    return %c0_i32, %c0_i32_0 : i32, i32
  }
  func.func @transform_3(%arg0: i32, %arg1: i32) -> (i32, i32, i32) {
    %c0_i32 = arith.constant 0 : i32
    %c0_i32_0 = arith.constant 0 : i32
    return %arg0, %arg1, %c0_i32 : i32, i32, i32
  }
}

module attributes {stable_mosaic.version = 11 : i64} {
  func.func @_conv_kernel(%arg0: i32, %arg1: i32, %arg2: memref<1x144x64xbf16, #tpu.memory_space<vmem>>, %arg3: memref<2x64x128xbf16, #tpu.memory_space<vmem>>, %arg4: memref<1x128xf32, #tpu.memory_space<vmem>>, %arg5: memref<128x1xf32, #tpu.memory_space<vmem>>, %arg6: memref<1x128x128xbf16, #tpu.memory_space<vmem>>, %arg7: memref<1x1x1x128xf32, #tpu.memory_space<vmem>>, %arg8: memref<1x1x1x128xf32, #tpu.memory_space<vmem>>) attributes {dimension_semantics = [#tpu.dimension_semantics<parallel>, #tpu.dimension_semantics<parallel>], iteration_bounds = array<i64: 2, 1>, scalar_prefetch = 0 : i64, scratch_operands = 0 : i64, tpu.core_type = #tpu.core_type<tc>, window_params = [{transform_indices = @transform_0, window_bounds = array<i64: 1, 144, 64>}, {pipeline_mode = #tpu.pipeline_mode<synchronous>, transform_indices = @transform_1, window_bounds = array<i64: 2, 64, 128>}, {pipeline_mode = #tpu.pipeline_mode<synchronous>, transform_indices = @transform_2, window_bounds = array<i64: 1, 128>}, {pipeline_mode = #tpu.pipeline_mode<synchronous>, transform_indices = @transform_3, window_bounds = array<i64: 128, 1>}, {transform_indices = @transform_4, window_bounds = array<i64: 1, 128, 128>}, {transform_indices = @transform_5, window_bounds = array<i64: 1, 1, 1, 128>}, {transform_indices = @transform_6, window_bounds = array<i64: 1, 1, 1, 128>}]} {
    %c128_i32 = arith.constant 128 : i32
    %0 = arith.muli %arg1, %c128_i32 : i32
    %cst = arith.constant 0.000000e+00 : f32
    %1 = vector.broadcast %cst : f32 to vector<128x128xf32>
    %c0_i32 = arith.constant 0 : i32
    %2 = arith.addi %0, %c0_i32 : i32
    %3 = tpu.assume_multiple %2, 8 : i32
    %c0 = arith.constant 0 : index
    %4 = arith.index_cast %3 : i32 to index
    %c0_0 = arith.constant 0 : index
    %5 = vector.load %arg2[%c0, %4, %c0_0] : memref<1x144x64xbf16, #tpu.memory_space<vmem>>, vector<1x128x64xbf16>
    %6 = vector.shape_cast %5 : vector<1x128x64xbf16> to vector<128x64xbf16>
    %c0_1 = arith.constant 0 : index
    %c0_2 = arith.constant 0 : index
    %c0_3 = arith.constant 0 : index
    %7 = vector.load %arg3[%c0_1, %c0_2, %c0_3] : memref<2x64x128xbf16, #tpu.memory_space<vmem>>, vector<1x64x128xbf16>
    %8 = vector.shape_cast %7 : vector<1x64x128xbf16> to vector<64x128xbf16>
    %cst_4 = arith.constant dense<0.000000e+00> : vector<128x128xf32>
    %9 = tpu.matmul %6, %8, %cst_4 {dimension_numbers = #tpu.dot_dimension_numbers<[1], [0], [0], [1], [0, 0, 1, 1], [], []>} : vector<128x64xbf16>, vector<64x128xbf16>, vector<128x128xf32> -> vector<128x128xf32>
    %10 = arith.addf %1, %9 : vector<128x128xf32>
    %c16_i32 = arith.constant 16 : i32
    %11 = arith.addi %0, %c16_i32 : i32
    %12 = tpu.assume_multiple %11, 8 : i32
    %c0_5 = arith.constant 0 : index
    %13 = arith.index_cast %12 : i32 to index
    %c0_6 = arith.constant 0 : index
    %14 = vector.load %arg2[%c0_5, %13, %c0_6] : memref<1x144x64xbf16, #tpu.memory_space<vmem>>, vector<1x128x64xbf16>
    %15 = vector.shape_cast %14 : vector<1x128x64xbf16> to vector<128x64xbf16>
    %c1 = arith.constant 1 : index
    %c0_7 = arith.constant 0 : index
    %c0_8 = arith.constant 0 : index
    %16 = vector.load %arg3[%c1, %c0_7, %c0_8] : memref<2x64x128xbf16, #tpu.memory_space<vmem>>, vector<1x64x128xbf16>
    %17 = vector.shape_cast %16 : vector<1x64x128xbf16> to vector<64x128xbf16>
    %cst_9 = arith.constant dense<0.000000e+00> : vector<128x128xf32>
    %18 = tpu.matmul %15, %17, %cst_9 {dimension_numbers = #tpu.dot_dimension_numbers<[1], [0], [0], [1], [0, 0, 1, 1], [], []>} : vector<128x64xbf16>, vector<64x128xbf16>, vector<128x128xf32> -> vector<128x128xf32>
    %19 = arith.addf %10, %18 : vector<128x128xf32>
    %c0_10 = arith.constant 0 : index
    %c0_11 = arith.constant 0 : index
    %20 = vector.load %arg4[%c0_10, %c0_11] : memref<1x128xf32, #tpu.memory_space<vmem>>, vector<1x128xf32>
    %21 = vector.broadcast %20 : vector<1x128xf32> to vector<128x128xf32>
    %22 = arith.addf %19, %21 : vector<128x128xf32>
    %23 = tpu.iota {dimensions = array<i32: 0>} : vector<128x1xi32>
    %24 = vector.broadcast %0 : i32 to vector<128x1xi32>
    %25 = arith.addi %24, %23 : vector<128x1xi32>
    %c128_i32_12 = arith.constant 128 : i32
    %26 = vector.broadcast %c128_i32_12 : i32 to vector<128x1xi32>
    %27 = arith.cmpi slt, %25, %26 : vector<128x1xi32>
    %c0_13 = arith.constant 0 : index
    %c0_14 = arith.constant 0 : index
    %28 = vector.load %arg5[%c0_13, %c0_14] : memref<128x1xf32, #tpu.memory_space<vmem>>, vector<128x1xf32>
    %29 = vector.broadcast %28 : vector<128x1xf32> to vector<128x128xf32>
    %30 = arith.mulf %22, %29 : vector<128x128xf32>
    %cst_15 = arith.constant 0.000000e+00 : f32
    %31 = vector.shape_cast %27 : vector<128x1xi1> to vector<128x1xi1>
    %32 = vector.broadcast %31 : vector<128x1xi1> to vector<128x128xi1>
    %33 = vector.broadcast %cst_15 : f32 to vector<128x128xf32>
    %34 = arith.select %32, %30, %33 : vector<128x128xi1>, vector<128x128xf32>
    %cst_16 = arith.constant dense<0.000000e+00> : vector<128xf32>
    %35 = vector.multi_reduction <add>, %34, %cst_16 [0] : vector<128x128xf32> to vector<128xf32>
    %36 = vector.shape_cast %35 : vector<128xf32> to vector<1x128xf32>
    %c0_17 = arith.constant 0 : index
    %c0_18 = arith.constant 0 : index
    %c0_19 = arith.constant 0 : index
    %c0_20 = arith.constant 0 : index
    %37 = vector.load %arg7[%c0_17, %c0_18, %c0_19, %c0_20] : memref<1x1x1x128xf32, #tpu.memory_space<vmem>>, vector<1x1x1x128xf32>
    %38 = vector.shape_cast %37 : vector<1x1x1x128xf32> to vector<1x128xf32>
    %39 = vector.shape_cast %36 : vector<1x128xf32> to vector<1x1x1x128xf32>
    tpu.vector_store %arg7[%c0_17, %c0_18, %c0_19, %c0_20], %39 {strides = array<i32>} : memref<1x1x1x128xf32, #tpu.memory_space<vmem>>, vector<1x1x1x128xf32>,
    %40 = arith.mulf %34, %34 : vector<128x128xf32>
    %cst_21 = arith.constant dense<0.000000e+00> : vector<128xf32>
    %41 = vector.multi_reduction <add>, %40, %cst_21 [0] : vector<128x128xf32> to vector<128xf32>
    %42 = vector.shape_cast %41 : vector<128xf32> to vector<1x128xf32>
    %c0_22 = arith.constant 0 : index
    %c0_23 = arith.constant 0 : index
    %c0_24 = arith.constant 0 : index
    %c0_25 = arith.constant 0 : index
    %43 = vector.load %arg8[%c0_22, %c0_23, %c0_24, %c0_25] : memref<1x1x1x128xf32, #tpu.memory_space<vmem>>, vector<1x1x1x128xf32>
    %44 = vector.shape_cast %43 : vector<1x1x1x128xf32> to vector<1x128xf32>
    %45 = vector.shape_cast %42 : vector<1x128xf32> to vector<1x1x1x128xf32>
    tpu.vector_store %arg8[%c0_22, %c0_23, %c0_24, %c0_25], %45 {strides = array<i32>} : memref<1x1x1x128xf32, #tpu.memory_space<vmem>>, vector<1x1x1x128xf32>,
    %46 = arith.truncf %22 : vector<128x128xf32> to vector<128x128xbf16>
    %c0_26 = arith.constant 0 : index
    %c0_27 = arith.constant 0 : index
    %c0_28 = arith.constant 0 : index
    %47 = vector.load %arg6[%c0_26, %c0_27, %c0_28] : memref<1x128x128xbf16, #tpu.memory_space<vmem>>, vector<1x128x128xbf16>
    %48 = vector.shape_cast %47 : vector<1x128x128xbf16> to vector<128x128xbf16>
    %49 = vector.shape_cast %46 : vector<128x128xbf16> to vector<1x128x128xbf16>
    tpu.vector_store %arg6[%c0_26, %c0_27, %c0_28], %49 {strides = array<i32>} : memref<1x128x128xbf16, #tpu.memory_space<vmem>>, vector<1x128x128xbf16>,
    return
  }
  func.func @transform_0(%arg0: i32, %arg1: i32) -> (i32, i32, i32) {
    %c0_i32 = arith.constant 0 : i32
    %c0_i32_0 = arith.constant 0 : i32
    %c0_i32_1 = arith.constant 0 : i32
    return %arg0, %c0_i32, %c0_i32_0 : i32, i32, i32
  }
  func.func @transform_1(%arg0: i32, %arg1: i32) -> (i32, i32, i32) {
    %c0_i32 = arith.constant 0 : i32
    %c0_i32_0 = arith.constant 0 : i32
    %c0_i32_1 = arith.constant 0 : i32
    %c0_i32_2 = arith.constant 0 : i32
    return %c0_i32, %c0_i32_0, %c0_i32_1 : i32, i32, i32
  }
  func.func @transform_2(%arg0: i32, %arg1: i32) -> (i32, i32) {
    %c0_i32 = arith.constant 0 : i32
    %c0_i32_0 = arith.constant 0 : i32
    %c0_i32_1 = arith.constant 0 : i32
    return %c0_i32, %c0_i32_0 : i32, i32
  }
  func.func @transform_3(%arg0: i32, %arg1: i32) -> (i32, i32) {
    %c0_i32 = arith.constant 0 : i32
    %c0_i32_0 = arith.constant 0 : i32
    %c0_i32_1 = arith.constant 0 : i32
    return %c0_i32, %c0_i32_0 : i32, i32
  }
  func.func @transform_4(%arg0: i32, %arg1: i32) -> (i32, i32, i32) {
    %c0_i32 = arith.constant 0 : i32
    %c0_i32_0 = arith.constant 0 : i32
    return %arg0, %arg1, %c0_i32 : i32, i32, i32
  }
  func.func @transform_5(%arg0: i32, %arg1: i32) -> (i32, i32, i32, i32) {
    %c0_i32 = arith.constant 0 : i32
    %c0_i32_0 = arith.constant 0 : i32
    %c0_i32_1 = arith.constant 0 : i32
    return %arg0, %arg1, %c0_i32, %c0_i32_0 : i32, i32, i32, i32
  }
  func.func @transform_6(%arg0: i32, %arg1: i32) -> (i32, i32, i32, i32) {
    %c0_i32 = arith.constant 0 : i32
    %c0_i32_0 = arith.constant 0 : i32
    %c0_i32_1 = arith.constant 0 : i32
    return %arg0, %arg1, %c0_i32, %c0_i32_0 : i32, i32, i32, i32
  }
}

module attributes {stable_mosaic.version = 11 : i64} {
  func.func @_conv_kernel(%arg0: i32, %arg1: i32, %arg2: memref<1x40x128xbf16, #tpu.memory_space<vmem>>, %arg3: memref<2x128x128xbf16, #tpu.memory_space<vmem>>, %arg4: memref<1x128xf32, #tpu.memory_space<vmem>>, %arg5: memref<32x1xf32, #tpu.memory_space<vmem>>, %arg6: memref<1x32x128xbf16, #tpu.memory_space<vmem>>, %arg7: memref<1x1x1x128xf32, #tpu.memory_space<vmem>>, %arg8: memref<1x1x1x128xf32, #tpu.memory_space<vmem>>) attributes {dimension_semantics = [#tpu.dimension_semantics<parallel>, #tpu.dimension_semantics<parallel>], iteration_bounds = array<i64: 2, 1>, scalar_prefetch = 0 : i64, scratch_operands = 0 : i64, tpu.core_type = #tpu.core_type<tc>, window_params = [{transform_indices = @transform_0, window_bounds = array<i64: 1, 40, 128>}, {pipeline_mode = #tpu.pipeline_mode<synchronous>, transform_indices = @transform_1, window_bounds = array<i64: 2, 128, 128>}, {pipeline_mode = #tpu.pipeline_mode<synchronous>, transform_indices = @transform_2, window_bounds = array<i64: 1, 128>}, {pipeline_mode = #tpu.pipeline_mode<synchronous>, transform_indices = @transform_3, window_bounds = array<i64: 32, 1>}, {transform_indices = @transform_4, window_bounds = array<i64: 1, 32, 128>}, {transform_indices = @transform_5, window_bounds = array<i64: 1, 1, 1, 128>}, {transform_indices = @transform_6, window_bounds = array<i64: 1, 1, 1, 128>}]} {
    %c32_i32 = arith.constant 32 : i32
    %0 = arith.muli %arg1, %c32_i32 : i32
    %cst = arith.constant 0.000000e+00 : f32
    %1 = vector.broadcast %cst : f32 to vector<32x128xf32>
    %c0_i32 = arith.constant 0 : i32
    %2 = arith.addi %0, %c0_i32 : i32
    %3 = tpu.assume_multiple %2, 8 : i32
    %c0 = arith.constant 0 : index
    %4 = arith.index_cast %3 : i32 to index
    %c0_0 = arith.constant 0 : index
    %5 = vector.load %arg2[%c0, %4, %c0_0] : memref<1x40x128xbf16, #tpu.memory_space<vmem>>, vector<1x32x128xbf16>
    %6 = vector.shape_cast %5 : vector<1x32x128xbf16> to vector<32x128xbf16>
    %c0_1 = arith.constant 0 : index
    %c0_2 = arith.constant 0 : index
    %c0_3 = arith.constant 0 : index
    %7 = vector.load %arg3[%c0_1, %c0_2, %c0_3] : memref<2x128x128xbf16, #tpu.memory_space<vmem>>, vector<1x128x128xbf16>
    %8 = vector.shape_cast %7 : vector<1x128x128xbf16> to vector<128x128xbf16>
    %cst_4 = arith.constant dense<0.000000e+00> : vector<32x128xf32>
    %9 = tpu.matmul %6, %8, %cst_4 {dimension_numbers = #tpu.dot_dimension_numbers<[1], [0], [0], [1], [0, 0, 1, 1], [], []>} : vector<32x128xbf16>, vector<128x128xbf16>, vector<32x128xf32> -> vector<32x128xf32>
    %10 = arith.addf %1, %9 : vector<32x128xf32>
    %c8_i32 = arith.constant 8 : i32
    %11 = arith.addi %0, %c8_i32 : i32
    %12 = tpu.assume_multiple %11, 8 : i32
    %c0_5 = arith.constant 0 : index
    %13 = arith.index_cast %12 : i32 to index
    %c0_6 = arith.constant 0 : index
    %14 = vector.load %arg2[%c0_5, %13, %c0_6] : memref<1x40x128xbf16, #tpu.memory_space<vmem>>, vector<1x32x128xbf16>
    %15 = vector.shape_cast %14 : vector<1x32x128xbf16> to vector<32x128xbf16>
    %c1 = arith.constant 1 : index
    %c0_7 = arith.constant 0 : index
    %c0_8 = arith.constant 0 : index
    %16 = vector.load %arg3[%c1, %c0_7, %c0_8] : memref<2x128x128xbf16, #tpu.memory_space<vmem>>, vector<1x128x128xbf16>
    %17 = vector.shape_cast %16 : vector<1x128x128xbf16> to vector<128x128xbf16>
    %cst_9 = arith.constant dense<0.000000e+00> : vector<32x128xf32>
    %18 = tpu.matmul %15, %17, %cst_9 {dimension_numbers = #tpu.dot_dimension_numbers<[1], [0], [0], [1], [0, 0, 1, 1], [], []>} : vector<32x128xbf16>, vector<128x128xbf16>, vector<32x128xf32> -> vector<32x128xf32>
    %19 = arith.addf %10, %18 : vector<32x128xf32>
    %c0_10 = arith.constant 0 : index
    %c0_11 = arith.constant 0 : index
    %20 = vector.load %arg4[%c0_10, %c0_11] : memref<1x128xf32, #tpu.memory_space<vmem>>, vector<1x128xf32>
    %21 = vector.broadcast %20 : vector<1x128xf32> to vector<32x128xf32>
    %22 = arith.addf %19, %21 : vector<32x128xf32>
    %23 = tpu.iota {dimensions = array<i32: 0>} : vector<32x1xi32>
    %24 = vector.broadcast %0 : i32 to vector<32x1xi32>
    %25 = arith.addi %24, %23 : vector<32x1xi32>
    %c32_i32_12 = arith.constant 32 : i32
    %26 = vector.broadcast %c32_i32_12 : i32 to vector<32x1xi32>
    %27 = arith.cmpi slt, %25, %26 : vector<32x1xi32>
    %c0_13 = arith.constant 0 : index
    %c0_14 = arith.constant 0 : index
    %28 = vector.load %arg5[%c0_13, %c0_14] : memref<32x1xf32, #tpu.memory_space<vmem>>, vector<32x1xf32>
    %29 = vector.broadcast %28 : vector<32x1xf32> to vector<32x128xf32>
    %30 = arith.mulf %22, %29 : vector<32x128xf32>
    %cst_15 = arith.constant 0.000000e+00 : f32
    %31 = vector.shape_cast %27 : vector<32x1xi1> to vector<32x1xi1>
    %32 = vector.broadcast %31 : vector<32x1xi1> to vector<32x128xi1>
    %33 = vector.broadcast %cst_15 : f32 to vector<32x128xf32>
    %34 = arith.select %32, %30, %33 : vector<32x128xi1>, vector<32x128xf32>
    %cst_16 = arith.constant dense<0.000000e+00> : vector<128xf32>
    %35 = vector.multi_reduction <add>, %34, %cst_16 [0] : vector<32x128xf32> to vector<128xf32>
    %36 = vector.shape_cast %35 : vector<128xf32> to vector<1x128xf32>
    %c0_17 = arith.constant 0 : index
    %c0_18 = arith.constant 0 : index
    %c0_19 = arith.constant 0 : index
    %c0_20 = arith.constant 0 : index
    %37 = vector.load %arg7[%c0_17, %c0_18, %c0_19, %c0_20] : memref<1x1x1x128xf32, #tpu.memory_space<vmem>>, vector<1x1x1x128xf32>
    %38 = vector.shape_cast %37 : vector<1x1x1x128xf32> to vector<1x128xf32>
    %39 = vector.shape_cast %36 : vector<1x128xf32> to vector<1x1x1x128xf32>
    tpu.vector_store %arg7[%c0_17, %c0_18, %c0_19, %c0_20], %39 {strides = array<i32>} : memref<1x1x1x128xf32, #tpu.memory_space<vmem>>, vector<1x1x1x128xf32>,
    %40 = arith.mulf %34, %34 : vector<32x128xf32>
    %cst_21 = arith.constant dense<0.000000e+00> : vector<128xf32>
    %41 = vector.multi_reduction <add>, %40, %cst_21 [0] : vector<32x128xf32> to vector<128xf32>
    %42 = vector.shape_cast %41 : vector<128xf32> to vector<1x128xf32>
    %c0_22 = arith.constant 0 : index
    %c0_23 = arith.constant 0 : index
    %c0_24 = arith.constant 0 : index
    %c0_25 = arith.constant 0 : index
    %43 = vector.load %arg8[%c0_22, %c0_23, %c0_24, %c0_25] : memref<1x1x1x128xf32, #tpu.memory_space<vmem>>, vector<1x1x1x128xf32>
    %44 = vector.shape_cast %43 : vector<1x1x1x128xf32> to vector<1x128xf32>
    %45 = vector.shape_cast %42 : vector<1x128xf32> to vector<1x1x1x128xf32>
    tpu.vector_store %arg8[%c0_22, %c0_23, %c0_24, %c0_25], %45 {strides = array<i32>} : memref<1x1x1x128xf32, #tpu.memory_space<vmem>>, vector<1x1x1x128xf32>,
    %46 = arith.truncf %22 : vector<32x128xf32> to vector<32x128xbf16>
    %c0_26 = arith.constant 0 : index
    %c0_27 = arith.constant 0 : index
    %c0_28 = arith.constant 0 : index
    %47 = vector.load %arg6[%c0_26, %c0_27, %c0_28] : memref<1x32x128xbf16, #tpu.memory_space<vmem>>, vector<1x32x128xbf16>
    %48 = vector.shape_cast %47 : vector<1x32x128xbf16> to vector<32x128xbf16>
    %49 = vector.shape_cast %46 : vector<32x128xbf16> to vector<1x32x128xbf16>
    tpu.vector_store %arg6[%c0_26, %c0_27, %c0_28], %49 {strides = array<i32>} : memref<1x32x128xbf16, #tpu.memory_space<vmem>>, vector<1x32x128xbf16>,
    return
  }
  func.func @transform_0(%arg0: i32, %arg1: i32) -> (i32, i32, i32) {
    %c0_i32 = arith.constant 0 : i32
    %c0_i32_0 = arith.constant 0 : i32
    %c0_i32_1 = arith.constant 0 : i32
    return %arg0, %c0_i32, %c0_i32_0 : i32, i32, i32
  }
  func.func @transform_1(%arg0: i32, %arg1: i32) -> (i32, i32, i32) {
    %c0_i32 = arith.constant 0 : i32
    %c0_i32_0 = arith.constant 0 : i32
    %c0_i32_1 = arith.constant 0 : i32
    %c0_i32_2 = arith.constant 0 : i32
    return %c0_i32, %c0_i32_0, %c0_i32_1 : i32, i32, i32
  }
  func.func @transform_2(%arg0: i32, %arg1: i32) -> (i32, i32) {
    %c0_i32 = arith.constant 0 : i32
    %c0_i32_0 = arith.constant 0 : i32
    %c0_i32_1 = arith.constant 0 : i32
    return %c0_i32, %c0_i32_0 : i32, i32
  }
  func.func @transform_3(%arg0: i32, %arg1: i32) -> (i32, i32) {
    %c0_i32 = arith.constant 0 : i32
    %c0_i32_0 = arith.constant 0 : i32
    %c0_i32_1 = arith.constant 0 : i32
    return %c0_i32, %c0_i32_0 : i32, i32
  }
  func.func @transform_4(%arg0: i32, %arg1: i32) -> (i32, i32, i32) {
    %c0_i32 = arith.constant 0 : i32
    %c0_i32_0 = arith.constant 0 : i32
    return %arg0, %arg1, %c0_i32 : i32, i32, i32
  }
  func.func @transform_5(%arg0: i32, %arg1: i32) -> (i32, i32, i32, i32) {
    %c0_i32 = arith.constant 0 : i32
    %c0_i32_0 = arith.constant 0 : i32
    %c0_i32_1 = arith.constant 0 : i32
    return %arg0, %arg1, %c0_i32, %c0_i32_0 : i32, i32, i32, i32
  }
  func.func @transform_6(%arg0: i32, %arg1: i32) -> (i32, i32, i32, i32) {
    %c0_i32 = arith.constant 0 : i32
    %c0_i32_0 = arith.constant 0 : i32
    %c0_i32_1 = arith.constant 0 : i32
    return %arg0, %arg1, %c0_i32, %c0_i32_0 : i32, i32, i32, i32
  }
}

module attributes {stable_mosaic.version = 11 : i64} {
  func.func @_conv_kernel(%arg0: i32, %arg1: i32, %arg2: memref<1x48x128xbf16, #tpu.memory_space<vmem>>, %arg3: memref<4x128x128xbf16, #tpu.memory_space<vmem>>, %arg4: memref<1x128xf32, #tpu.memory_space<vmem>>, %arg5: memref<24x1xf32, #tpu.memory_space<vmem>>, %arg6: memref<1x24x128xbf16, #tpu.memory_space<vmem>>, %arg7: memref<1x1x1x128xf32, #tpu.memory_space<vmem>>, %arg8: memref<1x1x1x128xf32, #tpu.memory_space<vmem>>) attributes {dimension_semantics = [#tpu.dimension_semantics<parallel>, #tpu.dimension_semantics<parallel>], iteration_bounds = array<i64: 2, 1>, scalar_prefetch = 0 : i64, scratch_operands = 0 : i64, tpu.core_type = #tpu.core_type<tc>, window_params = [{transform_indices = @transform_0, window_bounds = array<i64: 1, 48, 128>}, {pipeline_mode = #tpu.pipeline_mode<synchronous>, transform_indices = @transform_1, window_bounds = array<i64: 4, 128, 128>}, {pipeline_mode = #tpu.pipeline_mode<synchronous>, transform_indices = @transform_2, window_bounds = array<i64: 1, 128>}, {pipeline_mode = #tpu.pipeline_mode<synchronous>, transform_indices = @transform_3, window_bounds = array<i64: 24, 1>}, {transform_indices = @transform_4, window_bounds = array<i64: 1, 24, 128>}, {transform_indices = @transform_5, window_bounds = array<i64: 1, 1, 1, 128>}, {transform_indices = @transform_6, window_bounds = array<i64: 1, 1, 1, 128>}]} {
    %c24_i32 = arith.constant 24 : i32
    %0 = arith.muli %arg1, %c24_i32 : i32
    %cst = arith.constant 0.000000e+00 : f32
    %1 = vector.broadcast %cst : f32 to vector<24x128xf32>
    %c0_i32 = arith.constant 0 : i32
    %2 = arith.addi %0, %c0_i32 : i32
    %3 = tpu.assume_multiple %2, 8 : i32
    %c0 = arith.constant 0 : index
    %4 = arith.index_cast %3 : i32 to index
    %c0_0 = arith.constant 0 : index
    %5 = vector.load %arg2[%c0, %4, %c0_0] : memref<1x48x128xbf16, #tpu.memory_space<vmem>>, vector<1x24x128xbf16>
    %6 = vector.shape_cast %5 : vector<1x24x128xbf16> to vector<24x128xbf16>
    %c0_1 = arith.constant 0 : index
    %c0_2 = arith.constant 0 : index
    %c0_3 = arith.constant 0 : index
    %7 = vector.load %arg3[%c0_1, %c0_2, %c0_3] : memref<4x128x128xbf16, #tpu.memory_space<vmem>>, vector<1x128x128xbf16>
    %8 = vector.shape_cast %7 : vector<1x128x128xbf16> to vector<128x128xbf16>
    %cst_4 = arith.constant dense<0.000000e+00> : vector<24x128xf32>
    %9 = tpu.matmul %6, %8, %cst_4 {dimension_numbers = #tpu.dot_dimension_numbers<[1], [0], [0], [1], [0, 0, 1, 1], [], []>} : vector<24x128xbf16>, vector<128x128xbf16>, vector<24x128xf32> -> vector<24x128xf32>
    %10 = arith.addf %1, %9 : vector<24x128xf32>
    %c8_i32 = arith.constant 8 : i32
    %11 = arith.addi %0, %c8_i32 : i32
    %12 = tpu.assume_multiple %11, 8 : i32
    %c0_5 = arith.constant 0 : index
    %13 = arith.index_cast %12 : i32 to index
    %c0_6 = arith.constant 0 : index
    %14 = vector.load %arg2[%c0_5, %13, %c0_6] : memref<1x48x128xbf16, #tpu.memory_space<vmem>>, vector<1x24x128xbf16>
    %15 = vector.shape_cast %14 : vector<1x24x128xbf16> to vector<24x128xbf16>
    %c1 = arith.constant 1 : index
    %c0_7 = arith.constant 0 : index
    %c0_8 = arith.constant 0 : index
    %16 = vector.load %arg3[%c1, %c0_7, %c0_8] : memref<4x128x128xbf16, #tpu.memory_space<vmem>>, vector<1x128x128xbf16>
    %17 = vector.shape_cast %16 : vector<1x128x128xbf16> to vector<128x128xbf16>
    %cst_9 = arith.constant dense<0.000000e+00> : vector<24x128xf32>
    %18 = tpu.matmul %15, %17, %cst_9 {dimension_numbers = #tpu.dot_dimension_numbers<[1], [0], [0], [1], [0, 0, 1, 1], [], []>} : vector<24x128xbf16>, vector<128x128xbf16>, vector<24x128xf32> -> vector<24x128xf32>
    %19 = arith.addf %10, %18 : vector<24x128xf32>
    %c16_i32 = arith.constant 16 : i32
    %20 = arith.addi %0, %c16_i32 : i32
    %21 = tpu.assume_multiple %20, 8 : i32
    %c0_10 = arith.constant 0 : index
    %22 = arith.index_cast %21 : i32 to index
    %c0_11 = arith.constant 0 : index
    %23 = vector.load %arg2[%c0_10, %22, %c0_11] : memref<1x48x128xbf16, #tpu.memory_space<vmem>>, vector<1x24x128xbf16>
    %24 = vector.shape_cast %23 : vector<1x24x128xbf16> to vector<24x128xbf16>
    %c2 = arith.constant 2 : index
    %c0_12 = arith.constant 0 : index
    %c0_13 = arith.constant 0 : index
    %25 = vector.load %arg3[%c2, %c0_12, %c0_13] : memref<4x128x128xbf16, #tpu.memory_space<vmem>>, vector<1x128x128xbf16>
    %26 = vector.shape_cast %25 : vector<1x128x128xbf16> to vector<128x128xbf16>
    %cst_14 = arith.constant dense<0.000000e+00> : vector<24x128xf32>
    %27 = tpu.matmul %24, %26, %cst_14 {dimension_numbers = #tpu.dot_dimension_numbers<[1], [0], [0], [1], [0, 0, 1, 1], [], []>} : vector<24x128xbf16>, vector<128x128xbf16>, vector<24x128xf32> -> vector<24x128xf32>
    %28 = arith.addf %19, %27 : vector<24x128xf32>
    %c24_i32_15 = arith.constant 24 : i32
    %29 = arith.addi %0, %c24_i32_15 : i32
    %30 = tpu.assume_multiple %29, 8 : i32
    %c0_16 = arith.constant 0 : index
    %31 = arith.index_cast %30 : i32 to index
    %c0_17 = arith.constant 0 : index
    %32 = vector.load %arg2[%c0_16, %31, %c0_17] : memref<1x48x128xbf16, #tpu.memory_space<vmem>>, vector<1x24x128xbf16>
    %33 = vector.shape_cast %32 : vector<1x24x128xbf16> to vector<24x128xbf16>
    %c3 = arith.constant 3 : index
    %c0_18 = arith.constant 0 : index
    %c0_19 = arith.constant 0 : index
    %34 = vector.load %arg3[%c3, %c0_18, %c0_19] : memref<4x128x128xbf16, #tpu.memory_space<vmem>>, vector<1x128x128xbf16>
    %35 = vector.shape_cast %34 : vector<1x128x128xbf16> to vector<128x128xbf16>
    %cst_20 = arith.constant dense<0.000000e+00> : vector<24x128xf32>
    %36 = tpu.matmul %33, %35, %cst_20 {dimension_numbers = #tpu.dot_dimension_numbers<[1], [0], [0], [1], [0, 0, 1, 1], [], []>} : vector<24x128xbf16>, vector<128x128xbf16>, vector<24x128xf32> -> vector<24x128xf32>
    %37 = arith.addf %28, %36 : vector<24x128xf32>
    %c0_21 = arith.constant 0 : index
    %c0_22 = arith.constant 0 : index
    %38 = vector.load %arg4[%c0_21, %c0_22] : memref<1x128xf32, #tpu.memory_space<vmem>>, vector<1x128xf32>
    %39 = vector.broadcast %38 : vector<1x128xf32> to vector<24x128xf32>
    %40 = arith.addf %37, %39 : vector<24x128xf32>
    %41 = tpu.iota {dimensions = array<i32: 0>} : vector<24x1xi32>
    %42 = vector.broadcast %0 : i32 to vector<24x1xi32>
    %43 = arith.addi %42, %41 : vector<24x1xi32>
    %c24_i32_23 = arith.constant 24 : i32
    %44 = vector.broadcast %c24_i32_23 : i32 to vector<24x1xi32>
    %45 = arith.cmpi slt, %43, %44 : vector<24x1xi32>
    %c0_24 = arith.constant 0 : index
    %c0_25 = arith.constant 0 : index
    %46 = vector.load %arg5[%c0_24, %c0_25] : memref<24x1xf32, #tpu.memory_space<vmem>>, vector<24x1xf32>
    %47 = vector.broadcast %46 : vector<24x1xf32> to vector<24x128xf32>
    %48 = arith.mulf %40, %47 : vector<24x128xf32>
    %cst_26 = arith.constant 0.000000e+00 : f32
    %49 = vector.shape_cast %45 : vector<24x1xi1> to vector<24x1xi1>
    %50 = vector.broadcast %49 : vector<24x1xi1> to vector<24x128xi1>
    %51 = vector.broadcast %cst_26 : f32 to vector<24x128xf32>
    %52 = arith.select %50, %48, %51 : vector<24x128xi1>, vector<24x128xf32>
    %cst_27 = arith.constant dense<0.000000e+00> : vector<128xf32>
    %53 = vector.multi_reduction <add>, %52, %cst_27 [0] : vector<24x128xf32> to vector<128xf32>
    %54 = vector.shape_cast %53 : vector<128xf32> to vector<1x128xf32>
    %c0_28 = arith.constant 0 : index
    %c0_29 = arith.constant 0 : index
    %c0_30 = arith.constant 0 : index
    %c0_31 = arith.constant 0 : index
    %55 = vector.load %arg7[%c0_28, %c0_29, %c0_30, %c0_31] : memref<1x1x1x128xf32, #tpu.memory_space<vmem>>, vector<1x1x1x128xf32>
    %56 = vector.shape_cast %55 : vector<1x1x1x128xf32> to vector<1x128xf32>
    %57 = vector.shape_cast %54 : vector<1x128xf32> to vector<1x1x1x128xf32>
    tpu.vector_store %arg7[%c0_28, %c0_29, %c0_30, %c0_31], %57 {strides = array<i32>} : memref<1x1x1x128xf32, #tpu.memory_space<vmem>>, vector<1x1x1x128xf32>,
    %58 = arith.mulf %52, %52 : vector<24x128xf32>
    %cst_32 = arith.constant dense<0.000000e+00> : vector<128xf32>
    %59 = vector.multi_reduction <add>, %58, %cst_32 [0] : vector<24x128xf32> to vector<128xf32>
    %60 = vector.shape_cast %59 : vector<128xf32> to vector<1x128xf32>
    %c0_33 = arith.constant 0 : index
    %c0_34 = arith.constant 0 : index
    %c0_35 = arith.constant 0 : index
    %c0_36 = arith.constant 0 : index
    %61 = vector.load %arg8[%c0_33, %c0_34, %c0_35, %c0_36] : memref<1x1x1x128xf32, #tpu.memory_space<vmem>>, vector<1x1x1x128xf32>
    %62 = vector.shape_cast %61 : vector<1x1x1x128xf32> to vector<1x128xf32>
    %63 = vector.shape_cast %60 : vector<1x128xf32> to vector<1x1x1x128xf32>
    tpu.vector_store %arg8[%c0_33, %c0_34, %c0_35, %c0_36], %63 {strides = array<i32>} : memref<1x1x1x128xf32, #tpu.memory_space<vmem>>, vector<1x1x1x128xf32>,
    %64 = arith.truncf %40 : vector<24x128xf32> to vector<24x128xbf16>
    %c0_37 = arith.constant 0 : index
    %c0_38 = arith.constant 0 : index
    %c0_39 = arith.constant 0 : index
    %65 = vector.load %arg6[%c0_37, %c0_38, %c0_39] : memref<1x24x128xbf16, #tpu.memory_space<vmem>>, vector<1x24x128xbf16>
    %66 = vector.shape_cast %65 : vector<1x24x128xbf16> to vector<24x128xbf16>
    %67 = vector.shape_cast %64 : vector<24x128xbf16> to vector<1x24x128xbf16>
    tpu.vector_store %arg6[%c0_37, %c0_38, %c0_39], %67 {strides = array<i32>} : memref<1x24x128xbf16, #tpu.memory_space<vmem>>, vector<1x24x128xbf16>,
    return
  }
  func.func @transform_0(%arg0: i32, %arg1: i32) -> (i32, i32, i32) {
    %c0_i32 = arith.constant 0 : i32
    %c0_i32_0 = arith.constant 0 : i32
    %c0_i32_1 = arith.constant 0 : i32
    return %arg0, %c0_i32, %c0_i32_0 : i32, i32, i32
  }
  func.func @transform_1(%arg0: i32, %arg1: i32) -> (i32, i32, i32) {
    %c0_i32 = arith.constant 0 : i32
    %c0_i32_0 = arith.constant 0 : i32
    %c0_i32_1 = arith.constant 0 : i32
    %c0_i32_2 = arith.constant 0 : i32
    return %c0_i32, %c0_i32_0, %c0_i32_1 : i32, i32, i32
  }
  func.func @transform_2(%arg0: i32, %arg1: i32) -> (i32, i32) {
    %c0_i32 = arith.constant 0 : i32
    %c0_i32_0 = arith.constant 0 : i32
    %c0_i32_1 = arith.constant 0 : i32
    return %c0_i32, %c0_i32_0 : i32, i32
  }
  func.func @transform_3(%arg0: i32, %arg1: i32) -> (i32, i32) {
    %c0_i32 = arith.constant 0 : i32
    %c0_i32_0 = arith.constant 0 : i32
    %c0_i32_1 = arith.constant 0 : i32
    return %c0_i32, %c0_i32_0 : i32, i32
  }
  func.func @transform_4(%arg0: i32, %arg1: i32) -> (i32, i32, i32) {
    %c0_i32 = arith.constant 0 : i32
    %c0_i32_0 = arith.constant 0 : i32
    return %arg0, %arg1, %c0_i32 : i32, i32, i32
  }
  func.func @transform_5(%arg0: i32, %arg1: i32) -> (i32, i32, i32, i32) {
    %c0_i32 = arith.constant 0 : i32
    %c0_i32_0 = arith.constant 0 : i32
    %c0_i32_1 = arith.constant 0 : i32
    return %arg0, %arg1, %c0_i32, %c0_i32_0 : i32, i32, i32, i32
  }
  func.func @transform_6(%arg0: i32, %arg1: i32) -> (i32, i32, i32, i32) {
    %c0_i32 = arith.constant 0 : i32
    %c0_i32_0 = arith.constant 0 : i32
    %c0_i32_1 = arith.constant 0 : i32
    return %arg0, %arg1, %c0_i32, %c0_i32_0 : i32, i32, i32, i32
  }
}

module attributes {stable_mosaic.version = 11 : i64} {
  func.func @_conv_kernel(%arg0: i32, %arg1: i32, %arg2: memref<1x40x256xbf16, #tpu.memory_space<vmem>>, %arg3: memref<4x256x128xbf16, #tpu.memory_space<vmem>>, %arg4: memref<1x128xf32, #tpu.memory_space<vmem>>, %arg5: memref<1x16x128xbf16, #tpu.memory_space<vmem>>) attributes {dimension_semantics = [#tpu.dimension_semantics<parallel>, #tpu.dimension_semantics<parallel>], iteration_bounds = array<i64: 2, 1>, scalar_prefetch = 0 : i64, scratch_operands = 0 : i64, tpu.core_type = #tpu.core_type<tc>, window_params = [{transform_indices = @transform_0, window_bounds = array<i64: 1, 40, 256>}, {pipeline_mode = #tpu.pipeline_mode<synchronous>, transform_indices = @transform_1, window_bounds = array<i64: 4, 256, 128>}, {pipeline_mode = #tpu.pipeline_mode<synchronous>, transform_indices = @transform_2, window_bounds = array<i64: 1, 128>}, {transform_indices = @transform_3, window_bounds = array<i64: 1, 16, 128>}]} {
    %c16_i32 = arith.constant 16 : i32
    %0 = arith.muli %arg1, %c16_i32 : i32
    %cst = arith.constant 0.000000e+00 : f32
    %1 = vector.broadcast %cst : f32 to vector<16x128xf32>
    %c0_i32 = arith.constant 0 : i32
    %2 = arith.addi %0, %c0_i32 : i32
    %3 = tpu.assume_multiple %2, 8 : i32
    %c0 = arith.constant 0 : index
    %4 = arith.index_cast %3 : i32 to index
    %c0_0 = arith.constant 0 : index
    %5 = vector.load %arg2[%c0, %4, %c0_0] : memref<1x40x256xbf16, #tpu.memory_space<vmem>>, vector<1x16x256xbf16>
    %6 = vector.shape_cast %5 : vector<1x16x256xbf16> to vector<16x256xbf16>
    %c0_1 = arith.constant 0 : index
    %c0_2 = arith.constant 0 : index
    %c0_3 = arith.constant 0 : index
    %7 = vector.load %arg3[%c0_1, %c0_2, %c0_3] : memref<4x256x128xbf16, #tpu.memory_space<vmem>>, vector<1x256x128xbf16>
    %8 = vector.shape_cast %7 : vector<1x256x128xbf16> to vector<256x128xbf16>
    %cst_4 = arith.constant dense<0.000000e+00> : vector<16x128xf32>
    %9 = tpu.matmul %6, %8, %cst_4 {dimension_numbers = #tpu.dot_dimension_numbers<[1], [0], [0], [1], [0, 0, 1, 1], [], []>} : vector<16x256xbf16>, vector<256x128xbf16>, vector<16x128xf32> -> vector<16x128xf32>
    %10 = arith.addf %1, %9 : vector<16x128xf32>
    %c8_i32 = arith.constant 8 : i32
    %11 = arith.addi %0, %c8_i32 : i32
    %12 = tpu.assume_multiple %11, 8 : i32
    %c0_5 = arith.constant 0 : index
    %13 = arith.index_cast %12 : i32 to index
    %c0_6 = arith.constant 0 : index
    %14 = vector.load %arg2[%c0_5, %13, %c0_6] : memref<1x40x256xbf16, #tpu.memory_space<vmem>>, vector<1x16x256xbf16>
    %15 = vector.shape_cast %14 : vector<1x16x256xbf16> to vector<16x256xbf16>
    %c1 = arith.constant 1 : index
    %c0_7 = arith.constant 0 : index
    %c0_8 = arith.constant 0 : index
    %16 = vector.load %arg3[%c1, %c0_7, %c0_8] : memref<4x256x128xbf16, #tpu.memory_space<vmem>>, vector<1x256x128xbf16>
    %17 = vector.shape_cast %16 : vector<1x256x128xbf16> to vector<256x128xbf16>
    %cst_9 = arith.constant dense<0.000000e+00> : vector<16x128xf32>
    %18 = tpu.matmul %15, %17, %cst_9 {dimension_numbers = #tpu.dot_dimension_numbers<[1], [0], [0], [1], [0, 0, 1, 1], [], []>} : vector<16x256xbf16>, vector<256x128xbf16>, vector<16x128xf32> -> vector<16x128xf32>
    %19 = arith.addf %10, %18 : vector<16x128xf32>
    %c16_i32_10 = arith.constant 16 : i32
    %20 = arith.addi %0, %c16_i32_10 : i32
    %21 = tpu.assume_multiple %20, 8 : i32
    %c0_11 = arith.constant 0 : index
    %22 = arith.index_cast %21 : i32 to index
    %c0_12 = arith.constant 0 : index
    %23 = vector.load %arg2[%c0_11, %22, %c0_12] : memref<1x40x256xbf16, #tpu.memory_space<vmem>>, vector<1x16x256xbf16>
    %24 = vector.shape_cast %23 : vector<1x16x256xbf16> to vector<16x256xbf16>
    %c2 = arith.constant 2 : index
    %c0_13 = arith.constant 0 : index
    %c0_14 = arith.constant 0 : index
    %25 = vector.load %arg3[%c2, %c0_13, %c0_14] : memref<4x256x128xbf16, #tpu.memory_space<vmem>>, vector<1x256x128xbf16>
    %26 = vector.shape_cast %25 : vector<1x256x128xbf16> to vector<256x128xbf16>
    %cst_15 = arith.constant dense<0.000000e+00> : vector<16x128xf32>
    %27 = tpu.matmul %24, %26, %cst_15 {dimension_numbers = #tpu.dot_dimension_numbers<[1], [0], [0], [1], [0, 0, 1, 1], [], []>} : vector<16x256xbf16>, vector<256x128xbf16>, vector<16x128xf32> -> vector<16x128xf32>
    %28 = arith.addf %19, %27 : vector<16x128xf32>
    %c24_i32 = arith.constant 24 : i32
    %29 = arith.addi %0, %c24_i32 : i32
    %30 = tpu.assume_multiple %29, 8 : i32
    %c0_16 = arith.constant 0 : index
    %31 = arith.index_cast %30 : i32 to index
    %c0_17 = arith.constant 0 : index
    %32 = vector.load %arg2[%c0_16, %31, %c0_17] : memref<1x40x256xbf16, #tpu.memory_space<vmem>>, vector<1x16x256xbf16>
    %33 = vector.shape_cast %32 : vector<1x16x256xbf16> to vector<16x256xbf16>
    %c3 = arith.constant 3 : index
    %c0_18 = arith.constant 0 : index
    %c0_19 = arith.constant 0 : index
    %34 = vector.load %arg3[%c3, %c0_18, %c0_19] : memref<4x256x128xbf16, #tpu.memory_space<vmem>>, vector<1x256x128xbf16>
    %35 = vector.shape_cast %34 : vector<1x256x128xbf16> to vector<256x128xbf16>
    %cst_20 = arith.constant dense<0.000000e+00> : vector<16x128xf32>
    %36 = tpu.matmul %33, %35, %cst_20 {dimension_numbers = #tpu.dot_dimension_numbers<[1], [0], [0], [1], [0, 0, 1, 1], [], []>} : vector<16x256xbf16>, vector<256x128xbf16>, vector<16x128xf32> -> vector<16x128xf32>
    %37 = arith.addf %28, %36 : vector<16x128xf32>
    %c0_21 = arith.constant 0 : index
    %c0_22 = arith.constant 0 : index
    %38 = vector.load %arg4[%c0_21, %c0_22] : memref<1x128xf32, #tpu.memory_space<vmem>>, vector<1x128xf32>
    %39 = vector.broadcast %38 : vector<1x128xf32> to vector<16x128xf32>
    %40 = arith.addf %37, %39 : vector<16x128xf32>
    %41 = math.absf %40 : vector<16x128xf32>
    %cst_23 = arith.constant 0.000000e+00 : f32
    %42 = vector.broadcast %cst_23 : f32 to vector<16x128xf32>
    %43 = arith.subf %42, %41 : vector<16x128xf32>
    %44 = math.exp %43 : vector<16x128xf32>
    %cst_24 = arith.constant 1.000000e+00 : f32
    %45 = vector.broadcast %cst_24 : f32 to vector<16x128xf32>
    %46 = arith.addf %45, %44 : vector<16x128xf32>
    %cst_25 = arith.constant 1.000000e+00 : f32
    %47 = vector.broadcast %cst_25 : f32 to vector<16x128xf32>
    %48 = arith.divf %47, %46 : vector<16x128xf32>
    %cst_26 = arith.constant 0.000000e+00 : f32
    %49 = vector.broadcast %cst_26 : f32 to vector<16x128xf32>
    %50 = arith.cmpf oge, %40, %49 : vector<16x128xf32>
    %cst_27 = arith.constant 1.000000e+00 : f32
    %51 = vector.broadcast %cst_27 : f32 to vector<16x128xf32>
    %52 = arith.subf %51, %48 : vector<16x128xf32>
    %53 = arith.select %50, %48, %52 : vector<16x128xi1>, vector<16x128xf32>
    %54 = arith.truncf %53 : vector<16x128xf32> to vector<16x128xbf16>
    %c0_28 = arith.constant 0 : index
    %c0_29 = arith.constant 0 : index
    %c0_30 = arith.constant 0 : index
    %55 = vector.load %arg5[%c0_28, %c0_29, %c0_30] : memref<1x16x128xbf16, #tpu.memory_space<vmem>>, vector<1x16x128xbf16>
    %56 = vector.shape_cast %55 : vector<1x16x128xbf16> to vector<16x128xbf16>
    %57 = vector.shape_cast %54 : vector<16x128xbf16> to vector<1x16x128xbf16>
    tpu.vector_store %arg5[%c0_28, %c0_29, %c0_30], %57 {strides = array<i32>} : memref<1x16x128xbf16, #tpu.memory_space<vmem>>, vector<1x16x128xbf16>,
    return
  }
  func.func @transform_0(%arg0: i32, %arg1: i32) -> (i32, i32, i32) {
    %c0_i32 = arith.constant 0 : i32
    %c0_i32_0 = arith.constant 0 : i32
    %c0_i32_1 = arith.constant 0 : i32
    return %arg0, %c0_i32, %c0_i32_0 : i32, i32, i32
  }
  func.func @transform_1(%arg0: i32, %arg1: i32) -> (i32, i32, i32) {
    %c0_i32 = arith.constant 0 : i32
    %c0_i32_0 = arith.constant 0 : i32
    %c0_i32_1 = arith.constant 0 : i32
    %c0_i32_2 = arith.constant 0 : i32
    return %c0_i32, %c0_i32_0, %c0_i32_1 : i32, i32, i32
  }
  func.func @transform_2(%arg0: i32, %arg1: i32) -> (i32, i32) {
    %c0_i32 = arith.constant 0 : i32
    %c0_i32_0 = arith.constant 0 : i32
    %c0_i32_1 = arith.constant 0 : i32
    return %c0_i32, %c0_i32_0 : i32, i32
  }
  func.func @transform_3(%arg0: i32, %arg1: i32) -> (i32, i32, i32) {
    %c0_i32 = arith.constant 0 : i32
    %c0_i32_0 = arith.constant 0 : i32
    return %arg0, %arg1, %c0_i32 : i32, i32, i32
  }
}

</mosaic_0001>

<bundles_post_ra>
// kernel: discriminator_forward.5
= control target key start
LH: loop header
LB: loop body
LE: loop exit
PB: predicated region body
PF: predicated region fallthrough
CT: control target
= control target key end

     0   :  { %s1834_s0 = inlined_call_operand.hbm [shape: bf16[2,504,48], index: 0, kind: input, shape index: {}]   ;;  %s1835_s1 = inlined_call_operand.hbm [shape: bf16[2,48,128], index: 1, kind: input, shape index: {}]   ;;  %s1836_s2 = inlined_call_operand.hbm [shape: f32[1,128], index: 2, kind: input, shape index: {}]   ;;  %s1837_s3 = inlined_call_operand.hbm [shape: bf16[2,480,128], index: 3, kind: output, shape index: {}]  }
   0x1   :  { %1849 = sst [smem:[#allocation16_spill]] %s1835_s1 }
   0x2   :  { %1850 = sst [smem:[#allocation17_spill]] %s1836_s2 }
   0x3   :  { %8 = vsyncpa [#allocation3], 0 }
   0x4   :  { %10 = vsyncpa [#allocation3 + $0x1], 0 }
   0x5   :  { %11 = vsyncpa [#allocation6], 0 }
   0x6   :  { %12 = vsyncpa [#allocation4], 0 }
   0x7   :  { %14 = vsyncpa [#allocation4 + $0x1], 0  ;;  %s1461_s12 = smov 0   ;;  %s1463_s13 = smov 0  }
   0x8   :  { %s1465_s14 = smov 0   ;;  %s1467_s15 = smov 0  }
   0x9   :  { %s1469_s16 = smov 0   ;;  %s1471_s17 = smov 0  }
   0xa   :  { %s1473_s18 = smov 0   ;;  %s1475_s19 = smov 0  }
   0xb   :  { %s1477_s20 = smov 0   ;;  %s1479_s21 = smov 0  }
   0xc   :  { %s1481_s22 = smov 0  }
   0xd LB: > { %1851 = sst [smem:[#allocation12_spill]] %s1391_s12  ;;  %s862_s23 = sadd.s32 4294967295, %s1431_s22   ;;  %s1431_s22 = sphi %s1481_s22, %s20_s22   ;;  %s1427_s21 = sphi %s1479_s21, %s1885_s21   ;;  %s1423_s20 = sphi %s1477_s20, %s1876_s20   ;;  %s1419_s19 = sphi %s1475_s19, %s1884_s19   ;;  %s1415_s18 = sphi %s1473_s18, %s1875_s18   ;;  %s1411_s17 = sphi %s1471_s17, %s1883_s17   ;;  %s1407_s16 = sphi %s1469_s16, %s1882_s16   ;;  %s1403_s15 = sphi %s1467_s15, %s1881_s15   ;;  %s1399_s14 = sphi %s1465_s14, %s1880_s14   ;;  %s1395_s13 = sphi %s1463_s13, %s1879_s13   ;;  %s1391_s12 = sphi %s1461_s12, %s1878_s12  }
   0xe   : > { %1852 = sst [smem:[#allocation13_spill]] %s1423_s20  ;;  %s863_s24 = sadd.s32 4294967294, %s1431_s22  }
   0xf   : > { %p52_p0 = scmp.ne.s32.totalorder %s1407_s16, %s1403_s15  ;;  %p1517_p1 = scmp.eq.s32.totalorder %s862_s23, 0 }
  0x10   : > { %p119_p2 = scmp.ne.s32.totalorder %s1399_s14, %s1395_s13  ;;  %p120_p4 = scmp.eq.s32.totalorder %s862_s23, 7 }
  0x11   : > { %s1853_s25 = scalar_select %p1517_p1, 1, 0 }
  0x12   : > { %p1526_p3 = por %p1517_p1, %p52_p0  ;;  %p125_p5 = scmp.ne.s32.totalorder %s1395_s13, %s1391_s12 }
  0x13   : > { %p126_p6 = scmp.eq.s32.totalorder %s863_s24, 7  ;;  %p1532_p7 = por %p120_p4, %p119_p2 }
  0x14   : > { %s1854_s27 = scalar_select %p1526_p3, 1, 0 }
  0x15   : > { %s1855_s28 = scalar_select %p1532_p7, 1, 0 }
  0x16   : > { %p864_p8 = scmp.ge.s32.totalorder %s1431_s22, 1  ;;  %p1537_p9 = por %p126_p6, %p125_p5 }
  0x17   : > { %p133_p10 = scmp.lt.s32.totalorder %s1431_s22, 9  ;;  %s1433_s4 = smov [#allocation5]  }
  0x18   : > { %s1856_s29 = scalar_select %p1537_p9, 1, 0 }
  0x19   : > { %p1542_p11 = pnand %p864_p8, %p133_p10  ;;  %s145_s5 = sshll.u32 %s1433_s4, 4  ;;  %s146_s5 = int_to_ptr.vmem [resolvable:$true] %s145_s5 }
  0x1a   : > { %1857 = sst [smem:[#allocation14_spill]] %s1856_s29  ;;  %s1434_s7 = smov [#allocation7]  }
  0x1b   : > { %s1858_s30 = scalar_select %p1542_p11, 1, 0 }
  0x1c   : > { %p1082_p12 = pneg %p1542_p11  ;;  %s159_s8 = sshll.u32 %s1434_s7, 4  ;;  %s1554_s8 = int_to_ptr.vmem [resolvable:$true] %s159_s8 }
  0x1d   : > { %s1860_s1 = sld [smem:[#allocation16_spill]] }
  0x1e   : > { %p1550_p13 = pnand %p1082_p12, %p1517_p1 }
  0x20   : > { %p1221_p2 = pneg %p1550_p13 }
  0x23   : > { %s1219_s11 = scalar_lea.hbm %s1860_s1, 768 }
  0x24   : > { %p1220_p0 = scmp.ne.s32.totalorder %s1860_s1, %s1219_s11  ;;  %p1226_p6 = scmp.lt.u32.totalorder %s1219_s11, %s1860_s1 }
  0x26   : > { %p1222_p4 = pnand %p1221_p2, %p1220_p0 }
  0x28   : > { %p1223_p5 = pneg %p1222_p4 }
  0x2a   : > { %p1228_p8 = pnand %p1226_p6, %p1223_p5 }
  0x2c   : > { %1231 = shalt.err (!%p1228_p8)
}
  0x2d   : > { %s1232_s7 = scalar_lea.vmem %s146_s5, 768  ;;  %p1240_p7 = scmp.lt.s32.totalorder %s146_s5, %s146_s5 }
  0x2e   : > { %p1233_p10 = scmp.ne.s32.totalorder %s146_s5, %s1232_s7  ;;  %p1241_p1 = scmp.lt.s32.totalorder %s1232_s7, %s1232_s7 }
  0x30   : > { %p1235_p12 = pnand %p1233_p10, %p1221_p2  ;;  %p1242_p3 = por %p1241_p1, %p1240_p7 }
  0x32   : > { %p1236_p9 = pneg %p1235_p12 }
  0x34   : > { %p1243_p11 = pnand %p1242_p3, %p1236_p9 }
  0x36   : > { %1246 = shalt.err (!%p1243_p11)
}
  0x37   : > { %s1845_s9 = smov 64   ;;  %s1846_s10 = smov 4  }
  0x38   : > { %1085 = dma.hbm_to_vmem [thread:$0]  (!%p1550_p13), %s1860_s1, 768, %s146_s5, [#allocation6], %s1845_s9, %s1845_s9, %s1846_s10  }
  0x39   : > { %s1861_s2 = sld [smem:[#allocation17_spill]] }
  0x3f   : > { %s1247_s4 = scalar_lea.hbm %s1861_s2, 16 }
  0x40   : > { %p1248_p1 = scmp.ne.s32.totalorder %s1861_s2, %s1247_s4  ;;  %p1254_p9 = scmp.lt.u32.totalorder %s1247_s4, %s1861_s2 }
  0x42   : > { %p1250_p3 = pnand %p1248_p1, %p1221_p2 }
  0x44   : > { %p1251_p7 = pneg %p1250_p3 }
  0x46   : > { %p1256_p11 = pnand %p1254_p9, %p1251_p7 }
  0x48   : > { %1259 = shalt.err (!%p1256_p11)
}
  0x49   : > { %s1260_s5 = scalar_lea.vmem %s1554_s8, 16  ;;  %s1267_s26 = scalar_lea.vmem %s1554_s8, 32 }
  0x4a   : > { %p1261_p0 = scmp.ne.s32.totalorder %s1554_s8, %s1260_s5  ;;  %p1268_p6 = scmp.lt.s32.totalorder %s1554_s8, %s1554_s8 }
  0x4b   : > { %p1269_p8 = scmp.lt.s32.totalorder %s1267_s26, %s1260_s5 }
  0x4c   : > { %p1263_p4 = pnand %p1261_p0, %p1221_p2 }
  0x4d   : > { %p1270_p10 = por %p1269_p8, %p1268_p6 }
  0x4e   : > { %p1264_p5 = pneg %p1263_p4 }
  0x50   : > { %p1271_p12 = pnand %p1270_p10, %p1264_p5 }
  0x52   : > { %1274 = shalt.err (!%p1271_p12)
}
  0x53   : > { %1088 = dma.hbm_to_vmem [thread:$0]  (!%p1550_p13), %s1861_s2, 16, %s1554_s8, [#allocation6]  }
  0x54   : > { %s29_s11 = sadd.s32 1, %s1423_s20  ;;  %s32_s15 = sadd.s32 1, %s1427_s21 }
  0x55   : > { %p30_p2 = scmp.ge.s32.totalorder %s29_s11, 4  ;;  %s39_s6 = sadd.s32 1, %s1411_s17 }
  0x56   : > { %p46_p1 = scmp.ne.s32.totalorder %s1411_s17, %s1407_s16  ;;  %p47_p3 = scmp.eq.s32.totalorder %s1431_s22, 0 }
  0x57   : > { %s1887_s11 = smov (%p30_p2, %s29_s11), 0  ;;  %s1889_s15 = smov (!%p30_p2, %s32_s15), %s1427_s21 }
  0x58   : > { %1862 = sst [smem:[#allocation15_spill]] %s1887_s11  ;;  %p1616_p7 = por %p47_p3, %p46_p1 }
  0x59   : > { %s105_s24 = ssub.s32 %s1423_s20, %s1887_s11  ;;  %p34_p13 = scmp.ge.s32.totalorder %s1889_s15, 2 }
  0x5a   : > { %p1099_p9 = scmp.lt.s32.totalorder %s1431_s22, 8  ;;  %s170_s8 = sand.u32 1, %s1411_s17  }
  0x5b   : > { %s1066_s4 = smul.u32 4032, %s1427_s21  ;;  %s1891_s15 = smov (%p34_p13, %s1889_s15), 0 }
  0x5c   : > { %s1065_s7 = smul.u32 252, %s170_s8  ;;  %s36_s5 = ssub.s32 %s1427_s21, %s1891_s15 }
  0x5d   : > { %s1632_s29 = scalar_lea.hbm %s1834_s0, %s1066_s4  ;;  %p37_p11 = scmp.eq.s32.totalorder %s36_s5, 0 }
  0x5e   : > { %s106_s9 = sor.u32 %s105_s24, %s36_s5  ;;  %s1864_s1 = sadd.s32 1, %s1399_s14 }
  0x5f   : > { %p107_p0 = scmp.eq.s32.totalorder %s106_s9, 0  ;;  %s174_s11 = scalar_lea.vmem [#allocation2], %s1065_s7 }
  0x60   : > { %s1635_s10 = scalar_select %p37_p11, %s1411_s17, %s39_s6  }
  0x61   : > { %s1640_s2 = scalar_select %p107_p0, %s1399_s14, %s1864_s1  }
  0x62   : > { %s181_s20 = sshll.u32 %s174_s11, 4  ;;  %p1646_p4 = pnand %p1099_p9, %p1616_p7  ;;  %s1650_s20 = int_to_ptr.vmem [resolvable:$true] %s181_s20 }
  0x63   : > { %s1652_s24 = scalar_lea.sflag [#allocation3], %s170_s8  ;;  %s1275_s9 = scalar_lea.hbm %s1632_s29, 4032 }
  0x64   : > { %p1276_p5 = scmp.ne.s32.totalorder %s1632_s29, %s1275_s9  ;;  %p1277_p6 = pneg %p1646_p4 }
  0x65   : > { %s1280_s6 = scalar_lea.hbm %s1834_s0, 8064  ;;  %p1281_p12 = scmp.lt.u32.totalorder %s1632_s29, %s1834_s0 }
  0x66   : > { %p1278_p8 = pnand %p1277_p6, %p1276_p5  ;;  %p1282_p2 = scmp.lt.u32.totalorder %s1280_s6, %s1275_s9 }
  0x67   : > { %p1284_p3 = scmp.lt.u32.totalorder %s1275_s9, %s1632_s29 }
  0x68   : > { %p1279_p10 = pneg %p1278_p8  ;;  %p1283_p1 = por %p1282_p2, %p1281_p12 }
  0x6a   : > { %p1285_p7 = por %p1284_p3, %p1283_p1 }
  0x6c   : > { %p1286_p13 = pnand %p1285_p7, %p1279_p10 }
  0x6e   : > { %1289 = shalt.err (!%p1286_p13)
}
  0x6f   : > { %s1290_s8 = scalar_lea.vmem %s1650_s20, 4032  ;;  %s1437_s7 = smov [#allocation2]  }
  0x70   : > { %p1291_p9 = scmp.ne.s32.totalorder %s1650_s20, %s1290_s8  ;;  %s1295_s5 = sshll.u32 %s1437_s7, 4  ;;  %s1296_s5 = int_to_ptr.vmem [resolvable:$false] %s1295_s5 }
  0x71   : > { %s1297_s12 = scalar_lea.vmem %s1296_s5, 8064  ;;  %p1298_p5 = scmp.lt.s32.totalorder %s1650_s20, %s1296_s5 }
  0x72   : > { %p1293_p11 = pnand %p1291_p9, %p1277_p6  ;;  %p1299_p8 = scmp.lt.s32.totalorder %s1297_s12, %s1290_s8 }
  0x74   : > { %p1294_p0 = pneg %p1293_p11  ;;  %p1300_p12 = por %p1299_p8, %p1298_p5 }
  0x76   : > { %p1301_p2 = pnand %p1300_p12, %p1294_p0 }
  0x78   : > { %1304 = shalt.err (!%p1301_p2)
}
  0x79   : > { %s1866_s9 = smov 4   ;;  %s1867_s1 = smov 64  }
  0x7a   : > { %1092 = dma.hbm_to_vmem [thread:$0]  (!%p1646_p4), %s1632_s29, 4032, %s1650_s20, %s1652_s24, %s1867_s1, %s1867_s1, %s1866_s9  }
  0x7b   : > { %p1868_p6 = scmp.ne.s32.totalorder %s1858_s30, 0 }
  0x7c   : > { %s195_s11 = sand.u32 (!%p1868_p6), 1, %s1407_s16   ;;  %p1869_p10 = scmp.ne.s32.totalorder (!%p1868_p6), %s1854_s27, 0 }
  0x7d   : > { %193 = sbr.rel (%p1868_p6) target bundleno = 409 (0x199), region = 32  ;;  %s196_s23 = scalar_lea.sflag (!%p1868_p6), [#allocation3], %s195_s11 }
  0x7e   : > { %s1067_s6 = smul.u32 (!%p1868_p6), 252, %s195_s11 }
  0x80   : > { %s199_s4 = scalar_lea.vmem (!%p1868_p6), [#allocation2], %s1067_s6 }
  0x84   : > { %1378 = dma.done.wait (%p1869_p10), %s196_s23, 4032  }
  0x85   : > { %1380 = vsyncadd (%p1869_p10), %s196_s23, 4294963264  ;;  %p1870_p1 = scmp.ne.s32.totalorder %s1853_s25, 0 }
  0x87   : > { %1382 = dma.done.wait (%p1870_p1), [#allocation6], 784  }
  0x88   : > { %1384 = vsyncadd (%p1870_p1), [#allocation6], 4294966512  ;;  %s232_s20 = smul.u32 120, %s1415_s18  ;;  %v1197_v0 = vld [vmem:[#allocation5 + $0x18] sm:$0xff]   ;;  %v1198_v1 = vld [vmem:[#allocation5] sm:$0xff]   ;;  %vm341_vm0 = vcmask 392192  }
  0x89   : > { %1009 = vmatprep.subr.bf16.mxu1 %v1197_v0  ;;  %v1199_v2 = vld [vmem:[#allocation5 + $0x20] sm:$0xff]   ;;  %1031 = vmatprep.subr.bf16.mxu0 %v1198_v1  ;;  %v1200_v3 = vld [vmem:[#allocation5 + $0x8] sm:$0xff]   ;;  %v1202_v5 = vld [vmem:[#allocation5 + $0x10] sm:$0xff]   ;;  %s227_s7 = sand.u32 1, %s1395_s13   ;;  %s744_s9 = smul.u32 15, %s1415_s18 }
  0x8a   : > { %s258_s30 = sadd.s32 24, %s232_s20  ;;  %s233_s26 = sshra.s32 %s232_s20, 3  ;;  %1010 = vmatpush3.bf16.msra.mxu1 %v1197_v0  ;;  %1032 = vmatpush3.bf16.msra.mxu0 %v1198_v1  ;;  %v1201_v4 = vld [vmem:[#allocation5 + $0x28] sm:$0xff]   ;;  %v1732_v28 = vld [vmem:[#allocation7] ss:$0 sm:$0xff] }
  0x8b   : > { %s259_s29 = sshra.s32 %s258_s30, 3  ;;  %s872_s8 = sshll.u32 %s233_s26, 2  ;;  %1011 = vmatprep.subr.bf16.mxu1 %v1199_v2  ;;  %1033 = vmatprep.subr.bf16.mxu0 %v1200_v3 }
  0x8c   : > { %s873_s24 = sshll.u32 %s259_s29, 2  ;;  %s1697_s25 = scalar_lea.vmem %s199_s4, %s872_s8 [#allocation2] }
  0x8d   : > { %s1695_s27 = scalar_lea.vmem %s199_s4, %s873_s24 [#allocation2]  ;;  %v1204_v7 = vld [vmem:[%s1697_s25] sm:$0xff]   ;;  %v1206_v9 = vld [vmem:[%s1697_s25 + $0x8] sm:$0xff]   ;;  %v1208_v11 = vld [vmem:[%s1697_s25 + $0x10] sm:$0xff]   ;;  %s1068_s5 = smul.u32 60, %s227_s7 }
  0x8e   : > { %v1203_v6 = vld [vmem:[%s1695_s27] sm:$0xff]   ;;  %1012 = vmatpush3.bf16.msra.mxu1 %v1199_v2  ;;  %1034 = vmatpush3.bf16.msra.mxu0 %v1200_v3  ;;  %v1205_v8 = vld [vmem:[%s1695_s27 + $0x8] sm:$0xff]   ;;  %v1207_v10 = vld [vmem:[%s1695_s27 + $0x10] sm:$0xff]   ;;  %s1069_s1 = smul.u32 60, %s1419_s19  ;;  %s1773_s20 = scalar_lea.sflag [#allocation4], %s227_s7 }
  0x8f   : > { %1013 = vmatprep.subr.bf16.mxu1 %v1201_v4  ;;  %1035 = vmatprep.subr.bf16.mxu0 %v1202_v5  ;;  %v1209_v12 = vld [vmem:[%s1695_s27 + $0x18] sm:$0xff]   ;;  %v1211_v14 = vld [vmem:[%s1695_s27 + $0x20] sm:$0xff]   ;;  %v1213_v16 = vld [vmem:[%s1695_s27 + $0x28] sm:$0xff]   ;;  %s1740_s12 = scalar_lea.vmem [#allocation8], %s1068_s5  ;;  %p1871_p3 = scmp.ne.s32.totalorder %s1855_s28, 0 }
  0x90   : > { %1015 = vmatprep.mubr.msk.bf16.mxu1 %vm341_vm0, %v1203_v6  ;;  %1037 = vmatprep.mubr.msk.bf16.mxu0 %vm341_vm0, %v1204_v7  ;;  %v1210_v13 = vld [vmem:[%s1697_s25 + $0x18] sm:$0xff]   ;;  %v1212_v15 = vld [vmem:[%s1697_s25 + $0x20] sm:$0xff]   ;;  %v1214_v17 = vld [vmem:[%s1697_s25 + $0x28] sm:$0xff]   ;;  %s749_s18 = sadd.s32 %s1069_s1, %s744_s9  ;;  %s752_s11 = sshll.u32 %s1740_s12, 4  ;;  %s1768_s11 = int_to_ptr.vmem [resolvable:$true] %s752_s11 }
  0x91   : > { %v1215_v18 = vld [vmem:[%s1695_s27 + $0x30] sm:$0xff]   ;;  %v1217_v20 = vld [vmem:[%s1695_s27 + $0x38] ss:$0 sps:$4 sm:$0xff]   ;;  %s928_s19 = sshll.u32 %s749_s18, 6  ;;  %s1305_s30 = scalar_lea.vmem %s1768_s11, 960 }
  0x92   : > { %1014 = vmatpush3.bf16.msra.mxu1 %v1201_v4  ;;  %1036 = vmatpush3.bf16.msra.mxu0 %v1202_v5  ;;  %v1216_v19 = vld [vmem:[%s1697_s25 + $0x30] sm:$0xff]   ;;  %v1218_v21 = vld [vmem:[%s1697_s25 + $0x38] ss:$0 sps:$4 sm:$0xff]   ;;  %s1766_s4 = scalar_lea.hbm %s1837_s3, %s928_s19  ;;  %p1306_p4 = scmp.ne.s32.totalorder %s1768_s11, %s1305_s30 }
  0x93   : > { %s1438_s29 = smov [#allocation8]  }
  0x94   : > { %p1307_p7 = pnand %p1306_p4, %p1871_p3  ;;  %s1309_s26 = sshll.u32 %s1438_s29, 4  ;;  %s1310_s26 = int_to_ptr.vmem [resolvable:$false] %s1309_s26 }
  0x95   : > { %1016 = vmatmul.mubr.msk.bf16.vlgmr.msra.gmra.mrb[0].mxu1 %vm341_vm0, %v1205_v8  ;;  %1038 = vmatmul.mubr.msk.bf16.vlgmr.msra.gmra.mrb[0].mxu0 %vm341_vm0, %v1206_v9  ;;  %s1311_s24 = scalar_lea.vmem %s1310_s26, 1920  ;;  %p1312_p9 = scmp.lt.s32.totalorder %s1768_s11, %s1310_s26 }
  0x96   : > { %1019 = vmatprep.mubr.msk.bf16.mxu1 %vm341_vm0, %v1207_v10  ;;  %1041 = vmatprep.mubr.msk.bf16.mxu0 %vm341_vm0, %v1208_v11  ;;  %p1308_p13 = pneg %p1307_p7  ;;  %p1313_p11 = scmp.lt.s32.totalorder %s1311_s24, %s1305_s30 }
  0x98   : > { %p1314_p0 = por %p1313_p11, %p1312_p9 }
  0x9a   : > { %p1315_p5 = pnand %p1314_p0, %p1308_p13 }
  0x9d   : > { %1020 = vmatmul.mubr.msk.bf16.gmra.mrb[4].mxu1 %vm341_vm0, %v1209_v12  ;;  %1042 = vmatmul.mubr.msk.bf16.gmra.mrb[4].mxu0 %vm341_vm0, %v1210_v13 }
  0x9e   : > { %1023 = vmatprep.mubr.msk.bf16.mxu1 %vm341_vm0, %v1211_v14  ;;  %1045 = vmatprep.mubr.msk.bf16.mxu0 %vm341_vm0, %v1212_v15 }
  0xa5   : > { %1024 = vmatmul.mubr.msk.bf16.gmra.mrb[8].mxu1 %vm341_vm0, %v1213_v16  ;;  %1046 = vmatmul.mubr.msk.bf16.gmra.mrb[8].mxu0 %vm341_vm0, %v1214_v17 }
  0xa6   : > { %1027 = vmatprep.mubr.msk.bf16.mxu1 %vm341_vm0, %v1215_v18  ;;  %1049 = vmatprep.mubr.msk.bf16.mxu0 %vm341_vm0, %v1216_v19 }
  0xad   : > { %1028 = vmatmul.mubr.msk.bf16.gmra.mrb[12].mxu1 %vm341_vm0, %v1217_v20  ;;  %1050 = vmatmul.mubr.msk.bf16.gmra.mrb[12].mxu0 %vm341_vm0, %v1218_v21 }
 0x168   : > { %v1017_v22 = vpop.f32.mrb[0].mxu1  ;;  %v1039_v23 = vpop.f32.mrb[0].mxu0 }
 0x169   : > { %v400_v24 = vpop.f32.mrb[1].mxu1  ;;  %v585_v25 = vadd.f32 %v1039_v23, %v1017_v22  ;;  %v576_v26 = vpop.f32.mrb[1].mxu0 }
 0x16a   : > { %v1018_v27 = vpop.f32.mrb[2].mxu1  ;;  %v577_v29 = vadd.f32 %v576_v26, %v400_v24  ;;  %v1040_v30 = vpop.f32.mrb[2].mxu0 }
 0x16b   : > { %v403_v31 = vpop.f32.mrb[3].mxu1  ;;  %v588_v32 = vadd.f32 %v1040_v30, %v1018_v27  ;;  %v579_v33 = vpop.f32.mrb[3].mxu0  ;;  %v647_v35 = vadd.f32 %v1732_v28, %v585_v25 }
 0x16c   : > { %v580_v34 = vadd.f32 %v579_v33, %v403_v31  ;;  %v645_v37 = vadd.f32 %v1732_v28, %v577_v29 }
 0x16d   : > { %v648_v36 = vadd.f32 %v1732_v28, %v588_v32 }
 0x16e   : > { %v646_v38 = vadd.f32 %v1732_v28, %v580_v34 }
 0x16f   : > { %v954_v39 = vpack.c.bf16 %v648_v36, %v647_v35 }
 0x170   : > { %v1021_v40 = vpop.f32.mrb[4].mxu1  ;;  %v949_v41 = vpack.c.bf16 %v646_v38, %v645_v37  ;;  %v1043_v42 = vpop.f32.mrb[4].mxu0 }
 0x171   : > { %v416_v43 = vpop.f32.mrb[5].mxu1  ;;  %981 = vst [vmem:[%s1740_s12 + $0x8] sm:$0xff] %v954_v39   ;;  %v601_v44 = vadd.f32 %v1043_v42, %v1021_v40  ;;  %v592_v45 = vpop.f32.mrb[5].mxu0 }
 0x172   : > { %v1022_v46 = vpop.f32.mrb[6].mxu1  ;;  %950 = vst [vmem:[%s1740_s12] sm:$0xff] %v949_v41   ;;  %v593_v47 = vadd.f32 %v592_v45, %v416_v43  ;;  %v1044_v48 = vpop.f32.mrb[6].mxu0 }
 0x173   : > { %v419_v49 = vpop.f32.mrb[7].mxu1  ;;  %v604_v50 = vadd.f32 %v1044_v48, %v1022_v46  ;;  %v595_v51 = vpop.f32.mrb[7].mxu0  ;;  %v651_v53 = vadd.f32 %v1732_v28, %v601_v44 }
 0x174   : > { %v596_v52 = vadd.f32 %v595_v51, %v419_v49  ;;  %v649_v55 = vadd.f32 %v1732_v28, %v593_v47 }
 0x175   : > { %v652_v54 = vadd.f32 %v1732_v28, %v604_v50 }
 0x176   : > { %v650_v56 = vadd.f32 %v1732_v28, %v596_v52 }
 0x177   : > { %v964_v57 = vpack.c.bf16 %v652_v54, %v651_v53 }
 0x178   : > { %v1025_v58 = vpop.f32.mrb[8].mxu1  ;;  %v959_v59 = vpack.c.bf16 %v650_v56, %v649_v55  ;;  %v1047_v60 = vpop.f32.mrb[8].mxu0 }
 0x179   : > { %v432_v61 = vpop.f32.mrb[9].mxu1  ;;  %983 = vst [vmem:[%s1740_s12 + $0x18] sm:$0xff] %v964_v57   ;;  %v617_v62 = vadd.f32 %v1047_v60, %v1025_v58  ;;  %v608_v63 = vpop.f32.mrb[9].mxu0 }
 0x17a   : > { %v1026_v0 = vpop.f32.mrb[10].mxu1  ;;  %982 = vst [vmem:[%s1740_s12 + $0x10] sm:$0xff] %v959_v59   ;;  %v609_v1 = vadd.f32 %v608_v63, %v432_v61  ;;  %v1048_v2 = vpop.f32.mrb[10].mxu0 }
 0x17b   : > { %v435_v3 = vpop.f32.mrb[11].mxu1  ;;  %v620_v4 = vadd.f32 %v1048_v2, %v1026_v0  ;;  %v611_v5 = vpop.f32.mrb[11].mxu0  ;;  %v655_v7 = vadd.f32 %v1732_v28, %v617_v62 }
 0x17c   : > { %v612_v6 = vadd.f32 %v611_v5, %v435_v3  ;;  %v653_v9 = vadd.f32 %v1732_v28, %v609_v1 }
 0x17d   : > { %v656_v8 = vadd.f32 %v1732_v28, %v620_v4 }
 0x17e   : > { %v654_v10 = vadd.f32 %v1732_v28, %v612_v6 }
 0x17f   : > { %v974_v11 = vpack.c.bf16 %v656_v8, %v655_v7 }
 0x180   : > { %v1029_v12 = vpop.f32.mrb[12].mxu1  ;;  %v969_v13 = vpack.c.bf16 %v654_v10, %v653_v9  ;;  %v1051_v14 = vpop.f32.mrb[12].mxu0 }
 0x181   : > { %v448_v15 = vpop.f32.mrb[13].mxu1  ;;  %985 = vst [vmem:[%s1740_s12 + $0x28] sm:$0xff] %v974_v11   ;;  %v633_v16 = vadd.f32 %v1051_v14, %v1029_v12  ;;  %v624_v17 = vpop.f32.mrb[13].mxu0 }
 0x182   : > { %v1030_v18 = vpop.f32.mrb[14].mxu1  ;;  %984 = vst [vmem:[%s1740_s12 + $0x20] sm:$0xff] %v969_v13   ;;  %v625_v19 = vadd.f32 %v624_v17, %v448_v15  ;;  %v1052_v20 = vpop.f32.mrb[14].mxu0 }
 0x183   : > { %v451_v21 = vpop.f32.mrb[15].mxu1  ;;  %v659_v22 = vadd.f32 %v1732_v28, %v633_v16  ;;  %v627_v23 = vpop.f32.mrb[15].mxu0 }
 0x184   : > { %v628_v24 = vadd.f32 %v627_v23, %v451_v21  ;;  %v657_v26 = vadd.f32 %v1732_v28, %v625_v19 }
 0x185   : > { %v945_v25 = vpack.c.bf16 %v659_v22, %v659_v22 }
 0x186   : > { %v658_v27 = vadd.f32 %v1732_v28, %v628_v24 }
 0x187   : > { %735 = vst [vmem:[%s1740_s12 + $0x38] sm:$0xf] %v945_v25 }
 0x188   : > { %v979_v29 = vpack.c.bf16 %v658_v27, %v657_v26 }
 0x18a   : > { %986 = vst [vmem:[%s1740_s12 + $0x30] sm:$0xff] %v979_v29  }
 0x18b   : > { %1318 = shalt.err (!%p1315_p5)
}
 0x18c   : > { %s1319_s8 = scalar_lea.hbm %s1766_s4, 960  ;;  %s1323_s7 = scalar_lea.hbm %s1837_s3, 7680 }
 0x18d   : > { %p1320_p8 = scmp.ne.s32.totalorder %s1766_s4, %s1319_s8  ;;  %p1324_p6 = scmp.lt.u32.totalorder %s1766_s4, %s1837_s3 }
 0x18e   : > { %p1325_p10 = scmp.lt.u32.totalorder %s1323_s7, %s1319_s8  ;;  %p1327_p4 = scmp.lt.u32.totalorder %s1319_s8, %s1766_s4 }
 0x18f   : > { %p1321_p12 = pnand %p1320_p8, %p1871_p3 }
 0x190   : > { %p1326_p1 = por %p1325_p10, %p1324_p6 }
 0x191   : > { %p1322_p2 = pneg %p1321_p12 }
 0x192   : > { %p1328_p7 = por %p1327_p4, %p1326_p1 }
 0x194   : > { %p1329_p13 = pnand %p1328_p7, %p1322_p2 }
 0x196   : > { %1332 = shalt.err (!%p1329_p13)
}
 0x197   : > { %s1439_s9 = smov 64   ;;  %s1440_s1 = smov 4  }
 0x198   : > { %1080 = dma.vmem_to_hbm [thread:$0]  (%p1871_p3), %s1768_s11, 960, %s1766_s4, %s1773_s20, %s1439_s9, %s1439_s9, %s1440_s1  }
 0x199 PF: > { %s1872_s18 = sld [smem:[#allocation12_spill]]  ;;  %s1873_s19 = sld [smem:[#allocation14_spill]] }
 0x19a   : > { %p1102_p9 = scmp.ge.s32.totalorder %s1431_s22, 2 }
 0x19f   : > { %s767_s6 = sand.u32 1, %s1872_s18   ;;  %p1874_p11 = scmp.ne.s32.totalorder %s1873_s19, 0 }
 0x1a0   : > { %s768_s23 = scalar_lea.sflag [#allocation4], %s767_s6 }
 0x1a1   : > { %p1094_p0 = pnand %p1102_p9, %p1874_p11 }
 0x1a3   : > { %1386 = dma.done.wait (!%p1094_p0), %s768_s23, 960  }
 0x1a4   : > { %1388 = vsyncadd (!%p1094_p0), %s768_s23, 4294966336  ;;  %s20_s22 = sadd.s32 1, %s1431_s22   ;;  %s1875_s18 = sld [smem:[#allocation13_spill]] }
 0x1a5   : > { %p17_p5 = scmp.ge.s32.totalorder %s20_s22, 10   ;;  %s1876_s20 = sld [smem:[#allocation15_spill]] }
 0x1a6   : > { %s1877_s28 = smov %s1891_s15  ;;  %s1878_s12 = smov %s1395_s13 }
 0x1a7   : > { %s1879_s13 = smov %s1399_s14  ;;  %s1880_s14 = smov %s1640_s2 }
 0x1a8   : > { %s1881_s15 = smov %s1407_s16  ;;  %s1882_s16 = smov %s1411_s17 }
 0x1a9   : > { %s1883_s17 = smov %s1635_s10  ;;  %s1884_s19 = smov %s1427_s21 }
 0x1aa   : > { %s1885_s21 = smov %s1877_s28  ;;  %19 = sbr.rel (!%p17_p5) target bundleno = 13 (0xd), region = 88 }
 0x1b1   :  { %773 = vsyncpa [#allocation3], 1 }
 0x1b2   :  { %775 = vsyncpa [#allocation3 + $0x1], 1 }
 0x1b3   :  { %776 = vsyncpa [#allocation6], 1 }
 0x1b4   :  { %777 = vsyncpa [#allocation4], 1 }
 0x1b5   :  { %779 = vsyncpa [#allocation4 + $0x1], 1 }

// kernel: discriminator_forward.6
= control target key start
LH: loop header
LB: loop body
LE: loop exit
PB: predicated region body
PF: predicated region fallthrough
CT: control target
= control target key end

     0   :  { %12 = vsyncpa [#allocation3], 0  ;;  %s2497_s0 = inlined_call_operand.hbm [shape: bf16[2,144,64], index: 0, kind: input, shape index: {}]   ;;  %s2498_s1 = inlined_call_operand.hbm [shape: bf16[2,64,128], index: 1, kind: input, shape index: {}]   ;;  %s2499_s2 = inlined_call_operand.hbm [shape: f32[1,128], index: 2, kind: input, shape index: {}]   ;;  %s2500_s3 = inlined_call_operand.hbm [shape: f32[128,1], index: 3, kind: input, shape index: {}]   ;;  %s2501_s4 = inlined_call_operand.hbm [shape: bf16[2,128,128], index: 4, kind: output, shape index: {0}]   ;;  %s2502_s5 = inlined_call_operand.hbm [shape: f32[2,1,1,128], index: 5, kind: output, shape index: {1}]   ;;  %s2503_s6 = inlined_call_operand.hbm [shape: f32[2,1,1,128], index: 6, kind: output, shape index: {2}]  }
   0x1   :  { %14 = vsyncpa [#allocation3 + $0x1], 0 }
   0x2   :  { %15 = vsyncpa [#allocation6], 0 }
   0x3   :  { %16 = vsyncpa [#allocation9], 0 }
   0x4   :  { %17 = vsyncpa [#allocation4], 0 }
   0x5   :  { %19 = vsyncpa [#allocation4 + $0x1], 0 }
   0x6   :  { %20 = vsyncpa [#allocation12], 0 }
   0x7   :  { %22 = vsyncpa [#allocation12 + $0x1], 0  ;;  %s2074_s21 = smov 0   ;;  %s2076_s22 = smov 0  }
   0x8   :  { %s2078_s23 = smov 0   ;;  %s2080_s24 = smov 0  }
   0x9   :  { %s2082_s25 = smov 0   ;;  %s2084_s26 = smov 0  }
   0xa LB: > { %2512 = sst [smem:[#allocation19_spill]] %s2003_s21  ;;  %s2105_s27 = sadd.s32 4294967295, %s2023_s26   ;;  %s2023_s26 = sphi %s2084_s26, %s28_s26   ;;  %s2019_s25 = sphi %s2082_s25, %s2539_s25   ;;  %s2015_s24 = sphi %s2080_s24, %s2538_s24   ;;  %s2011_s23 = sphi %s2078_s23, %s2537_s23   ;;  %s2007_s22 = sphi %s2076_s22, %s2536_s22   ;;  %s2003_s21 = sphi %s2074_s21, %s2535_s21  }
   0xb   : > { %s2505_s28 = sadd.s32 4294967294, %s2023_s26   ;;  %p60_p0 = scmp.ne.s32.totalorder %s2007_s22, %s2003_s21 }
   0xc   : > { %p2504_p1 = scmp.eq.s32.totalorder %s2105_s27, 0  ;;  %p155_p3 = scmp.eq.s32.totalorder %s2505_s28, 1 }
   0xd   : > { %p1377_p5 = scmp.ge.s32.totalorder %s2023_s26, 1  ;;  %p218_p7 = scmp.lt.s32.totalorder %s2023_s26, 3 }
   0xe   : > { %p2116_p4 = por %p2504_p1, %p60_p0  ;;  %p2121_p6 = por %p155_p3, %p60_p0 }
   0xf   : > { %p2126_p8 = pnand %p1377_p5, %p218_p7  ;;  %s2025_s8 = smov [#allocation5]  }
  0x10   : > { %s2513_s29 = scalar_select %p2116_p4, 1, 0 }
  0x11   : > { %s2514_s30 = scalar_select %p2121_p6, 1, 0 }
  0x12   : > { %s2516_s7 = scalar_select %p2126_p8, 1, 0 }
  0x13   : > { %2515 = sst [smem:[#allocation20_spill]] %s2514_s30  ;;  %s230_s9 = sshll.u32 %s2025_s8, 4  ;;  %s2130_s9 = int_to_ptr.vmem [resolvable:$true] %s230_s9 }
  0x14   : > { %p1643_p9 = pneg %p2126_p8  ;;  %s2026_s11 = smov [#allocation7]  }
  0x15   : > { %s244_s12 = sshll.u32 %s2026_s11, 4  ;;  %s2027_s13 = smov [#allocation8]   ;;  %s2141_s12 = int_to_ptr.vmem [resolvable:$true] %s244_s12 }
  0x16   : > { %p2137_p11 = pnand %p1643_p9, %p2504_p1  ;;  %s2143_s14 = sshll.u32 %s2027_s13, 4  ;;  %s255_s14 = int_to_ptr.vmem [resolvable:$true] %s2143_s14 }
  0x17   : > { %s1759_s17 = scalar_lea.hbm %s2498_s1, 1024 }
  0x18   : > { %p1760_p12 = scmp.ne.s32.totalorder %s2498_s1, %s1759_s17  ;;  %p2153_p13 = pneg %p2137_p11 }
  0x19   : > { %p1766_p5 = scmp.lt.u32.totalorder %s1759_s17, %s2498_s1 }
  0x1a   : > { %p1762_p0 = pnand %p2153_p13, %p1760_p12 }
  0x1c   : > { %p1763_p3 = pneg %p1762_p0 }
  0x1e   : > { %p1768_p7 = pnand %p1766_p5, %p1763_p3 }
  0x20   : > { %1771 = shalt.err (!%p1768_p7)
}
  0x21   : > { %s1772_s13 = scalar_lea.vmem %s2130_s9, 1024  ;;  %p1780_p2 = scmp.lt.s32.totalorder %s2130_s9, %s2130_s9 }
  0x22   : > { %p1773_p9 = scmp.ne.s32.totalorder %s2130_s9, %s1772_s13  ;;  %p1781_p6 = scmp.lt.s32.totalorder %s1772_s13, %s1772_s13 }
  0x24   : > { %p1775_p10 = pnand %p1773_p9, %p2153_p13  ;;  %p1782_p12 = por %p1781_p6, %p1780_p2 }
  0x26   : > { %p1776_p1 = pneg %p1775_p10 }
  0x28   : > { %p1783_p0 = pnand %p1782_p12, %p1776_p1 }
  0x2a   : > { %1786 = shalt.err (!%p1783_p0)
}
  0x2b   : > { %s2510_s15 = smov 64   ;;  %s2511_s16 = smov 4  }
  0x2c   : > { %1646 = dma.hbm_to_vmem [thread:$0]  (!%p2137_p11), %s2498_s1, 1024, %s2130_s9, [#allocation6], %s2510_s15, %s2510_s15, %s2511_s16  }
  0x2d   : > { %s1787_s11 = scalar_lea.hbm %s2499_s2, 16 }
  0x2e   : > { %p1788_p1 = scmp.ne.s32.totalorder %s2499_s2, %s1787_s11  ;;  %p1794_p10 = scmp.lt.u32.totalorder %s1787_s11, %s2499_s2 }
  0x30   : > { %p1790_p2 = pnand %p1788_p1, %p2153_p13 }
  0x32   : > { %p1791_p6 = pneg %p1790_p2 }
  0x34   : > { %p1796_p3 = pnand %p1794_p10, %p1791_p6 }
  0x36   : > { %1799 = shalt.err (!%p1796_p3)
}
  0x37   : > { %s1800_s9 = scalar_lea.vmem %s2141_s12, 16  ;;  %s1807_s28 = scalar_lea.vmem %s2141_s12, 32 }
  0x38   : > { %p1801_p5 = scmp.ne.s32.totalorder %s2141_s12, %s1800_s9  ;;  %p1808_p12 = scmp.lt.s32.totalorder %s2141_s12, %s2141_s12 }
  0x39   : > { %p1809_p0 = scmp.lt.s32.totalorder %s1807_s28, %s1800_s9 }
  0x3a   : > { %p1803_p7 = pnand %p1801_p5, %p2153_p13 }
  0x3b   : > { %p1810_p1 = por %p1809_p0, %p1808_p12 }
  0x3c   : > { %p1804_p9 = pneg %p1803_p7 }
  0x3e   : > { %p1811_p2 = pnand %p1810_p1, %p1804_p9 }
  0x40   : > { %1814 = shalt.err (!%p1811_p2)
}
  0x41   : > { %1649 = dma.hbm_to_vmem [thread:$0]  (!%p2137_p11), %s2499_s2, 16, %s2141_s12, [#allocation6]  }
  0x42   : > { %s1815_s19 = scalar_lea.hbm %s2500_s3, 2048 }
  0x43   : > { %p1816_p6 = scmp.ne.s32.totalorder %s2500_s3, %s1815_s19  ;;  %p1822_p5 = scmp.lt.u32.totalorder %s1815_s19, %s2500_s3 }
  0x45   : > { %p1818_p10 = pnand %p1816_p6, %p2153_p13 }
  0x47   : > { %p1819_p3 = pneg %p1818_p10 }
  0x49   : > { %p1824_p7 = pnand %p1822_p5, %p1819_p3 }
  0x4b   : > { %1827 = shalt.err (!%p1824_p7)
}
  0x4c   : > { %s1828_s28 = scalar_lea.vmem %s255_s14, 2048  ;;  %p1836_p1 = scmp.lt.s32.totalorder %s255_s14, %s255_s14 }
  0x4d   : > { %p1829_p9 = scmp.ne.s32.totalorder %s255_s14, %s1828_s28  ;;  %p1837_p2 = scmp.lt.s32.totalorder %s1828_s28, %s1828_s28 }
  0x4f   : > { %p1831_p12 = pnand %p1829_p9, %p2153_p13  ;;  %p1838_p4 = por %p1837_p2, %p1836_p1 }
  0x51   : > { %p1832_p0 = pneg %p1831_p12 }
  0x53   : > { %p1839_p8 = pnand %p1838_p4, %p1832_p0 }
  0x55   : > { %1842 = shalt.err (!%p1839_p8)
}
  0x56   : > { %s2030_s12 = smov 128   ;;  %s2031_s20 = smov 8  }
  0x57   : > { %1652 = dma.hbm_to_vmem [thread:$0]  (!%p2137_p11), %s2500_s3, 2048, %s255_s14, [#allocation9], %s2030_s12, %s2030_s12, %s2031_s20  }
  0x58   : > { %s47_s17 = sadd.s32 1, %s2011_s23  ;;  %s40_s18 = sadd.s32 1, %s2019_s25 }
  0x59   : > { %p54_p4 = scmp.ne.s32.totalorder %s2011_s23, %s2007_s22  ;;  %p42_p8 = scmp.ge.s32.totalorder %s40_s18, 2 }
  0x5a   : > { %p55_p13 = scmp.eq.s32.totalorder %s2023_s26, 0  ;;  %p2519_p6 = scmp.eq.s32.totalorder %s2105_s27, 1 }
  0x5b   : > { %p1670_p3 = scmp.lt.s32.totalorder %s2023_s26, 2  ;;  %s2541_s18 = smov (%p42_p8, %s40_s18), 0 }
  0x5c   : > { %p2227_p10 = por %p2519_p6, %p54_p4  ;;  %p56_p5 = por %p55_p13, %p54_p4 }
  0x5d   : > { %s268_s10 = sand.u32 1, %s2011_s23   ;;  %s44_s8 = ssub.s32 %s2019_s25, %s2541_s18 }
  0x5e   : > { %p45_p7 = scmp.eq.s32.totalorder %s44_s8, 0  ;;  %s1620_s14 = smul.u32 72, %s268_s10 }
  0x5f   : > { %s1621_s11 = smul.u32 1152, %s2019_s25  ;;  %p2238_p11 = pnand %p1670_p3, %p56_p5 }
  0x60   : > { %s2243_s9 = scalar_select %p45_p7, %s2011_s23, %s47_s17  }
  0x61   : > { %s2248_s20 = scalar_lea.hbm %s2497_s0, %s1621_s11  ;;  %s272_s21 = scalar_lea.vmem [#allocation2], %s1620_s14 }
  0x62   : > { %s279_s30 = sshll.u32 %s272_s21, 4  ;;  %s2252_s8 = scalar_lea.sflag [#allocation3], %s268_s10  ;;  %s2250_s30 = int_to_ptr.vmem [resolvable:$true] %s279_s30 }
  0x63   : > { %s1843_s15 = scalar_lea.hbm %s2248_s20, 1152  ;;  %p1845_p12 = pneg %p2238_p11 }
  0x64   : > { %p1844_p9 = scmp.ne.s32.totalorder %s2248_s20, %s1843_s15  ;;  %s1848_s28 = scalar_lea.hbm %s2497_s0, 2304 }
  0x65   : > { %p1849_p2 = scmp.lt.u32.totalorder %s2248_s20, %s2497_s0  ;;  %p1850_p4 = scmp.lt.u32.totalorder %s1848_s28, %s1843_s15 }
  0x66   : > { %p1846_p0 = pnand %p1845_p12, %p1844_p9  ;;  %p1852_p13 = scmp.lt.u32.totalorder %s1843_s15, %s2248_s20 }
  0x67   : > { %p1851_p8 = por %p1850_p4, %p1849_p2 }
  0x68   : > { %p1847_p1 = pneg %p1846_p0 }
  0x69   : > { %p1853_p6 = por %p1852_p13, %p1851_p8 }
  0x6b   : > { %p1854_p3 = pnand %p1853_p6, %p1847_p1 }
  0x6d   : > { %1857 = shalt.err (!%p1854_p3)
}
  0x6e   : > { %s1858_s10 = scalar_lea.vmem %s2250_s30, 1152  ;;  %s2032_s14 = smov [#allocation2]  }
  0x6f   : > { %p1859_p5 = scmp.ne.s32.totalorder %s2250_s30, %s1858_s10  ;;  %s1863_s21 = sshll.u32 %s2032_s14, 4  ;;  %s1864_s21 = int_to_ptr.vmem [resolvable:$false] %s1863_s21 }
  0x70   : > { %s1865_s16 = scalar_lea.vmem %s1864_s21, 2304  ;;  %p1866_p0 = scmp.lt.s32.totalorder %s2250_s30, %s1864_s21 }
  0x71   : > { %p1861_p7 = pnand %p1859_p5, %p1845_p12  ;;  %p1867_p2 = scmp.lt.s32.totalorder %s1865_s16, %s1858_s10 }
  0x73   : > { %p1862_p9 = pneg %p1861_p7  ;;  %p1868_p4 = por %p1867_p2, %p1866_p0 }
  0x75   : > { %p1869_p8 = pnand %p1868_p4, %p1862_p9 }
  0x77   : > { %1872 = shalt.err (!%p1869_p8)
}
  0x78   : > { %s2522_s15 = smov 4   ;;  %s2523_s17 = smov 64  }
  0x79   : > { %1656 = dma.hbm_to_vmem [thread:$0]  (!%p2238_p11), %s2248_s20, 1152, %s2250_s30, %s2252_s8, %s2523_s17, %s2523_s17, %s2522_s15  }
  0x7a   : > { %p2524_p12 = scmp.ne.s32.totalorder %s2516_s7, 0 }
  0x7b   : > { %s2286_s11 = sand.u32 (!%p2524_p12), 1, %s2007_s22   ;;  %p2525_p1 = scmp.ne.s32.totalorder (!%p2524_p12), %s2513_s29, 0 }
  0x7c   : > { %291 = sbr.rel (%p2524_p12) target bundleno = 467 (0x1d3), region = 36  ;;  %s294_s12 = scalar_lea.sflag (!%p2524_p12), [#allocation3], %s2286_s11 }
  0x7d   : > { %s1622_s28 = smul.u32 (!%p2524_p12), 72, %s2286_s11 }
  0x7f   : > { %s2290_s10 = scalar_lea.vmem (!%p2524_p12), [#allocation2], %s1622_s28 }
  0x83   : > { %1982 = dma.done.wait (%p2525_p1), %s294_s12, 1152  }
  0x84   : > { %1984 = vsyncadd (%p2525_p1), %s294_s12, 4294966144  ;;  %p2526_p11 = scmp.eq.s32.totalorder %s2105_s27, 0 }
  0x86   : > { %1986 = dma.done.wait (%p2526_p11), [#allocation6], 1040   ;;  %p2527_p13 = pmov %p2526_p11 }
  0x87   : > { %p2528_p6 = pmov %p2526_p11 }
  0x88   : > { %1988 = vsyncadd (%p2527_p13), [#allocation6], 4294966256 }
  0x89   : > { %1990 = dma.done.wait (%p2528_p6), [#allocation9], 2048   ;;  %p2529_p3 = pmov %p2528_p6 }
  0x8a   : > { %v2033_v0 = vmov 0   ;;  %v1735_v1 = vld [vmem:[#allocation5 + $0x20] sm:$0xff]   ;;  %v1737_v3 = vld [vmem:[#allocation5 + $0x28] sm:$0xff]   ;;  %v1739_v5 = vld [vmem:[#allocation5 + $0x30] sm:$0xff]   ;;  %vm471_vm0 = vcmask 523264   ;;  %s1387_s29 = sshll.u32 %s2286_s11, 6 }
  0x8b   : > { %1992 = vsyncadd (%p2529_p3), [#allocation9], 4294965248  ;;  %1733 = vset.pattern.permute.xlu0 %v2033_v0  ;;  %1734 = vset.pattern.permute.xlu1 %v2033_v0  ;;  %v1736_v2 = vld [vmem:[#allocation5] sm:$0xff]   ;;  %v1738_v4 = vld [vmem:[#allocation5 + $0x8] sm:$0xff]   ;;  %s2347_s7 = scalar_lea.vmem [#allocation10], %s1387_s29  ;;  %s1484_s13 = sshll.u32 %s2015_s24, 10 }
  0x8c   : > { %1556 = vmatprep.subr.bf16.mxu1 %v1735_v1  ;;  %1580 = vmatprep.subr.bf16.mxu0 %v1736_v2  ;;  %v1740_v6 = vld [vmem:[#allocation5 + $0x10] sm:$0xff]   ;;  %v1741_v7 = vld [vmem:[#allocation5 + $0x38] sm:$0xff]   ;;  %v1745_v11 = vld [vmem:[%s2290_s10 + $0x10] sm:$0xff]   ;;  %s1175_s20 = sshll.u32 %s2347_s7, 4  ;;  %s2374_s14 = scalar_lea.hbm %s2501_s4, %s1484_s13  ;;  %s2376_s20 = int_to_ptr.vmem [resolvable:$true] %s1175_s20 }
  0x8d   : > { %1557 = vmatpush3.bf16.msra.mxu1 %v1735_v1  ;;  %1581 = vmatpush3.bf16.msra.mxu0 %v1736_v2  ;;  %v1742_v8 = vld [vmem:[#allocation5 + $0x18] sm:$0xff]   ;;  %v1747_v13 = vld [vmem:[%s2290_s10 + $0x18] sm:$0xff]   ;;  %v1748_v14 = vld [vmem:[%s2290_s10 + $0x10] sm:$0xff]   ;;  %s1152_s21 = scalar_lea.sflag [#allocation4], %s2286_s11  ;;  %s1873_s16 = scalar_lea.vmem %s2376_s20, 1024 }
  0x8e   : > { %1558 = vmatprep.subr.bf16.mxu1 %v1737_v3  ;;  %1582 = vmatprep.subr.bf16.mxu0 %v1738_v4  ;;  %v1743_v9 = vld [vmem:[%s2290_s10 + $0x8] sm:$0xff]   ;;  %v1744_v10 = vld [vmem:[%s2290_s10] sm:$0xff]   ;;  %v1750_v16 = vld [vmem:[%s2290_s10 + $0x18] sm:$0xff]   ;;  %p1874_p5 = scmp.ne.s32.totalorder %s2376_s20, %s1873_s16  ;;  %s2034_s15 = smov [#allocation10]  }
  0x8f   : > { %1564 = vmatprep.mubr.msk.bf16.mxu1 %vm471_vm0, %v1743_v9  ;;  %1588 = vmatprep.mubr.msk.bf16.mxu0 %vm471_vm0, %v1744_v10  ;;  %v1746_v12 = vld [vmem:[%s2290_s10 + $0x8] sm:$0xff]   ;;  %v1749_v15 = vld [vmem:[%s2290_s10 + $0x20] sm:$0xff]   ;;  %v1753_v23 = vld [vmem:[%s2290_s10 + $0x30] sm:$0xff]   ;;  %s1877_s17 = sshll.u32 %s2034_s15, 4  ;;  %s1878_s17 = int_to_ptr.vmem [resolvable:$false] %s1877_s17 }
  0x90   : > { %v1751_v17 = vld [vmem:[%s2290_s10 + $0x28] sm:$0xff]   ;;  %v1752_v18 = vld [vmem:[%s2290_s10 + $0x20] sm:$0xff]   ;;  %v1755_v27 = vld [vmem:[%s2290_s10 + $0x38] sm:$0xff]   ;;  %p1875_p7 = pnand %p1874_p5, %p2227_p10  ;;  %s1879_s28 = scalar_lea.vmem %s1878_s17, 2048 }
  0x91   : > { %1559 = vmatpush3.bf16.msra.mxu1 %v1737_v3  ;;  %1583 = vmatpush3.bf16.msra.mxu0 %v1738_v4  ;;  %v851_v19 = vld [vmem:[#allocation8] sm:$0xff]  ;;  %v853_v20 = vld [vmem:[#allocation8 + $0x10] sm:$0xff]  ;;  %v852_v21 = vld [vmem:[#allocation8 + $0x8] sm:$0xff]  ;;  %p1880_p0 = scmp.lt.s32.totalorder %s2376_s20, %s1878_s17  ;;  %p1881_p2 = scmp.lt.s32.totalorder %s1879_s28, %s1873_s16 }
  0x92   : > { %1560 = vmatprep.subr.bf16.mxu1 %v1739_v5  ;;  %1584 = vmatprep.subr.bf16.mxu0 %v1740_v6  ;;  %v854_v22 = vld [vmem:[#allocation8 + $0x18] sm:$0xff]  ;;  %v855_v24 = vld [vmem:[#allocation8 + $0x20] sm:$0xff]  ;;  %v856_v25 = vld [vmem:[#allocation8 + $0x28] sm:$0xff]  ;;  %p1876_p9 = pneg %p1875_p7 }
  0x93   : > { %869 = vperm.xlu0 %1733, %v851_v19   ;;  %879 = vperm.xlu1 %1734, %v853_v20   ;;  %v1754_v26 = vld [vmem:[%s2290_s10 + $0x28] sm:$0xff]   ;;  %v1756_v28 = vld [vmem:[%s2290_s10 + $0x30] sm:$0xff]   ;;  %v1757_v31 = vld [vmem:[%s2290_s10 + $0x40] sm:$0xff]   ;;  %p1882_p4 = por %p1881_p2, %p1880_p0 }
  0x94   : > { %v857_v29 = vld [vmem:[#allocation8 + $0x30] sm:$0xff]  ;;  %v858_v30 = vld [vmem:[#allocation8 + $0x38] sm:$0xff]  ;;  %v859_v32 = vld [vmem:[#allocation8 + $0x40] sm:$0xff] }
  0x95   : > { %1561 = vmatpush3.bf16.msra.mxu1 %v1739_v5  ;;  %1585 = vmatpush3.bf16.msra.mxu0 %v1740_v6  ;;  %v860_v33 = vld [vmem:[#allocation8 + $0x48] sm:$0xff]  ;;  %v861_v35 = vld [vmem:[#allocation8 + $0x50] sm:$0xff]  ;;  %v862_v36 = vld [vmem:[#allocation8 + $0x58] sm:$0xff]  ;;  %p1883_p8 = pnand %p1882_p4, %p1876_p9 }
  0x96   : > { %1562 = vmatprep.subr.bf16.mxu1 %v1741_v7  ;;  %1586 = vmatprep.subr.bf16.mxu0 %v1742_v8  ;;  %v1758_v34 = vld [vmem:[%s2290_s10 + $0x38] sm:$0xff]   ;;  %v866_v40 = vld [vmem:[#allocation8 + $0x78] sm:$0xff] }
  0x97   : > { %874 = vperm.xlu0 %1733, %v852_v21   ;;  %884 = vperm.xlu1 %1734, %v854_v22   ;;  %v863_v37 = vld [vmem:[#allocation8 + $0x60] sm:$0xff]  ;;  %v864_v38 = vld [vmem:[#allocation8 + $0x68] sm:$0xff]  ;;  %v865_v39 = vld [vmem:[#allocation8 + $0x70] sm:$0xff] }
  0x98   : > { %v2338_v50 = vld [vmem:[#allocation7] ss:$0 sm:$0xff] }
  0x99   : > { %1563 = vmatpush3.bf16.msra.mxu1 %v1741_v7  ;;  %1587 = vmatpush3.bf16.msra.mxu0 %v1742_v8 }
  0x9b   : > { %889 = vperm.xlu0 %1733, %v855_v24   ;;  %894 = vperm.xlu1 %1734, %v856_v25  }
  0x9c   : > { %1565 = vmatmul.mubr.msk.bf16.vlgmr.msra.gmra.mrb[0].mxu1 %vm471_vm0, %v1745_v11  ;;  %1589 = vmatmul.mubr.msk.bf16.vlgmr.msra.gmra.mrb[0].mxu0 %vm471_vm0, %v1746_v12 }
  0x9d   : > { %1568 = vmatprep.mubr.msk.bf16.mxu1 %vm471_vm0, %v1747_v13  ;;  %1592 = vmatprep.mubr.msk.bf16.mxu0 %vm471_vm0, %v1748_v14 }
  0x9f   : > { %899 = vperm.xlu0 %1733, %v857_v29   ;;  %904 = vperm.xlu1 %1734, %v858_v30  }
  0xa3   : > { %909 = vperm.xlu0 %1733, %v859_v32   ;;  %914 = vperm.xlu1 %1734, %v860_v33  }
  0xa4   : > { %1569 = vmatmul.mubr.msk.bf16.gmra.mrb[4].mxu1 %vm471_vm0, %v1749_v15  ;;  %1593 = vmatmul.mubr.msk.bf16.gmra.mrb[4].mxu0 %vm471_vm0, %v1750_v16 }
  0xa5   : > { %1572 = vmatprep.mubr.msk.bf16.mxu1 %vm471_vm0, %v1751_v17  ;;  %1596 = vmatprep.mubr.msk.bf16.mxu0 %vm471_vm0, %v1752_v18 }
  0xa7   : > { %919 = vperm.xlu0 %1733, %v861_v35   ;;  %924 = vperm.xlu1 %1734, %v862_v36  }
  0xab   : > { %929 = vperm.xlu0 %1733, %v863_v37   ;;  %934 = vperm.xlu1 %1734, %v864_v38  }
  0xac   : > { %1573 = vmatmul.mubr.msk.bf16.gmra.mrb[8].mxu1 %vm471_vm0, %v1753_v23  ;;  %1597 = vmatmul.mubr.msk.bf16.gmra.mrb[8].mxu0 %vm471_vm0, %v1754_v26 }
  0xad   : > { %1576 = vmatprep.mubr.msk.bf16.mxu1 %vm471_vm0, %v1755_v27  ;;  %1600 = vmatprep.mubr.msk.bf16.mxu0 %vm471_vm0, %v1756_v28 }
  0xaf   : > { %939 = vperm.xlu0 %1733, %v865_v39   ;;  %944 = vperm.xlu1 %1734, %v866_v40  }
  0xb4   : > { %1577 = vmatmul.mubr.msk.bf16.gmra.mrb[12].mxu1 %vm471_vm0, %v1757_v31  ;;  %1601 = vmatmul.mubr.msk.bf16.gmra.mrb[12].mxu0 %vm471_vm0, %v1758_v34 }
 0x112   : > { %v870_v41 = vpop.permute.xlu0 %869  ;;  %v880_v42 = vpop.permute.xlu1 %879 }
 0x116   : > { %v875_v43 = vpop.permute.xlu0 %874  ;;  %v885_v44 = vpop.permute.xlu1 %884 }
 0x11a   : > { %v890_v45 = vpop.permute.xlu0 %889  ;;  %v2336_v46 = vpop.permute.xlu1 %894 }
 0x11e   : > { %v900_v47 = vpop.permute.xlu0 %899  ;;  %v905_v0 = vpop.permute.xlu1 %904 }
 0x122   : > { %v2345_v3 = vpop.permute.xlu0 %909  ;;  %v915_v31 = vpop.permute.xlu1 %914 }
 0x126   : > { %v920_v36 = vpop.permute.xlu0 %919 }
 0x16f   : > { %v1566_v48 = vpop.f32.mrb[0].mxu1  ;;  %v1590_v49 = vpop.f32.mrb[0].mxu0 }
 0x170   : > { %v530_v51 = vpop.f32.mrb[1].mxu1  ;;  %v724_v52 = vadd.f32 %v1590_v49, %v1566_v48  ;;  %v715_v53 = vpop.f32.mrb[1].mxu0 }
 0x171   : > { %v1567_v54 = vpop.f32.mrb[2].mxu1  ;;  %v716_v55 = vadd.f32 %v715_v53, %v530_v51  ;;  %v1591_v56 = vpop.f32.mrb[2].mxu0 }
 0x172   : > { %v533_v57 = vpop.f32.mrb[3].mxu1  ;;  %v787_v58 = vadd.f32 %v2338_v50, %v724_v52  ;;  %v727_v59 = vadd.f32 %v1591_v56, %v1567_v54  ;;  %v718_v60 = vpop.f32.mrb[3].mxu0 }
 0x173   : > { %v785_v61 = vadd.f32 %v2338_v50, %v716_v55  ;;  %v719_v62 = vadd.f32 %v718_v60, %v533_v57 }
 0x174   : > { %v788_v63 = vadd.f32 %v2338_v50, %v727_v59  ;;  %v949_v4 = vmul.f32 %v880_v42, %v787_v58 }
 0x175   : > { %v947_v1 = vmul.f32 %v870_v41, %v785_v61  ;;  %v786_v2 = vadd.f32 %v2338_v50, %v719_v62 }
 0x176   : > { %v1493_v5 = vpack.c.bf16 %v788_v63, %v787_v58  ;;  %v950_v11 = vmul.f32 %v885_v44, %v788_v63  ;;  %v1035_v21 = vmul.f32 %v949_v4, %v949_v4 }
 0x177   : > { %v1570_v6 = vpop.f32.mrb[4].mxu1  ;;  %v948_v7 = vmul.f32 %v875_v43, %v786_v2  ;;  %v1488_v8 = vpack.c.bf16 %v786_v2, %v785_v61  ;;  %v1594_v9 = vpop.f32.mrb[4].mxu0  ;;  %v1033_v15 = vmul.f32 %v947_v1, %v947_v1 }
 0x178   : > { %v546_v10 = vpop.f32.mrb[5].mxu1  ;;  %1525 = vst [vmem:[%s2347_s7 + $0x8] sm:$0xff] %v1493_v5   ;;  %v740_v12 = vadd.f32 %v1594_v9, %v1570_v6  ;;  %v731_v13 = vpop.f32.mrb[5].mxu0  ;;  %v1036_v29 = vmul.f32 %v950_v11, %v950_v11 }
 0x179   : > { %v1571_v14 = vpop.f32.mrb[6].mxu1  ;;  %v1011_v16 = vadd.f32 %v948_v7, %v947_v1  ;;  %v1034_v17 = vmul.f32 %v948_v7, %v948_v7  ;;  %1489 = vst [vmem:[%s2347_s7] sm:$0xff] %v1488_v8   ;;  %v732_v18 = vadd.f32 %v731_v13, %v546_v10  ;;  %v1595_v19 = vpop.f32.mrb[6].mxu0 }
 0x17a   : > { %v549_v20 = vpop.f32.mrb[7].mxu1  ;;  %v791_v22 = vadd.f32 %v2338_v50, %v740_v12  ;;  %v743_v23 = vadd.f32 %v1595_v19, %v1571_v14  ;;  %v734_v24 = vpop.f32.mrb[7].mxu0 }
 0x17b   : > { %v1012_v25 = vadd.f32 %v1011_v16, %v949_v4  ;;  %v1049_v26 = vadd.f32 %v1034_v17, %v1033_v15  ;;  %v789_v27 = vadd.f32 %v2338_v50, %v732_v18  ;;  %v735_v28 = vadd.f32 %v734_v24, %v549_v20  ;;  %v925_v2 = vpop.permute.xlu1 %924  ;;  %v930_v10 = vpop.permute.xlu0 %929 }
 0x17c   : > { %v792_v30 = vadd.f32 %v2338_v50, %v743_v23  ;;  %v953_v37 = vmul.f32 %v900_v47, %v791_v22 }
 0x17d   : > { %v1050_v32 = vadd.f32 %v1049_v26, %v1035_v21  ;;  %v951_v33 = vmul.f32 %v890_v45, %v789_v27  ;;  %v1013_v34 = vadd.f32 %v1012_v25, %v950_v11  ;;  %v790_v35 = vadd.f32 %v2338_v50, %v735_v28 }
 0x17e   : > { %v1503_v38 = vpack.c.bf16 %v792_v30, %v791_v22  ;;  %v954_v49 = vmul.f32 %v905_v0, %v792_v30  ;;  %v1039_v59 = vmul.f32 %v953_v37, %v953_v37 }
 0x17f   : > { %v1574_v39 = vpop.f32.mrb[8].mxu1  ;;  %v1014_v40 = vadd.f32 %v1013_v34, %v951_v33  ;;  %v1037_v41 = vmul.f32 %v951_v33, %v951_v33  ;;  %v1051_v42 = vadd.f32 %v1050_v32, %v1036_v29  ;;  %v952_v43 = vmul.f32 %v2336_v46, %v790_v35  ;;  %v1598_v44 = vpop.f32.mrb[8].mxu0 }
 0x180   : > { %v562_v48 = vpop.f32.mrb[9].mxu1  ;;  %1527 = vst [vmem:[%s2347_s7 + $0x18] sm:$0xff] %v1503_v38   ;;  %v1498_v51 = vpack.c.bf16 %v790_v35, %v789_v27  ;;  %v756_v52 = vadd.f32 %v1598_v44, %v1574_v39  ;;  %v747_v45 = vpop.f32.mrb[9].mxu0  ;;  %v1040_v4 = vmul.f32 %v954_v49, %v954_v49 }
 0x181   : > { %v1575_v53 = vpop.f32.mrb[10].mxu1  ;;  %v1052_v54 = vadd.f32 %v1051_v42, %v1037_v41  ;;  %v1015_v55 = vadd.f32 %v1014_v40, %v952_v43  ;;  %v1038_v56 = vmul.f32 %v952_v43, %v952_v43  ;;  %v748_v47 = vadd.f32 %v747_v45, %v562_v48  ;;  %v1599_v57 = vpop.f32.mrb[10].mxu0 }
 0x182   : > { %v565_v58 = vpop.f32.mrb[11].mxu1  ;;  %1526 = vst [vmem:[%s2347_s7 + $0x10] sm:$0xff] %v1498_v51   ;;  %v795_v60 = vadd.f32 %v2338_v50, %v756_v52  ;;  %v759_v46 = vadd.f32 %v1599_v57, %v1575_v53  ;;  %v750_v61 = vpop.f32.mrb[11].mxu0 }
 0x183   : > { %v1016_v62 = vadd.f32 %v1015_v55, %v953_v37  ;;  %v1053_v63 = vadd.f32 %v1052_v54, %v1038_v56  ;;  %v793_v0 = vadd.f32 %v2338_v50, %v748_v47  ;;  %v751_v1 = vadd.f32 %v750_v61, %v565_v58  ;;  %v935_v30 = vpop.permute.xlu1 %934  ;;  %v940_v41 = vpop.permute.xlu0 %939 }
 0x184   : > { %v796_v5 = vadd.f32 %v2338_v50, %v759_v46  ;;  %v957_v11 = vmul.f32 %v920_v36, %v795_v60 }
 0x185   : > { %v1054_v6 = vadd.f32 %v1053_v63, %v1039_v59  ;;  %v955_v7 = vmul.f32 %v2345_v3, %v793_v0  ;;  %v1017_v8 = vadd.f32 %v1016_v62, %v954_v49  ;;  %v794_v9 = vadd.f32 %v2338_v50, %v751_v1 }
 0x186   : > { %v1513_v12 = vpack.c.bf16 %v796_v5, %v795_v60  ;;  %v958_v20 = vmul.f32 %v925_v2, %v796_v5  ;;  %v1043_v32 = vmul.f32 %v957_v11, %v957_v11 }
 0x187   : > { %v1578_v13 = vpop.f32.mrb[12].mxu1  ;;  %v1018_v14 = vadd.f32 %v1017_v8, %v955_v7  ;;  %v1041_v15 = vmul.f32 %v955_v7, %v955_v7  ;;  %v1055_v16 = vadd.f32 %v1054_v6, %v1040_v4  ;;  %v956_v17 = vmul.f32 %v915_v31, %v794_v9  ;;  %v1602_v18 = vpop.f32.mrb[12].mxu0 }
 0x188   : > { %v578_v19 = vpop.f32.mrb[13].mxu1  ;;  %1529 = vst [vmem:[%s2347_s7 + $0x28] sm:$0xff] %v1513_v12   ;;  %v1508_v21 = vpack.c.bf16 %v794_v9, %v793_v0  ;;  %v772_v22 = vadd.f32 %v1602_v18, %v1578_v13  ;;  %v763_v23 = vpop.f32.mrb[13].mxu0  ;;  %v1044_v39 = vmul.f32 %v958_v20, %v958_v20 }
 0x189   : > { %v1579_v3 = vpop.f32.mrb[14].mxu1  ;;  %v1056_v24 = vadd.f32 %v1055_v16, %v1041_v15  ;;  %v1019_v25 = vadd.f32 %v1018_v14, %v956_v17  ;;  %v1042_v26 = vmul.f32 %v956_v17, %v956_v17  ;;  %v764_v27 = vadd.f32 %v763_v23, %v578_v19  ;;  %v1603_v28 = vpop.f32.mrb[14].mxu0 }
 0x18a   : > { %v581_v29 = vpop.f32.mrb[15].mxu1  ;;  %1528 = vst [vmem:[%s2347_s7 + $0x20] sm:$0xff] %v1508_v21   ;;  %v799_v31 = vadd.f32 %v2338_v50, %v772_v22  ;;  %v775_v33 = vadd.f32 %v1603_v28, %v1579_v3  ;;  %v766_v34 = vpop.f32.mrb[15].mxu0 }
 0x18b   : > { %v1020_v35 = vadd.f32 %v1019_v25, %v957_v11  ;;  %v1057_v36 = vadd.f32 %v1056_v24, %v1042_v26  ;;  %v797_v37 = vadd.f32 %v2338_v50, %v764_v27  ;;  %v767_v38 = vadd.f32 %v766_v34, %v581_v29  ;;  %v945_v55 = vpop.permute.xlu1 %944 }
 0x18c   : > { %v800_v40 = vadd.f32 %v2338_v50, %v775_v33  ;;  %v961_v49 = vmul.f32 %v940_v41, %v799_v31 }
 0x18d   : > { %v1058_v42 = vadd.f32 %v1057_v36, %v1043_v32  ;;  %v959_v43 = vmul.f32 %v930_v10, %v797_v37  ;;  %v1021_v44 = vadd.f32 %v1020_v35, %v958_v20  ;;  %v798_v48 = vadd.f32 %v2338_v50, %v767_v38 }
 0x18e   : > { %v1523_v51 = vpack.c.bf16 %v800_v40, %v799_v31  ;;  %v962_v47 = vmul.f32 %v945_v55, %v800_v40  ;;  %v1047_v59 = vmul.f32 %v961_v49, %v961_v49 }
 0x18f   : > { %v1022_v52 = vadd.f32 %v1021_v44, %v959_v43  ;;  %v1045_v45 = vmul.f32 %v959_v43, %v959_v43  ;;  %v1059_v53 = vadd.f32 %v1058_v42, %v1044_v39  ;;  %v960_v54 = vmul.f32 %v935_v30, %v798_v48 }
 0x190   : > { %1531 = vst [vmem:[%s2347_s7 + $0x38] sm:$0xff] %v1523_v51   ;;  %v1518_v50 = vpack.c.bf16 %v798_v48, %v797_v37 }
 0x191   : > { %v1060_v56 = vadd.f32 %v1059_v53, %v1045_v45  ;;  %v1023_v57 = vadd.f32 %v1022_v52, %v960_v54  ;;  %v1046_v58 = vmul.f32 %v960_v54, %v960_v54 }
 0x192   : > { %1530 = vst [vmem:[%s2347_s7 + $0x30] sm:$0xff] %v1518_v50  }
 0x193   : > { %v1024_v60 = vadd.f32 %v1023_v57, %v961_v49  ;;  %v1061_v46 = vadd.f32 %v1060_v56, %v1046_v58 }
 0x194   : > { %1886 = shalt.err (!%p1883_p8)
}
 0x195   : > { %s1887_s12 = scalar_lea.hbm %s2374_s14, 1024  ;;  %s1891_s7 = scalar_lea.hbm %s2501_s4, 2048 }
 0x196   : > { %p1888_p12 = scmp.ne.s32.totalorder %s2374_s14, %s1887_s12  ;;  %p1892_p13 = scmp.lt.u32.totalorder %s2374_s14, %s2501_s4 }
 0x197   : > { %p1893_p6 = scmp.lt.u32.totalorder %s1891_s7, %s1887_s12  ;;  %p1895_p5 = scmp.lt.u32.totalorder %s1887_s12, %s2374_s14 }
 0x198   : > { %p1889_p1 = pnand %p1888_p12, %p2227_p10 }
 0x199   : > { %p1894_p3 = por %p1893_p6, %p1892_p13 }
 0x19a   : > { %p1890_p11 = pneg %p1889_p1 }
 0x19b   : > { %p1896_p7 = por %p1895_p5, %p1894_p3 }
 0x19d   : > { %p1897_p9 = pnand %p1896_p7, %p1890_p11 }
 0x19f   : > { %1900 = shalt.err (!%p1897_p9)
}
 0x1a0   : > { %s2035_s8 = smov 64   ;;  %s2036_s16 = smov 4   ;;  %v1048_v61 = vmul.f32 %v962_v47, %v962_v47  ;;  %v1025_v62 = vadd.f32 %v1024_v60, %v962_v47  ;;  %v1062_v63 = vadd.f32 %v1061_v46, %v1047_v59 }
 0x1a1   : > { %1637 = dma.vmem_to_hbm [thread:$0]  (%p2227_p10), %s2376_s20, 1024, %s2374_s14, %s1152_s21, %s2035_s8, %s2035_s8, %s2036_s16  }
 0x1a2   : > { %v1026_v0 = vrot.slane %v1025_v62, 4  ;;  %v1063_v1 = vadd.f32 %v1062_v63, %v1048_v61  ;;  %s1156_s15 = sand.u32 1, %s2105_s27   ;;  %s1464_s17 = sshll.u32 %s2015_s24, 4 }
 0x1a3   : > { %s339_s28 = scalar_lea.vmem [#allocation11], %s2286_s11  ;;  %s345_s20 = scalar_lea.vmem [#allocation13], %s2286_s11 }
 0x1a4   : > { %v1027_v2 = vadd.f32 %v1026_v0, %v1025_v62  ;;  %v1064_v4 = vrot.slane %v1063_v1, 4  ;;  %s1192_s12 = sshll.u32 %s339_s28, 4  ;;  %s1206_s14 = sshll.u32 %s345_s20, 4  ;;  %s2415_s12 = int_to_ptr.vmem [resolvable:$true] %s1192_s12  ;;  %s2422_s14 = int_to_ptr.vmem [resolvable:$true] %s1206_s14 }
 0x1a5   : > { %s2413_s29 = scalar_lea.hbm %s2502_s5, %s1464_s17  ;;  %s2420_s7 = scalar_lea.hbm %s2503_s6, %s1464_s17 }
 0x1a6   : > { %v1065_v5 = vadd.f32 %v1064_v4, %v1063_v1  ;;  %v1028_v6 = vrot.slane %v1027_v2, 2  ;;  %s2424_s13 = scalar_lea.sflag [#allocation12], %s1156_s15  ;;  %s1901_s30 = scalar_lea.vmem %s2415_s12, 16 }
 0x1a7   : > { %p1902_p0 = scmp.ne.s32.totalorder %s2415_s12, %s1901_s30  ;;  %s2037_s8 = smov [#allocation11]  }
 0x1a8   : > { %v1066_v7 = vrot.slane %v1065_v5, 2  ;;  %v1029_v8 = vadd.f32 %v1028_v6, %v1027_v2  ;;  %s1905_s16 = sshll.u32 %s2037_s8, 4  ;;  %s1906_s16 = int_to_ptr.vmem [resolvable:$false] %s1905_s16 }
 0x1a9   : > { %p1903_p2 = pnand %p1902_p0, %p2227_p10  ;;  %s1907_s21 = scalar_lea.vmem %s1906_s16, 32 }
 0x1aa   : > { %v1030_v9 = vrot.slane %v1029_v8, 1  ;;  %v1067_v10 = vadd.f32 %v1066_v7, %v1065_v5  ;;  %p1908_p8 = scmp.lt.s32.totalorder %s2415_s12, %s1906_s16  ;;  %p1909_p12 = scmp.lt.s32.totalorder %s1907_s21, %s1901_s30 }
 0x1ab   : > { %p1904_p4 = pneg %p1903_p2 }
 0x1ac   : > { %v1031_v11 = vadd.f32 %v1030_v9, %v1029_v8  ;;  %v1068_v12 = vrot.slane %v1067_v10, 1  ;;  %p1910_p1 = por %p1909_p12, %p1908_p8 }
 0x1ae   : > { %1032 = vst [vmem:[%s339_s28] sm:$0x1] %v1031_v11  ;;  %v1069_v13 = vadd.f32 %v1068_v12, %v1067_v10  ;;  %p1911_p11 = pnand %p1910_p1, %p1904_p4 }
 0x1b0   : > { %1914 = shalt.err (!%p1911_p11)
}
 0x1b1   : > { %s1915_s15 = scalar_lea.hbm %s2413_s29, 16  ;;  %s1919_s10 = scalar_lea.hbm %s2502_s5, 32 }
 0x1b2   : > { %p1916_p13 = scmp.ne.s32.totalorder %s2413_s29, %s1915_s15  ;;  %p1920_p5 = scmp.lt.u32.totalorder %s2413_s29, %s2502_s5 }
 0x1b3   : > { %p1921_p7 = scmp.lt.u32.totalorder %s1919_s10, %s1915_s15  ;;  %p1923_p0 = scmp.lt.u32.totalorder %s1915_s15, %s2413_s29 }
 0x1b4   : > { %p1917_p6 = pnand %p1916_p13, %p2227_p10 }
 0x1b5   : > { %p1922_p9 = por %p1921_p7, %p1920_p5 }
 0x1b6   : > { %p1918_p3 = pneg %p1917_p6 }
 0x1b7   : > { %p1924_p2 = por %p1923_p0, %p1922_p9 }
 0x1b9   : > { %p1925_p4 = pnand %p1924_p2, %p1918_p3 }
 0x1bb   : > { %1928 = shalt.err (!%p1925_p4)
}
 0x1bc   : > { %1638 = dma.vmem_to_hbm [thread:$0]  (%p2227_p10), %s2415_s12, 16, %s2413_s29, %s2424_s13   ;;  %1070 = vst [vmem:[%s345_s20] sm:$0x1] %v1069_v13 }
 0x1bd   : > { %s1929_s30 = scalar_lea.vmem %s2422_s14, 16  ;;  %s2038_s8 = smov [#allocation13]  }
 0x1be   : > { %p1930_p8 = scmp.ne.s32.totalorder %s2422_s14, %s1929_s30  ;;  %s1933_s16 = sshll.u32 %s2038_s8, 4  ;;  %s1934_s16 = int_to_ptr.vmem [resolvable:$false] %s1933_s16 }
 0x1bf   : > { %s1935_s21 = scalar_lea.vmem %s1934_s16, 32  ;;  %p1936_p11 = scmp.lt.s32.totalorder %s2422_s14, %s1934_s16 }
 0x1c0   : > { %p1931_p12 = pnand %p1930_p8, %p2227_p10  ;;  %p1937_p13 = scmp.lt.s32.totalorder %s1935_s21, %s1929_s30 }
 0x1c2   : > { %p1932_p1 = pneg %p1931_p12  ;;  %p1938_p6 = por %p1937_p13, %p1936_p11 }
 0x1c4   : > { %p1939_p3 = pnand %p1938_p6, %p1932_p1 }
 0x1c6   : > { %1942 = shalt.err (!%p1939_p3)
}
 0x1c7   : > { %s1943_s11 = scalar_lea.hbm %s2420_s7, 16  ;;  %s1947_s29 = scalar_lea.hbm %s2503_s6, 32 }
 0x1c8   : > { %p1944_p5 = scmp.ne.s32.totalorder %s2420_s7, %s1943_s11  ;;  %p1948_p0 = scmp.lt.u32.totalorder %s2420_s7, %s2503_s6 }
 0x1c9   : > { %p1949_p2 = scmp.lt.u32.totalorder %s1947_s29, %s1943_s11  ;;  %p1951_p8 = scmp.lt.u32.totalorder %s1943_s11, %s2420_s7 }
 0x1ca   : > { %p1945_p7 = pnand %p1944_p5, %p2227_p10 }
 0x1cb   : > { %p1950_p4 = por %p1949_p2, %p1948_p0 }
 0x1cc   : > { %p1946_p9 = pneg %p1945_p7 }
 0x1cd   : > { %p1952_p12 = por %p1951_p8, %p1950_p4 }
 0x1cf   : > { %p1953_p1 = pnand %p1952_p12, %p1946_p9 }
 0x1d1   : > { %1956 = shalt.err (!%p1953_p1)
}
 0x1d2   : > { %1639 = dma.vmem_to_hbm [thread:$0]  (%p2227_p10), %s2422_s14, 16, %s2420_s7, %s2424_s13  }
 0x1d3 PF: > { %s2530_s28 = sld [smem:[#allocation19_spill]]  ;;  %s2531_s10 = sld [smem:[#allocation20_spill]] }
 0x1d4   : > { %p2533_p13 = scmp.ge.s32.totalorder %s2023_s26, 2 }
 0x1d9   : > { %s1218_s24 = sand.u32 1, %s2530_s28   ;;  %p2532_p11 = scmp.ne.s32.totalorder %s2531_s10, 0 }
 0x1da   : > { %s1219_s27 = scalar_lea.sflag [#allocation4], %s1218_s24 }
 0x1db   : > { %p1658_p6 = pnand %p2533_p13, %p2532_p11 }
 0x1dd   : > { %1994 = dma.done.wait (!%p1658_p6), %s1219_s27, 1024  }
 0x1de   : > { %1996 = vsyncadd (!%p1658_p6), %s1219_s27, 4294966272  ;;  %s2534_s30 = sadd.s32 4294967294, %s2023_s26  }
 0x1df   : > { %s1227_s8 = sand.u32 1, %s2534_s30  }
 0x1e0   : > { %s1228_s16 = scalar_lea.sflag [#allocation12], %s1227_s8 }
 0x1e1   : > { %1998 = dma.done.wait (!%p1658_p6), %s1228_s16, 32  }
 0x1e2   : > { %2000 = vsyncadd (!%p1658_p6), %s1228_s16, 4294967264  ;;  %s28_s26 = sadd.s32 1, %s2023_s26   ;;  %s2535_s21 = smov %s2007_s22 }
 0x1e3   : > { %p25_p10 = scmp.ge.s32.totalorder %s28_s26, 4   ;;  %s2536_s22 = smov %s2011_s23 }
 0x1e4   : > { %s2537_s23 = smov %s2243_s9  ;;  %s2538_s24 = smov %s2019_s25 }
 0x1e5   : > { %s2539_s25 = smov %s2541_s18  ;;  %27 = sbr.rel (!%p25_p10) target bundleno = 10 (0xa), region = 128 }
 0x1ec   :  { %1240 = vsyncpa [#allocation3], 1 }
 0x1ed   :  { %1242 = vsyncpa [#allocation3 + $0x1], 1 }
 0x1ee   :  { %1243 = vsyncpa [#allocation6], 1 }
 0x1ef   :  { %1244 = vsyncpa [#allocation9], 1 }
 0x1f0   :  { %1245 = vsyncpa [#allocation4], 1 }
 0x1f1   :  { %1247 = vsyncpa [#allocation4 + $0x1], 1 }
 0x1f2   :  { %1248 = vsyncpa [#allocation12], 1 }
 0x1f3   :  { %1250 = vsyncpa [#allocation12 + $0x1], 1 }

// kernel: discriminator_forward.7
= control target key start
LH: loop header
LB: loop body
LE: loop exit
PB: predicated region body
PF: predicated region fallthrough
CT: control target
= control target key end

     0   :  { %12 = vsyncpa [#allocation3], 0  ;;  %s1889_s0 = inlined_call_operand.hbm [shape: bf16[2,40,128], index: 0, kind: input, shape index: {}]   ;;  %s1890_s1 = inlined_call_operand.hbm [shape: bf16[2,128,128], index: 1, kind: input, shape index: {}]   ;;  %s1891_s2 = inlined_call_operand.hbm [shape: f32[1,128], index: 2, kind: input, shape index: {}]   ;;  %s1892_s3 = inlined_call_operand.hbm [shape: f32[32,1], index: 3, kind: input, shape index: {}]   ;;  %s1893_s4 = inlined_call_operand.hbm [shape: bf16[2,32,128], index: 4, kind: output, shape index: {0}]   ;;  %s1894_s5 = inlined_call_operand.hbm [shape: f32[2,1,1,128], index: 5, kind: output, shape index: {1}]   ;;  %s1895_s6 = inlined_call_operand.hbm [shape: f32[2,1,1,128], index: 6, kind: output, shape index: {2}]  }
   0x1   :  { %14 = vsyncpa [#allocation3 + $0x1], 0 }
   0x2   :  { %15 = vsyncpa [#allocation6], 0 }
   0x3   :  { %16 = vsyncpa [#allocation9], 0 }
   0x4   :  { %17 = vsyncpa [#allocation4], 0 }
   0x5   :  { %19 = vsyncpa [#allocation4 + $0x1], 0 }
   0x6   :  { %20 = vsyncpa [#allocation12], 0 }
   0x7   :  { %22 = vsyncpa [#allocation12 + $0x1], 0  ;;  %s1529_s21 = smov 0   ;;  %s1531_s22 = smov 0  }
   0x8   :  { %s1533_s23 = smov 0   ;;  %s1535_s24 = smov 0  }
   0x9   :  { %s1537_s25 = smov 0   ;;  %s1539_s26 = smov 0  }
   0xa LB: > { %1904 = sst [smem:[#allocation19_spill]] %s1458_s21  ;;  %s1560_s27 = sadd.s32 4294967295, %s1478_s26   ;;  %s1478_s26 = sphi %s1539_s26, %s28_s26   ;;  %s1474_s25 = sphi %s1537_s25, %s1931_s25   ;;  %s1470_s24 = sphi %s1535_s24, %s1930_s24   ;;  %s1466_s23 = sphi %s1533_s23, %s1929_s23   ;;  %s1462_s22 = sphi %s1531_s22, %s1928_s22   ;;  %s1458_s21 = sphi %s1529_s21, %s1927_s21  }
   0xb   : > { %s1897_s28 = sadd.s32 4294967294, %s1478_s26   ;;  %p60_p0 = scmp.ne.s32.totalorder %s1462_s22, %s1458_s21 }
   0xc   : > { %p1896_p1 = scmp.eq.s32.totalorder %s1560_s27, 0  ;;  %p155_p3 = scmp.eq.s32.totalorder %s1897_s28, 1 }
   0xd   : > { %p952_p5 = scmp.ge.s32.totalorder %s1478_s26, 1  ;;  %p218_p7 = scmp.lt.s32.totalorder %s1478_s26, 3 }
   0xe   : > { %p1571_p4 = por %p1896_p1, %p60_p0  ;;  %p1576_p6 = por %p155_p3, %p60_p0 }
   0xf   : > { %p1581_p8 = pnand %p952_p5, %p218_p7  ;;  %s1480_s8 = smov [#allocation5]  }
  0x10   : > { %s1905_s29 = scalar_select %p1571_p4, 1, 0 }
  0x11   : > { %s1906_s30 = scalar_select %p1576_p6, 1, 0 }
  0x12   : > { %s1908_s7 = scalar_select %p1581_p8, 1, 0 }
  0x13   : > { %1907 = sst [smem:[#allocation20_spill]] %s1906_s30  ;;  %s230_s9 = sshll.u32 %s1480_s8, 4  ;;  %s1585_s9 = int_to_ptr.vmem [resolvable:$true] %s230_s9 }
  0x14   : > { %p1102_p9 = pneg %p1581_p8  ;;  %s1481_s11 = smov [#allocation7]  }
  0x15   : > { %s244_s12 = sshll.u32 %s1481_s11, 4  ;;  %s1482_s13 = smov [#allocation8]   ;;  %s1596_s12 = int_to_ptr.vmem [resolvable:$true] %s244_s12 }
  0x16   : > { %p1592_p11 = pnand %p1102_p9, %p1896_p1  ;;  %s1598_s14 = sshll.u32 %s1482_s13, 4  ;;  %s255_s14 = int_to_ptr.vmem [resolvable:$true] %s1598_s14 }
  0x17   : > { %s1214_s17 = scalar_lea.hbm %s1890_s1, 2048 }
  0x18   : > { %p1215_p12 = scmp.ne.s32.totalorder %s1890_s1, %s1214_s17  ;;  %p1608_p13 = pneg %p1592_p11 }
  0x19   : > { %p1221_p5 = scmp.lt.u32.totalorder %s1214_s17, %s1890_s1 }
  0x1a   : > { %p1217_p0 = pnand %p1608_p13, %p1215_p12 }
  0x1c   : > { %p1218_p3 = pneg %p1217_p0 }
  0x1e   : > { %p1223_p7 = pnand %p1221_p5, %p1218_p3 }
  0x20   : > { %1226 = shalt.err (!%p1223_p7)
}
  0x21   : > { %s1227_s13 = scalar_lea.vmem %s1585_s9, 2048  ;;  %p1235_p2 = scmp.lt.s32.totalorder %s1585_s9, %s1585_s9 }
  0x22   : > { %p1228_p9 = scmp.ne.s32.totalorder %s1585_s9, %s1227_s13  ;;  %p1236_p6 = scmp.lt.s32.totalorder %s1227_s13, %s1227_s13 }
  0x24   : > { %p1230_p10 = pnand %p1228_p9, %p1608_p13  ;;  %p1237_p12 = por %p1236_p6, %p1235_p2 }
  0x26   : > { %p1231_p1 = pneg %p1230_p10 }
  0x28   : > { %p1238_p0 = pnand %p1237_p12, %p1231_p1 }
  0x2a   : > { %1241 = shalt.err (!%p1238_p0)
}
  0x2b   : > { %s1902_s15 = smov 64   ;;  %s1903_s16 = smov 4  }
  0x2c   : > { %1105 = dma.hbm_to_vmem [thread:$0]  (!%p1592_p11), %s1890_s1, 2048, %s1585_s9, [#allocation6], %s1902_s15, %s1902_s15, %s1903_s16  }
  0x2d   : > { %s1242_s11 = scalar_lea.hbm %s1891_s2, 16 }
  0x2e   : > { %p1243_p1 = scmp.ne.s32.totalorder %s1891_s2, %s1242_s11  ;;  %p1249_p10 = scmp.lt.u32.totalorder %s1242_s11, %s1891_s2 }
  0x30   : > { %p1245_p2 = pnand %p1243_p1, %p1608_p13 }
  0x32   : > { %p1246_p6 = pneg %p1245_p2 }
  0x34   : > { %p1251_p3 = pnand %p1249_p10, %p1246_p6 }
  0x36   : > { %1254 = shalt.err (!%p1251_p3)
}
  0x37   : > { %s1255_s9 = scalar_lea.vmem %s1596_s12, 16  ;;  %s1262_s28 = scalar_lea.vmem %s1596_s12, 32 }
  0x38   : > { %p1256_p5 = scmp.ne.s32.totalorder %s1596_s12, %s1255_s9  ;;  %p1263_p12 = scmp.lt.s32.totalorder %s1596_s12, %s1596_s12 }
  0x39   : > { %p1264_p0 = scmp.lt.s32.totalorder %s1262_s28, %s1255_s9 }
  0x3a   : > { %p1258_p7 = pnand %p1256_p5, %p1608_p13 }
  0x3b   : > { %p1265_p1 = por %p1264_p0, %p1263_p12 }
  0x3c   : > { %p1259_p9 = pneg %p1258_p7 }
  0x3e   : > { %p1266_p2 = pnand %p1265_p1, %p1259_p9 }
  0x40   : > { %1269 = shalt.err (!%p1266_p2)
}
  0x41   : > { %1108 = dma.hbm_to_vmem [thread:$0]  (!%p1592_p11), %s1891_s2, 16, %s1596_s12, [#allocation6]  }
  0x42   : > { %s1270_s19 = scalar_lea.hbm %s1892_s3, 512 }
  0x43   : > { %p1271_p6 = scmp.ne.s32.totalorder %s1892_s3, %s1270_s19  ;;  %p1277_p5 = scmp.lt.u32.totalorder %s1270_s19, %s1892_s3 }
  0x45   : > { %p1273_p10 = pnand %p1271_p6, %p1608_p13 }
  0x47   : > { %p1274_p3 = pneg %p1273_p10 }
  0x49   : > { %p1279_p7 = pnand %p1277_p5, %p1274_p3 }
  0x4b   : > { %1282 = shalt.err (!%p1279_p7)
}
  0x4c   : > { %s1283_s28 = scalar_lea.vmem %s255_s14, 512  ;;  %p1291_p1 = scmp.lt.s32.totalorder %s255_s14, %s255_s14 }
  0x4d   : > { %p1284_p9 = scmp.ne.s32.totalorder %s255_s14, %s1283_s28  ;;  %p1292_p2 = scmp.lt.s32.totalorder %s1283_s28, %s1283_s28 }
  0x4f   : > { %p1286_p12 = pnand %p1284_p9, %p1608_p13  ;;  %p1293_p4 = por %p1292_p2, %p1291_p1 }
  0x51   : > { %p1287_p0 = pneg %p1286_p12 }
  0x53   : > { %p1294_p8 = pnand %p1293_p4, %p1287_p0 }
  0x55   : > { %1297 = shalt.err (!%p1294_p8)
}
  0x56   : > { %s1485_s12 = smov 128   ;;  %s1486_s20 = smov 8  }
  0x57   : > { %1111 = dma.hbm_to_vmem [thread:$0]  (!%p1592_p11), %s1892_s3, 512, %s255_s14, [#allocation9], %s1485_s12, %s1485_s12, %s1486_s20  }
  0x58   : > { %s47_s17 = sadd.s32 1, %s1466_s23  ;;  %s40_s18 = sadd.s32 1, %s1474_s25 }
  0x59   : > { %p54_p4 = scmp.ne.s32.totalorder %s1466_s23, %s1462_s22  ;;  %p42_p8 = scmp.ge.s32.totalorder %s40_s18, 2 }
  0x5a   : > { %p55_p13 = scmp.eq.s32.totalorder %s1478_s26, 0  ;;  %p1911_p6 = scmp.eq.s32.totalorder %s1560_s27, 1 }
  0x5b   : > { %p1129_p3 = scmp.lt.s32.totalorder %s1478_s26, 2  ;;  %s1933_s18 = smov (%p42_p8, %s40_s18), 0 }
  0x5c   : > { %p1682_p10 = por %p1911_p6, %p54_p4  ;;  %p56_p5 = por %p55_p13, %p54_p4 }
  0x5d   : > { %s268_s10 = sand.u32 1, %s1466_s23   ;;  %s44_s8 = ssub.s32 %s1474_s25, %s1933_s18 }
  0x5e   : > { %p45_p7 = scmp.eq.s32.totalorder %s44_s8, 0  ;;  %s1079_s14 = smul.u32 20, %s268_s10 }
  0x5f   : > { %s1080_s11 = smul.u32 320, %s1474_s25  ;;  %p1693_p11 = pnand %p1129_p3, %p56_p5 }
  0x60   : > { %s1698_s9 = scalar_select %p45_p7, %s1466_s23, %s47_s17  }
  0x61   : > { %s1703_s20 = scalar_lea.hbm %s1889_s0, %s1080_s11  ;;  %s272_s21 = scalar_lea.vmem [#allocation2], %s1079_s14 }
  0x62   : > { %s279_s30 = sshll.u32 %s272_s21, 4  ;;  %s1707_s8 = scalar_lea.sflag [#allocation3], %s268_s10  ;;  %s1705_s30 = int_to_ptr.vmem [resolvable:$true] %s279_s30 }
  0x63   : > { %s1298_s15 = scalar_lea.hbm %s1703_s20, 320  ;;  %p1300_p12 = pneg %p1693_p11 }
  0x64   : > { %p1299_p9 = scmp.ne.s32.totalorder %s1703_s20, %s1298_s15  ;;  %s1303_s28 = scalar_lea.hbm %s1889_s0, 640 }
  0x65   : > { %p1304_p2 = scmp.lt.u32.totalorder %s1703_s20, %s1889_s0  ;;  %p1305_p4 = scmp.lt.u32.totalorder %s1303_s28, %s1298_s15 }
  0x66   : > { %p1301_p0 = pnand %p1300_p12, %p1299_p9  ;;  %p1307_p13 = scmp.lt.u32.totalorder %s1298_s15, %s1703_s20 }
  0x67   : > { %p1306_p8 = por %p1305_p4, %p1304_p2 }
  0x68   : > { %p1302_p1 = pneg %p1301_p0 }
  0x69   : > { %p1308_p6 = por %p1307_p13, %p1306_p8 }
  0x6b   : > { %p1309_p3 = pnand %p1308_p6, %p1302_p1 }
  0x6d   : > { %1312 = shalt.err (!%p1309_p3)
}
  0x6e   : > { %s1313_s10 = scalar_lea.vmem %s1705_s30, 320  ;;  %s1487_s14 = smov [#allocation2]  }
  0x6f   : > { %p1314_p5 = scmp.ne.s32.totalorder %s1705_s30, %s1313_s10  ;;  %s1318_s21 = sshll.u32 %s1487_s14, 4  ;;  %s1319_s21 = int_to_ptr.vmem [resolvable:$false] %s1318_s21 }
  0x70   : > { %s1320_s16 = scalar_lea.vmem %s1319_s21, 640  ;;  %p1321_p0 = scmp.lt.s32.totalorder %s1705_s30, %s1319_s21 }
  0x71   : > { %p1316_p7 = pnand %p1314_p5, %p1300_p12  ;;  %p1322_p2 = scmp.lt.s32.totalorder %s1320_s16, %s1313_s10 }
  0x73   : > { %p1317_p9 = pneg %p1316_p7  ;;  %p1323_p4 = por %p1322_p2, %p1321_p0 }
  0x75   : > { %p1324_p8 = pnand %p1323_p4, %p1317_p9 }
  0x77   : > { %1327 = shalt.err (!%p1324_p8)
}
  0x78   : > { %s1914_s15 = smov 4   ;;  %s1915_s17 = smov 64  }
  0x79   : > { %1115 = dma.hbm_to_vmem [thread:$0]  (!%p1693_p11), %s1703_s20, 320, %s1705_s30, %s1707_s8, %s1915_s17, %s1915_s17, %s1914_s15  }
  0x7a   : > { %p1916_p12 = scmp.ne.s32.totalorder %s1908_s7, 0 }
  0x7b   : > { %s1741_s11 = sand.u32 (!%p1916_p12), 1, %s1462_s22   ;;  %p1917_p1 = scmp.ne.s32.totalorder (!%p1916_p12), %s1905_s29, 0 }
  0x7c   : > { %291 = sbr.rel (%p1916_p12) target bundleno = 458 (0x1ca), region = 36  ;;  %s294_s12 = scalar_lea.sflag (!%p1916_p12), [#allocation3], %s1741_s11 }
  0x7d   : > { %s1081_s28 = smul.u32 (!%p1916_p12), 20, %s1741_s11 }
  0x7f   : > { %s1745_s10 = scalar_lea.vmem (!%p1916_p12), [#allocation2], %s1081_s28 }
  0x83   : > { %1437 = dma.done.wait (%p1917_p1), %s294_s12, 320  }
  0x84   : > { %1439 = vsyncadd (%p1917_p1), %s294_s12, 4294966976  ;;  %p1918_p11 = scmp.eq.s32.totalorder %s1560_s27, 0 }
  0x86   : > { %1441 = dma.done.wait (%p1918_p11), [#allocation6], 2064   ;;  %p1919_p13 = pmov %p1918_p11 }
  0x87   : > { %p1920_p6 = pmov %p1918_p11 }
  0x88   : > { %1443 = vsyncadd (%p1919_p13), [#allocation6], 4294965232 }
  0x89   : > { %1445 = dma.done.wait (%p1920_p6), [#allocation9], 512   ;;  %p1921_p3 = pmov %p1920_p6 }
  0x8a   : > { %v1488_v0 = vmov 0   ;;  %v1194_v1 = vld [vmem:[#allocation5 + $0x40] sm:$0xff]   ;;  %v1196_v3 = vld [vmem:[#allocation5 + $0x48] sm:$0xff]   ;;  %v1198_v5 = vld [vmem:[#allocation5 + $0x50] sm:$0xff]   ;;  %s962_s29 = sshll.u32 %s1741_s11, 4  ;;  %s1003_s20 = sshll.u32 %s1470_s24, 8 }
  0x8b   : > { %1447 = vsyncadd (%p1921_p3), [#allocation9], 4294966784  ;;  %1192 = vset.pattern.permute.xlu0 %v1488_v0  ;;  %1193 = vset.pattern.permute.xlu1 %v1488_v0  ;;  %v1195_v2 = vld [vmem:[#allocation5] sm:$0xff]   ;;  %v1197_v4 = vld [vmem:[#allocation5 + $0x8] sm:$0xff]   ;;  %s333_s7 = scalar_lea.vmem [#allocation10], %s962_s29  ;;  %s1770_s14 = scalar_lea.hbm %s1893_s4, %s1003_s20 }
  0x8c   : > { %1035 = vmatprep.subr.bf16.mxu1 %v1194_v1  ;;  %1055 = vmatprep.subr.bf16.mxu0 %v1195_v2  ;;  %v1199_v6 = vld [vmem:[#allocation5 + $0x10] sm:$0xff]   ;;  %v1200_v7 = vld [vmem:[#allocation5 + $0x58] sm:$0xff]   ;;  %v1202_v9 = vld [vmem:[#allocation5 + $0x60] sm:$0xff]   ;;  %s750_s13 = sshll.u32 %s333_s7, 4  ;;  %s727_s21 = scalar_lea.sflag [#allocation4], %s1741_s11  ;;  %s1765_s13 = int_to_ptr.vmem [resolvable:$true] %s750_s13 }
  0x8d   : > { %1036 = vmatpush3.bf16.msra.mxu1 %v1194_v1  ;;  %1056 = vmatpush3.bf16.msra.mxu0 %v1195_v2  ;;  %v1201_v8 = vld [vmem:[#allocation5 + $0x18] sm:$0xff]   ;;  %v1203_v10 = vld [vmem:[#allocation5 + $0x20] sm:$0xff]   ;;  %v1204_v11 = vld [vmem:[#allocation5 + $0x68] sm:$0xff]   ;;  %s1328_s16 = scalar_lea.vmem %s1765_s13, 256  ;;  %s1489_s15 = smov [#allocation10]  }
  0x8e   : > { %1037 = vmatprep.subr.bf16.mxu1 %v1196_v3  ;;  %1057 = vmatprep.subr.bf16.mxu0 %v1197_v4  ;;  %v1205_v12 = vld [vmem:[#allocation5 + $0x28] sm:$0xff]   ;;  %v1210_v13 = vld [vmem:[%s1745_s10 + $0x4] sm:$0xff]   ;;  %p1329_p5 = scmp.ne.s32.totalorder %s1765_s13, %s1328_s16  ;;  %s1332_s17 = sshll.u32 %s1489_s15, 4  ;;  %s1333_s17 = int_to_ptr.vmem [resolvable:$false] %s1332_s17 }
  0x8f   : > { %v1211_v14 = vld [vmem:[%s1745_s10] sm:$0xff]   ;;  %1051 = vmatprep.mubr.bf16.mxu1 %v1210_v13  ;;  %v642_v16 = vld [vmem:[#allocation8] sm:$0xff]  ;;  %v987_v32 = vld [vmem:[#allocation7] ss:$0 sm:$0xff]  ;;  %s1334_s28 = scalar_lea.vmem %s1333_s17, 512  ;;  %p1335_p0 = scmp.lt.s32.totalorder %s1765_s13, %s1333_s17 }
  0x90   : > { %1071 = vmatprep.mubr.bf16.mxu0 %v1211_v14  ;;  %v1206_v15 = vld [vmem:[#allocation5 + $0x70] sm:$0xff]   ;;  %648 = vperm.xlu0 %1192, %v642_v16   ;;  %v645_v20 = vld [vmem:[#allocation8 + $0x18] sm:$0xff]  ;;  %p1330_p7 = pnand %p1329_p5, %p1682_p10  ;;  %p1336_p2 = scmp.lt.s32.totalorder %s1334_s28, %s1328_s16 }
  0x91   : > { %1038 = vmatpush3.bf16.msra.mxu1 %v1196_v3  ;;  %1058 = vmatpush3.bf16.msra.mxu0 %v1197_v4  ;;  %v644_v17 = vld [vmem:[#allocation8 + $0x10] sm:$0xff]  ;;  %v643_v19 = vld [vmem:[#allocation8 + $0x8] sm:$0xff] }
  0x92   : > { %1039 = vmatprep.subr.bf16.mxu1 %v1198_v5  ;;  %1059 = vmatprep.subr.bf16.mxu0 %v1199_v6  ;;  %v1207_v18 = vld [vmem:[#allocation5 + $0x30] sm:$0xff]   ;;  %v1208_v21 = vld [vmem:[#allocation5 + $0x78] sm:$0xff]   ;;  %p1331_p9 = pneg %p1330_p7  ;;  %p1337_p4 = por %p1336_p2, %p1335_p0 }
  0x93   : > { %658 = vperm.xlu1 %1193, %v644_v17   ;;  %v1209_v22 = vld [vmem:[#allocation5 + $0x38] sm:$0xff]  }
  0x94   : > { %653 = vperm.xlu0 %1192, %v643_v19   ;;  %v1212_v23 = vld [vmem:[%s1745_s10 + $0xc] sm:$0xff]   ;;  %p1338_p8 = pnand %p1337_p4, %p1331_p9 }
  0x95   : > { %1040 = vmatpush3.bf16.msra.mxu1 %v1198_v5  ;;  %1060 = vmatpush3.bf16.msra.mxu0 %v1199_v6  ;;  %v1213_v24 = vld [vmem:[%s1745_s10 + $0x8] sm:$0xff]  }
  0x96   : > { %1041 = vmatprep.subr.bf16.mxu1 %v1200_v7  ;;  %1061 = vmatprep.subr.bf16.mxu0 %v1201_v8 }
  0x97   : > { %663 = vperm.xlu1 %1193, %v645_v20  }
  0x99   : > { %1042 = vmatpush3.bf16.msra.mxu1 %v1200_v7  ;;  %1062 = vmatpush3.bf16.msra.mxu0 %v1201_v8 }
  0x9a   : > { %1043 = vmatprep.subr.bf16.mxu1 %v1202_v9  ;;  %1063 = vmatprep.subr.bf16.mxu0 %v1203_v10 }
  0x9d   : > { %1044 = vmatpush3.bf16.msra.mxu1 %v1202_v9  ;;  %1064 = vmatpush3.bf16.msra.mxu0 %v1203_v10 }
  0x9e   : > { %1045 = vmatprep.subr.bf16.mxu1 %v1204_v11  ;;  %1065 = vmatprep.subr.bf16.mxu0 %v1205_v12 }
  0xa1   : > { %1046 = vmatpush3.bf16.msra.mxu1 %v1204_v11  ;;  %1066 = vmatpush3.bf16.msra.mxu0 %v1205_v12 }
  0xa2   : > { %1047 = vmatprep.subr.bf16.mxu1 %v1206_v15  ;;  %1067 = vmatprep.subr.bf16.mxu0 %v1207_v18 }
  0xa5   : > { %1048 = vmatpush3.bf16.msra.mxu1 %v1206_v15  ;;  %1068 = vmatpush3.bf16.msra.mxu0 %v1207_v18 }
  0xa6   : > { %1049 = vmatprep.subr.bf16.mxu1 %v1208_v21  ;;  %1069 = vmatprep.subr.bf16.mxu0 %v1209_v22 }
  0xa9   : > { %1050 = vmatpush3.bf16.msra.mxu1 %v1208_v21  ;;  %1070 = vmatpush3.bf16.msra.mxu0 %v1209_v22 }
  0xac   : > { %1052 = vmatmul.mubr.bf16.vlgmr.msra.gmra.mrb[0].mxu1 %v1212_v23  ;;  %1072 = vmatmul.mubr.bf16.vlgmr.msra.gmra.mrb[0].mxu0 %v1213_v24 }
 0x10f   : > { %v649_v25 = vpop.permute.xlu0 %648 }
 0x112   : > { %v659_v27 = vpop.permute.xlu1 %658 }
 0x113   : > { %v654_v45 = vpop.permute.xlu0 %653 }
 0x116   : > { %v664_v46 = vpop.permute.xlu1 %663 }
 0x17f   : > { %v1053_v26 = vpop.f32.mrb[0].mxu1  ;;  %v1073_v28 = vpop.f32.mrb[0].mxu0 }
 0x180   : > { %v493_v29 = vpop.f32.mrb[1].mxu1  ;;  %v611_v30 = vadd.f32 %v1073_v28, %v1053_v26  ;;  %v602_v31 = vpop.f32.mrb[1].mxu0 }
 0x181   : > { %v1054_v33 = vpop.f32.mrb[2].mxu1  ;;  %v603_v34 = vadd.f32 %v602_v31, %v493_v29  ;;  %v1074_v35 = vpop.f32.mrb[2].mxu0 }
 0x182   : > { %v496_v36 = vpop.f32.mrb[3].mxu1  ;;  %v614_v37 = vadd.f32 %v1074_v35, %v1054_v33  ;;  %v605_v38 = vpop.f32.mrb[3].mxu0  ;;  %v626_v40 = vadd.f32 %v987_v32, %v611_v30 }
 0x183   : > { %v624_v39 = vadd.f32 %v987_v32, %v603_v34  ;;  %v606_v41 = vadd.f32 %v605_v38, %v496_v36 }
 0x184   : > { %v627_v42 = vadd.f32 %v987_v32, %v614_v37  ;;  %v668_v48 = vmul.f32 %v659_v27, %v626_v40 }
 0x185   : > { %v666_v43 = vmul.f32 %v649_v25, %v624_v39  ;;  %v625_v44 = vadd.f32 %v987_v32, %v606_v41 }
 0x186   : > { %v1012_v47 = vpack.c.bf16 %v627_v42, %v626_v40  ;;  %v669_v53 = vmul.f32 %v664_v46, %v627_v42 }
 0x187   : > { %v667_v49 = vmul.f32 %v654_v45, %v625_v44  ;;  %v1007_v50 = vpack.c.bf16 %v625_v44, %v624_v39  ;;  %v692_v51 = vmul.f32 %v666_v43, %v666_v43 }
 0x188   : > { %1014 = vst [vmem:[%s333_s7 + $0x8] sm:$0xff] %v1012_v47  }
 0x189   : > { %v693_v52 = vmul.f32 %v667_v49, %v667_v49  ;;  %1008 = vst [vmem:[%s333_s7] sm:$0xff] %v1007_v50   ;;  %v682_v54 = vadd.f32 %v667_v49, %v666_v43 }
 0x18a   : > { %1341 = shalt.err (!%p1338_p8)
}
 0x18b   : > { %s1342_s12 = scalar_lea.hbm %s1770_s14, 256  ;;  %s1346_s7 = scalar_lea.hbm %s1893_s4, 512 }
 0x18c   : > { %p1343_p12 = scmp.ne.s32.totalorder %s1770_s14, %s1342_s12  ;;  %p1347_p13 = scmp.lt.u32.totalorder %s1770_s14, %s1893_s4 }
 0x18d   : > { %p1348_p6 = scmp.lt.u32.totalorder %s1346_s7, %s1342_s12  ;;  %p1350_p5 = scmp.lt.u32.totalorder %s1342_s12, %s1770_s14 }
 0x18e   : > { %p1344_p1 = pnand %p1343_p12, %p1682_p10 }
 0x18f   : > { %p1349_p3 = por %p1348_p6, %p1347_p13 }
 0x190   : > { %p1345_p11 = pneg %p1344_p1 }
 0x191   : > { %p1351_p7 = por %p1350_p5, %p1349_p3 }
 0x193   : > { %p1352_p9 = pnand %p1351_p7, %p1345_p11 }
 0x195   : > { %1355 = shalt.err (!%p1352_p9)
}
 0x196   : > { %s1490_s8 = smov 64   ;;  %s1491_s16 = smov 4   ;;  %v694_v55 = vmul.f32 %v668_v48, %v668_v48  ;;  %v683_v56 = vadd.f32 %v682_v54, %v668_v48  ;;  %v696_v57 = vadd.f32 %v693_v52, %v692_v51  ;;  %v695_v59 = vmul.f32 %v669_v53, %v669_v53 }
 0x197   : > { %1096 = dma.vmem_to_hbm [thread:$0]  (%p1682_p10), %s1765_s13, 256, %s1770_s14, %s727_s21, %s1490_s8, %s1490_s8, %s1491_s16  }
 0x198   : > { %v684_v58 = vadd.f32 %v683_v56, %v669_v53  ;;  %v697_v60 = vadd.f32 %v696_v57, %v694_v55  ;;  %s731_s15 = sand.u32 1, %s1560_s27   ;;  %s995_s13 = sshll.u32 %s1470_s24, 4 }
 0x199   : > { %s339_s14 = scalar_lea.vmem [#allocation11], %s1741_s11  ;;  %s345_s17 = scalar_lea.vmem [#allocation13], %s1741_s11 }
 0x19a   : > { %v685_v61 = vrot.slane %v684_v58, 4  ;;  %v698_v62 = vadd.f32 %v697_v60, %v695_v59  ;;  %s767_s21 = sshll.u32 %s339_s14, 4  ;;  %s781_s28 = sshll.u32 %s345_s17, 4  ;;  %s1807_s21 = int_to_ptr.vmem [resolvable:$true] %s767_s21  ;;  %s1814_s28 = int_to_ptr.vmem [resolvable:$true] %s781_s28 }
 0x19b   : > { %s1805_s29 = scalar_lea.hbm %s1894_s5, %s995_s13  ;;  %s1812_s7 = scalar_lea.hbm %s1895_s6, %s995_s13 }
 0x19c   : > { %v686_v63 = vadd.f32 %v685_v61, %v684_v58  ;;  %v699_v0 = vrot.slane %v698_v62, 4  ;;  %s1816_s20 = scalar_lea.sflag [#allocation12], %s731_s15  ;;  %s1356_s30 = scalar_lea.vmem %s1807_s21, 16 }
 0x19d   : > { %p1357_p0 = scmp.ne.s32.totalorder %s1807_s21, %s1356_s30  ;;  %s1492_s8 = smov [#allocation11]  }
 0x19e   : > { %v687_v1 = vrot.slane %v686_v63, 2  ;;  %v700_v2 = vadd.f32 %v699_v0, %v698_v62  ;;  %s1360_s16 = sshll.u32 %s1492_s8, 4  ;;  %s1361_s16 = int_to_ptr.vmem [resolvable:$false] %s1360_s16 }
 0x19f   : > { %p1358_p2 = pnand %p1357_p0, %p1682_p10  ;;  %s1362_s12 = scalar_lea.vmem %s1361_s16, 32 }
 0x1a0   : > { %v688_v3 = vadd.f32 %v687_v1, %v686_v63  ;;  %v701_v4 = vrot.slane %v700_v2, 2  ;;  %p1363_p8 = scmp.lt.s32.totalorder %s1807_s21, %s1361_s16  ;;  %p1364_p12 = scmp.lt.s32.totalorder %s1362_s12, %s1356_s30 }
 0x1a1   : > { %p1359_p4 = pneg %p1358_p2 }
 0x1a2   : > { %v689_v5 = vrot.slane %v688_v3, 1  ;;  %v702_v6 = vadd.f32 %v701_v4, %v700_v2  ;;  %p1365_p1 = por %p1364_p12, %p1363_p8 }
 0x1a4   : > { %v690_v7 = vadd.f32 %v689_v5, %v688_v3  ;;  %v703_v8 = vrot.slane %v702_v6, 1  ;;  %p1366_p11 = pnand %p1365_p1, %p1359_p4 }
 0x1a6   : > { %v704_v9 = vadd.f32 %v703_v8, %v702_v6  ;;  %691 = vst [vmem:[%s339_s14] sm:$0x1] %v690_v7 }
 0x1a7   : > { %1369 = shalt.err (!%p1366_p11)
}
 0x1a8   : > { %s1370_s15 = scalar_lea.hbm %s1805_s29, 16  ;;  %s1374_s10 = scalar_lea.hbm %s1894_s5, 32 }
 0x1a9   : > { %p1371_p13 = scmp.ne.s32.totalorder %s1805_s29, %s1370_s15  ;;  %p1375_p5 = scmp.lt.u32.totalorder %s1805_s29, %s1894_s5 }
 0x1aa   : > { %p1376_p7 = scmp.lt.u32.totalorder %s1374_s10, %s1370_s15  ;;  %p1378_p0 = scmp.lt.u32.totalorder %s1370_s15, %s1805_s29 }
 0x1ab   : > { %p1372_p6 = pnand %p1371_p13, %p1682_p10 }
 0x1ac   : > { %p1377_p9 = por %p1376_p7, %p1375_p5 }
 0x1ad   : > { %p1373_p3 = pneg %p1372_p6 }
 0x1ae   : > { %p1379_p2 = por %p1378_p0, %p1377_p9 }
 0x1b0   : > { %p1380_p4 = pnand %p1379_p2, %p1373_p3 }
 0x1b2   : > { %1383 = shalt.err (!%p1380_p4)
}
 0x1b3   : > { %1097 = dma.vmem_to_hbm [thread:$0]  (%p1682_p10), %s1807_s21, 16, %s1805_s29, %s1816_s20   ;;  %705 = vst [vmem:[%s345_s17] sm:$0x1] %v704_v9 }
 0x1b4   : > { %s1384_s30 = scalar_lea.vmem %s1814_s28, 16  ;;  %s1493_s8 = smov [#allocation13]  }
 0x1b5   : > { %p1385_p8 = scmp.ne.s32.totalorder %s1814_s28, %s1384_s30  ;;  %s1388_s16 = sshll.u32 %s1493_s8, 4  ;;  %s1389_s16 = int_to_ptr.vmem [resolvable:$false] %s1388_s16 }
 0x1b6   : > { %s1390_s12 = scalar_lea.vmem %s1389_s16, 32  ;;  %p1391_p11 = scmp.lt.s32.totalorder %s1814_s28, %s1389_s16 }
 0x1b7   : > { %p1386_p12 = pnand %p1385_p8, %p1682_p10  ;;  %p1392_p13 = scmp.lt.s32.totalorder %s1390_s12, %s1384_s30 }
 0x1b9   : > { %p1387_p1 = pneg %p1386_p12  ;;  %p1393_p6 = por %p1392_p13, %p1391_p11 }
 0x1bb   : > { %p1394_p3 = pnand %p1393_p6, %p1387_p1 }
 0x1bd   : > { %1397 = shalt.err (!%p1394_p3)
}
 0x1be   : > { %s1398_s11 = scalar_lea.hbm %s1812_s7, 16  ;;  %s1402_s29 = scalar_lea.hbm %s1895_s6, 32 }
 0x1bf   : > { %p1399_p5 = scmp.ne.s32.totalorder %s1812_s7, %s1398_s11  ;;  %p1403_p0 = scmp.lt.u32.totalorder %s1812_s7, %s1895_s6 }
 0x1c0   : > { %p1404_p2 = scmp.lt.u32.totalorder %s1402_s29, %s1398_s11  ;;  %p1406_p8 = scmp.lt.u32.totalorder %s1398_s11, %s1812_s7 }
 0x1c1   : > { %p1400_p7 = pnand %p1399_p5, %p1682_p10 }
 0x1c2   : > { %p1405_p4 = por %p1404_p2, %p1403_p0 }
 0x1c3   : > { %p1401_p9 = pneg %p1400_p7 }
 0x1c4   : > { %p1407_p12 = por %p1406_p8, %p1405_p4 }
 0x1c6   : > { %p1408_p1 = pnand %p1407_p12, %p1401_p9 }
 0x1c8   : > { %1411 = shalt.err (!%p1408_p1)
}
 0x1c9   : > { %1098 = dma.vmem_to_hbm [thread:$0]  (%p1682_p10), %s1814_s28, 16, %s1812_s7, %s1816_s20  }
 0x1ca PF: > { %s1922_s14 = sld [smem:[#allocation19_spill]]  ;;  %s1923_s10 = sld [smem:[#allocation20_spill]] }
 0x1cb   : > { %p1925_p13 = scmp.ge.s32.totalorder %s1478_s26, 2 }
 0x1d0   : > { %s793_s24 = sand.u32 1, %s1922_s14   ;;  %p1924_p11 = scmp.ne.s32.totalorder %s1923_s10, 0 }
 0x1d1   : > { %s794_s27 = scalar_lea.sflag [#allocation4], %s793_s24 }
 0x1d2   : > { %p1117_p6 = pnand %p1925_p13, %p1924_p11 }
 0x1d4   : > { %1449 = dma.done.wait (!%p1117_p6), %s794_s27, 256  }
 0x1d5   : > { %1451 = vsyncadd (!%p1117_p6), %s794_s27, 4294967040  ;;  %s1926_s30 = sadd.s32 4294967294, %s1478_s26  }
 0x1d6   : > { %s802_s8 = sand.u32 1, %s1926_s30  }
 0x1d7   : > { %s803_s16 = scalar_lea.sflag [#allocation12], %s802_s8 }
 0x1d8   : > { %1453 = dma.done.wait (!%p1117_p6), %s803_s16, 32  }
 0x1d9   : > { %1455 = vsyncadd (!%p1117_p6), %s803_s16, 4294967264  ;;  %s28_s26 = sadd.s32 1, %s1478_s26   ;;  %s1927_s21 = smov %s1462_s22 }
 0x1da   : > { %p25_p10 = scmp.ge.s32.totalorder %s28_s26, 4   ;;  %s1928_s22 = smov %s1466_s23 }
 0x1db   : > { %s1929_s23 = smov %s1698_s9  ;;  %s1930_s24 = smov %s1474_s25 }
 0x1dc   : > { %s1931_s25 = smov %s1933_s18  ;;  %27 = sbr.rel (!%p25_p10) target bundleno = 10 (0xa), region = 128 }
 0x1e3   :  { %815 = vsyncpa [#allocation3], 1 }
 0x1e4   :  { %817 = vsyncpa [#allocation3 + $0x1], 1 }
 0x1e5   :  { %818 = vsyncpa [#allocation6], 1 }
 0x1e6   :  { %819 = vsyncpa [#allocation9], 1 }
 0x1e7   :  { %820 = vsyncpa [#allocation4], 1 }
 0x1e8   :  { %822 = vsyncpa [#allocation4 + $0x1], 1 }
 0x1e9   :  { %823 = vsyncpa [#allocation12], 1 }
 0x1ea   :  { %825 = vsyncpa [#allocation12 + $0x1], 1 }

// kernel: discriminator_forward.8
= control target key start
LH: loop header
LB: loop body
LE: loop exit
PB: predicated region body
PF: predicated region fallthrough
CT: control target
= control target key end

     0   :  { %12 = vsyncpa [#allocation3], 0  ;;  %s2227_s0 = inlined_call_operand.hbm [shape: bf16[2,48,128], index: 0, kind: input, shape index: {}]   ;;  %s2228_s1 = inlined_call_operand.hbm [shape: bf16[4,128,128], index: 1, kind: input, shape index: {}]   ;;  %s2229_s2 = inlined_call_operand.hbm [shape: f32[1,128], index: 2, kind: input, shape index: {}]   ;;  %s2230_s3 = inlined_call_operand.hbm [shape: f32[24,1], index: 3, kind: input, shape index: {}]   ;;  %s2231_s4 = inlined_call_operand.hbm [shape: bf16[2,24,128], index: 4, kind: output, shape index: {0}]   ;;  %s2232_s5 = inlined_call_operand.hbm [shape: f32[2,1,1,128], index: 5, kind: output, shape index: {1}]   ;;  %s2233_s6 = inlined_call_operand.hbm [shape: f32[2,1,1,128], index: 6, kind: output, shape index: {2}]  }
   0x1   :  { %14 = vsyncpa [#allocation3 + $0x1], 0 }
   0x2   :  { %15 = vsyncpa [#allocation6], 0 }
   0x3   :  { %16 = vsyncpa [#allocation9], 0 }
   0x4   :  { %17 = vsyncpa [#allocation4], 0 }
   0x5   :  { %19 = vsyncpa [#allocation4 + $0x1], 0 }
   0x6   :  { %20 = vsyncpa [#allocation12], 0 }
   0x7   :  { %22 = vsyncpa [#allocation12 + $0x1], 0  ;;  %s1863_s21 = smov 0   ;;  %s1865_s22 = smov 0  }
   0x8   :  { %s1867_s23 = smov 0   ;;  %s1869_s24 = smov 0  }
   0x9   :  { %s1871_s25 = smov 0   ;;  %s1873_s26 = smov 0  }
   0xa LB: > { %2242 = sst [smem:[#allocation19_spill]] %s1792_s21  ;;  %s1894_s27 = sadd.s32 4294967295, %s1812_s26   ;;  %s1812_s26 = sphi %s1873_s26, %s28_s26   ;;  %s1808_s25 = sphi %s1871_s25, %s2269_s25   ;;  %s1804_s24 = sphi %s1869_s24, %s2268_s24   ;;  %s1800_s23 = sphi %s1867_s23, %s2267_s23   ;;  %s1796_s22 = sphi %s1865_s22, %s2266_s22   ;;  %s1792_s21 = sphi %s1863_s21, %s2265_s21  }
   0xb   : > { %s2235_s28 = sadd.s32 4294967294, %s1812_s26   ;;  %p60_p0 = scmp.ne.s32.totalorder %s1796_s22, %s1792_s21 }
   0xc   : > { %p2234_p1 = scmp.eq.s32.totalorder %s1894_s27, 0  ;;  %p155_p3 = scmp.eq.s32.totalorder %s2235_s28, 1 }
   0xd   : > { %p1195_p5 = scmp.ge.s32.totalorder %s1812_s26, 1  ;;  %p218_p7 = scmp.lt.s32.totalorder %s1812_s26, 3 }
   0xe   : > { %p1905_p4 = por %p2234_p1, %p60_p0  ;;  %p1910_p6 = por %p155_p3, %p60_p0 }
   0xf   : > { %p1915_p8 = pnand %p1195_p5, %p218_p7  ;;  %s1814_s8 = smov [#allocation5]  }
  0x10   : > { %s2243_s29 = scalar_select %p1905_p4, 1, 0 }
  0x11   : > { %s2244_s30 = scalar_select %p1910_p6, 1, 0 }
  0x12   : > { %s2246_s7 = scalar_select %p1915_p8, 1, 0 }
  0x13   : > { %2245 = sst [smem:[#allocation20_spill]] %s2244_s30  ;;  %s230_s9 = sshll.u32 %s1814_s8, 4  ;;  %s1919_s9 = int_to_ptr.vmem [resolvable:$true] %s230_s9 }
  0x14   : > { %p1416_p9 = pneg %p1915_p8  ;;  %s1815_s11 = smov [#allocation7]  }
  0x15   : > { %s244_s12 = sshll.u32 %s1815_s11, 4  ;;  %s1816_s13 = smov [#allocation8]   ;;  %s1930_s12 = int_to_ptr.vmem [resolvable:$true] %s244_s12 }
  0x16   : > { %p1926_p11 = pnand %p1416_p9, %p2234_p1  ;;  %s1932_s14 = sshll.u32 %s1816_s13, 4  ;;  %s255_s14 = int_to_ptr.vmem [resolvable:$true] %s1932_s14 }
  0x17   : > { %s1548_s17 = scalar_lea.hbm %s2228_s1, 4096 }
  0x18   : > { %p1549_p12 = scmp.ne.s32.totalorder %s2228_s1, %s1548_s17  ;;  %p1942_p13 = pneg %p1926_p11 }
  0x19   : > { %p1555_p5 = scmp.lt.u32.totalorder %s1548_s17, %s2228_s1 }
  0x1a   : > { %p1551_p0 = pnand %p1942_p13, %p1549_p12 }
  0x1c   : > { %p1552_p3 = pneg %p1551_p0 }
  0x1e   : > { %p1557_p7 = pnand %p1555_p5, %p1552_p3 }
  0x20   : > { %1560 = shalt.err (!%p1557_p7)
}
  0x21   : > { %s1561_s13 = scalar_lea.vmem %s1919_s9, 4096  ;;  %p1569_p2 = scmp.lt.s32.totalorder %s1919_s9, %s1919_s9 }
  0x22   : > { %p1562_p9 = scmp.ne.s32.totalorder %s1919_s9, %s1561_s13  ;;  %p1570_p6 = scmp.lt.s32.totalorder %s1561_s13, %s1561_s13 }
  0x24   : > { %p1564_p10 = pnand %p1562_p9, %p1942_p13  ;;  %p1571_p12 = por %p1570_p6, %p1569_p2 }
  0x26   : > { %p1565_p1 = pneg %p1564_p10 }
  0x28   : > { %p1572_p0 = pnand %p1571_p12, %p1565_p1 }
  0x2a   : > { %1575 = shalt.err (!%p1572_p0)
}
  0x2b   : > { %s2240_s15 = smov 64   ;;  %s2241_s16 = smov 4  }
  0x2c   : > { %1419 = dma.hbm_to_vmem [thread:$0]  (!%p1926_p11), %s2228_s1, 4096, %s1919_s9, [#allocation6], %s2240_s15, %s2240_s15, %s2241_s16  }
  0x2d   : > { %s1576_s11 = scalar_lea.hbm %s2229_s2, 16 }
  0x2e   : > { %p1577_p1 = scmp.ne.s32.totalorder %s2229_s2, %s1576_s11  ;;  %p1583_p10 = scmp.lt.u32.totalorder %s1576_s11, %s2229_s2 }
  0x30   : > { %p1579_p2 = pnand %p1577_p1, %p1942_p13 }
  0x32   : > { %p1580_p6 = pneg %p1579_p2 }
  0x34   : > { %p1585_p3 = pnand %p1583_p10, %p1580_p6 }
  0x36   : > { %1588 = shalt.err (!%p1585_p3)
}
  0x37   : > { %s1589_s9 = scalar_lea.vmem %s1930_s12, 16  ;;  %s1596_s28 = scalar_lea.vmem %s1930_s12, 32 }
  0x38   : > { %p1590_p5 = scmp.ne.s32.totalorder %s1930_s12, %s1589_s9  ;;  %p1597_p12 = scmp.lt.s32.totalorder %s1930_s12, %s1930_s12 }
  0x39   : > { %p1598_p0 = scmp.lt.s32.totalorder %s1596_s28, %s1589_s9 }
  0x3a   : > { %p1592_p7 = pnand %p1590_p5, %p1942_p13 }
  0x3b   : > { %p1599_p1 = por %p1598_p0, %p1597_p12 }
  0x3c   : > { %p1593_p9 = pneg %p1592_p7 }
  0x3e   : > { %p1600_p2 = pnand %p1599_p1, %p1593_p9 }
  0x40   : > { %1603 = shalt.err (!%p1600_p2)
}
  0x41   : > { %1422 = dma.hbm_to_vmem [thread:$0]  (!%p1926_p11), %s2229_s2, 16, %s1930_s12, [#allocation6]  }
  0x42   : > { %s1604_s19 = scalar_lea.hbm %s2230_s3, 384 }
  0x43   : > { %p1605_p6 = scmp.ne.s32.totalorder %s2230_s3, %s1604_s19  ;;  %p1611_p5 = scmp.lt.u32.totalorder %s1604_s19, %s2230_s3 }
  0x45   : > { %p1607_p10 = pnand %p1605_p6, %p1942_p13 }
  0x47   : > { %p1608_p3 = pneg %p1607_p10 }
  0x49   : > { %p1613_p7 = pnand %p1611_p5, %p1608_p3 }
  0x4b   : > { %1616 = shalt.err (!%p1613_p7)
}
  0x4c   : > { %s1617_s28 = scalar_lea.vmem %s255_s14, 384  ;;  %p1625_p1 = scmp.lt.s32.totalorder %s255_s14, %s255_s14 }
  0x4d   : > { %p1618_p9 = scmp.ne.s32.totalorder %s255_s14, %s1617_s28  ;;  %p1626_p2 = scmp.lt.s32.totalorder %s1617_s28, %s1617_s28 }
  0x4f   : > { %p1620_p12 = pnand %p1618_p9, %p1942_p13  ;;  %p1627_p4 = por %p1626_p2, %p1625_p1 }
  0x51   : > { %p1621_p0 = pneg %p1620_p12 }
  0x53   : > { %p1628_p8 = pnand %p1627_p4, %p1621_p0 }
  0x55   : > { %1631 = shalt.err (!%p1628_p8)
}
  0x56   : > { %s1819_s12 = smov 128   ;;  %s1820_s20 = smov 8  }
  0x57   : > { %1425 = dma.hbm_to_vmem [thread:$0]  (!%p1926_p11), %s2230_s3, 384, %s255_s14, [#allocation9], %s1819_s12, %s1819_s12, %s1820_s20  }
  0x58   : > { %s47_s17 = sadd.s32 1, %s1800_s23  ;;  %s40_s18 = sadd.s32 1, %s1808_s25 }
  0x59   : > { %p54_p4 = scmp.ne.s32.totalorder %s1800_s23, %s1796_s22  ;;  %p42_p8 = scmp.ge.s32.totalorder %s40_s18, 2 }
  0x5a   : > { %p55_p13 = scmp.eq.s32.totalorder %s1812_s26, 0  ;;  %p2249_p6 = scmp.eq.s32.totalorder %s1894_s27, 1 }
  0x5b   : > { %p1443_p3 = scmp.lt.s32.totalorder %s1812_s26, 2  ;;  %s2271_s18 = smov (%p42_p8, %s40_s18), 0 }
  0x5c   : > { %p2016_p10 = por %p2249_p6, %p54_p4  ;;  %p56_p5 = por %p55_p13, %p54_p4 }
  0x5d   : > { %s268_s10 = sand.u32 1, %s1800_s23   ;;  %s44_s8 = ssub.s32 %s1808_s25, %s2271_s18 }
  0x5e   : > { %p45_p7 = scmp.eq.s32.totalorder %s44_s8, 0  ;;  %s1391_s14 = smul.u32 24, %s268_s10 }
  0x5f   : > { %s1392_s11 = smul.u32 384, %s1808_s25  ;;  %p2027_p11 = pnand %p1443_p3, %p56_p5 }
  0x60   : > { %s2032_s9 = scalar_select %p45_p7, %s1800_s23, %s47_s17  }
  0x61   : > { %s2037_s20 = scalar_lea.hbm %s2227_s0, %s1392_s11  ;;  %s272_s21 = scalar_lea.vmem [#allocation2], %s1391_s14 }
  0x62   : > { %s279_s30 = sshll.u32 %s272_s21, 4  ;;  %s2041_s8 = scalar_lea.sflag [#allocation3], %s268_s10  ;;  %s2039_s30 = int_to_ptr.vmem [resolvable:$true] %s279_s30 }
  0x63   : > { %s1632_s15 = scalar_lea.hbm %s2037_s20, 384  ;;  %p1634_p12 = pneg %p2027_p11 }
  0x64   : > { %p1633_p9 = scmp.ne.s32.totalorder %s2037_s20, %s1632_s15  ;;  %s1637_s28 = scalar_lea.hbm %s2227_s0, 768 }
  0x65   : > { %p1638_p2 = scmp.lt.u32.totalorder %s2037_s20, %s2227_s0  ;;  %p1639_p4 = scmp.lt.u32.totalorder %s1637_s28, %s1632_s15 }
  0x66   : > { %p1635_p0 = pnand %p1634_p12, %p1633_p9  ;;  %p1641_p13 = scmp.lt.u32.totalorder %s1632_s15, %s2037_s20 }
  0x67   : > { %p1640_p8 = por %p1639_p4, %p1638_p2 }
  0x68   : > { %p1636_p1 = pneg %p1635_p0 }
  0x69   : > { %p1642_p6 = por %p1641_p13, %p1640_p8 }
  0x6b   : > { %p1643_p3 = pnand %p1642_p6, %p1636_p1 }
  0x6d   : > { %1646 = shalt.err (!%p1643_p3)
}
  0x6e   : > { %s1647_s10 = scalar_lea.vmem %s2039_s30, 384  ;;  %s1821_s14 = smov [#allocation2]  }
  0x6f   : > { %p1648_p5 = scmp.ne.s32.totalorder %s2039_s30, %s1647_s10  ;;  %s1652_s21 = sshll.u32 %s1821_s14, 4  ;;  %s1653_s21 = int_to_ptr.vmem [resolvable:$false] %s1652_s21 }
  0x70   : > { %s1654_s16 = scalar_lea.vmem %s1653_s21, 768  ;;  %p1655_p0 = scmp.lt.s32.totalorder %s2039_s30, %s1653_s21 }
  0x71   : > { %p1650_p7 = pnand %p1648_p5, %p1634_p12  ;;  %p1656_p2 = scmp.lt.s32.totalorder %s1654_s16, %s1647_s10 }
  0x73   : > { %p1651_p9 = pneg %p1650_p7  ;;  %p1657_p4 = por %p1656_p2, %p1655_p0 }
  0x75   : > { %p1658_p8 = pnand %p1657_p4, %p1651_p9 }
  0x77   : > { %1661 = shalt.err (!%p1658_p8)
}
  0x78   : > { %s2252_s15 = smov 4   ;;  %s2253_s17 = smov 64  }
  0x79   : > { %1429 = dma.hbm_to_vmem [thread:$0]  (!%p2027_p11), %s2037_s20, 384, %s2039_s30, %s2041_s8, %s2253_s17, %s2253_s17, %s2252_s15  }
  0x7a   : > { %p2254_p12 = scmp.ne.s32.totalorder %s2246_s7, 0 }
  0x7b   : > { %s2075_s11 = sand.u32 (!%p2254_p12), 1, %s1796_s22   ;;  %p2255_p1 = scmp.ne.s32.totalorder (!%p2254_p12), %s2243_s29, 0 }
  0x7c   : > { %291 = sbr.rel (%p2254_p12) target bundleno = 491 (0x1eb), region = 36  ;;  %s294_s12 = scalar_lea.sflag (!%p2254_p12), [#allocation3], %s2075_s11 }
  0x7d   : > { %s1393_s28 = smul.u32 (!%p2254_p12), 24, %s2075_s11 }
  0x7f   : > { %s2079_s10 = scalar_lea.vmem (!%p2254_p12), [#allocation2], %s1393_s28 }
  0x83   : > { %1771 = dma.done.wait (%p2255_p1), %s294_s12, 384  }
  0x84   : > { %1773 = vsyncadd (%p2255_p1), %s294_s12, 4294966912  ;;  %p2256_p11 = scmp.eq.s32.totalorder %s1894_s27, 0 }
  0x86   : > { %1775 = dma.done.wait (%p2256_p11), [#allocation6], 4112   ;;  %p2257_p13 = pmov %p2256_p11 }
  0x87   : > { %p2258_p6 = pmov %p2256_p11 }
  0x88   : > { %1777 = vsyncadd (%p2257_p13), [#allocation6], 4294963184 }
  0x89   : > { %1779 = dma.done.wait (%p2258_p6), [#allocation9], 384   ;;  %p2259_p3 = pmov %p2258_p6 }
  0x8a   : > { %v1822_v0 = vmov 0   ;;  %v1508_v1 = vld [vmem:[#allocation5 + $0x40] sm:$0xff]   ;;  %v1510_v3 = vld [vmem:[#allocation5 + $0x48] sm:$0xff]   ;;  %v1512_v5 = vld [vmem:[#allocation5 + $0x50] sm:$0xff]   ;;  %s1394_s29 = smul.u32 12, %s2075_s11  ;;  %s966_s21 = scalar_lea.sflag [#allocation4], %s2075_s11 }
  0x8b   : > { %1781 = vsyncadd (%p2259_p3), [#allocation9], 4294966912  ;;  %1506 = vset.pattern.permute.xlu0 %v1822_v0  ;;  %1507 = vset.pattern.permute.xlu1 %v1822_v0  ;;  %v1509_v2 = vld [vmem:[#allocation5] sm:$0xff]   ;;  %v1511_v4 = vld [vmem:[#allocation5 + $0x8] sm:$0xff]   ;;  %s1395_s20 = smul.u32 192, %s1804_s24  ;;  %s1823_s15 = smov [#allocation10]  }
  0x8c   : > { %1311 = vmatprep.subr.bf16.mxu0 %v1508_v1  ;;  %1331 = vmatprep.subr.bf16.mxu1 %v1509_v2  ;;  %v1513_v6 = vld [vmem:[#allocation5 + $0x10] sm:$0xff]   ;;  %v1514_v7 = vld [vmem:[#allocation5 + $0x58] sm:$0xff]   ;;  %v1516_v9 = vld [vmem:[#allocation5 + $0x60] sm:$0xff]   ;;  %s333_s7 = scalar_lea.vmem [#allocation10], %s1394_s29  ;;  %s1666_s17 = sshll.u32 %s1823_s15, 4  ;;  %s1667_s17 = int_to_ptr.vmem [resolvable:$false] %s1666_s17 }
  0x8d   : > { %1312 = vmatpush3.bf16.msra.mxu0 %v1508_v1  ;;  %1332 = vmatpush3.bf16.msra.mxu1 %v1509_v2  ;;  %v1515_v8 = vld [vmem:[#allocation5 + $0x18] sm:$0xff]   ;;  %v1517_v10 = vld [vmem:[#allocation5 + $0x20] sm:$0xff]   ;;  %v1518_v11 = vld [vmem:[#allocation5 + $0x68] sm:$0xff]   ;;  %s989_s13 = sshll.u32 %s333_s7, 4  ;;  %s2108_s14 = scalar_lea.hbm %s2231_s4, %s1395_s20  ;;  %s2103_s13 = int_to_ptr.vmem [resolvable:$true] %s989_s13 }
  0x8e   : > { %1313 = vmatprep.subr.bf16.mxu0 %v1510_v3  ;;  %1333 = vmatprep.subr.bf16.mxu1 %v1511_v4  ;;  %v1519_v12 = vld [vmem:[#allocation5 + $0x28] sm:$0xff]   ;;  %v1520_v15 = vld [vmem:[#allocation5 + $0x70] sm:$0xff]   ;;  %v1522_v17 = vld [vmem:[#allocation5 + $0x78] sm:$0xff]   ;;  %s1662_s16 = scalar_lea.vmem %s2103_s13, 192  ;;  %s1668_s28 = scalar_lea.vmem %s1667_s17, 384 }
  0x8f   : > { %v1524_v13 = vld [vmem:[%s2079_s10 + $0x4] sm:$0xff]   ;;  %v1528_v19 = vld [vmem:[#allocation5 + $0x80] sm:$0xff]   ;;  %v1526_v21 = vld [vmem:[%s2079_s10 + $0xc] ss:$0 sps:$4 sm:$0xff]   ;;  %p1663_p5 = scmp.ne.s32.totalorder %s2103_s13, %s1662_s16  ;;  %p1669_p0 = scmp.lt.s32.totalorder %s2103_s13, %s1667_s17 }
  0x90   : > { %v1525_v14 = vld [vmem:[%s2079_s10] sm:$0xff]   ;;  %1327 = vmatprep.mubr.bf16.mxu0 %v1524_v13  ;;  %v1523_v18 = vld [vmem:[#allocation5 + $0x38] sm:$0xff]   ;;  %v1529_v20 = vld [vmem:[#allocation5 + $0xc0] sm:$0xff]   ;;  %p1670_p2 = scmp.lt.s32.totalorder %s1668_s28, %s1662_s16 }
  0x91   : > { %1314 = vmatpush3.bf16.msra.mxu0 %v1510_v3  ;;  %1334 = vmatpush3.bf16.msra.mxu1 %v1511_v4  ;;  %v1521_v16 = vld [vmem:[#allocation5 + $0x30] sm:$0xff]   ;;  %v1530_v23 = vld [vmem:[#allocation5 + $0x88] sm:$0xff]   ;;  %v1534_v31 = vld [vmem:[#allocation5 + $0x98] sm:$0xff]   ;;  %p1664_p7 = pnand %p1663_p5, %p2016_p10 }
  0x92   : > { %1315 = vmatprep.subr.bf16.mxu0 %v1512_v5  ;;  %1335 = vmatprep.subr.bf16.mxu1 %v1513_v6  ;;  %v1527_v22 = vld [vmem:[%s2079_s10 + $0x8] ss:$0 sps:$4 sm:$0xff]   ;;  %v1531_v24 = vld [vmem:[#allocation5 + $0xc8] sm:$0xff]   ;;  %v1545_v28 = vld [vmem:[%s2079_s10 + $0xc] sm:$0xff]   ;;  %p1671_p4 = por %p1670_p2, %p1669_p0 }
  0x93   : > { %1347 = vmatprep.mubr.bf16.mxu1 %v1525_v14  ;;  %v1532_v25 = vld [vmem:[#allocation5 + $0x90] sm:$0xff]   ;;  %v898_v29 = vld [vmem:[#allocation8] sm:$0xff]  ;;  %v1535_v32 = vld [vmem:[#allocation5 + $0xd8] sm:$0xff]   ;;  %p1665_p9 = pneg %p1664_p7 }
  0x94   : > { %v1544_v26 = vld [vmem:[%s2079_s10 + $0x8] sm:$0xff]   ;;  %903 = vperm.xlu0 %1506, %v898_v29   ;;  %v1536_v34 = vld [vmem:[#allocation5 + $0xa0] sm:$0xff]   ;;  %v1538_v36 = vld [vmem:[#allocation5 + $0xa8] sm:$0xff]  }
  0x95   : > { %1316 = vmatpush3.bf16.msra.mxu0 %v1512_v5  ;;  %1336 = vmatpush3.bf16.msra.mxu1 %v1513_v6  ;;  %v1533_v27 = vld [vmem:[#allocation5 + $0xd0] sm:$0xff]   ;;  %v1537_v35 = vld [vmem:[#allocation5 + $0xe0] sm:$0xff]   ;;  %v1539_v37 = vld [vmem:[#allocation5 + $0xe8] sm:$0xff]   ;;  %p1672_p8 = pnand %p1671_p4, %p1665_p9 }
  0x96   : > { %1317 = vmatprep.subr.bf16.mxu0 %v1514_v7  ;;  %1337 = vmatprep.subr.bf16.mxu1 %v1515_v8  ;;  %v900_v30 = vld [vmem:[#allocation8 + $0x10] sm:$0xff]  ;;  %v899_v33 = vld [vmem:[#allocation8 + $0x8] sm:$0xff]  ;;  %v1547_v43 = vld [vmem:[%s2079_s10 + $0x14] ss:$0 sps:$4 sm:$0xff]  }
  0x97   : > { %913 = vperm.xlu1 %1507, %v900_v30   ;;  %v1540_v38 = vld [vmem:[#allocation5 + $0xb0] sm:$0xff]   ;;  %v1542_v40 = vld [vmem:[#allocation5 + $0xb8] sm:$0xff]   ;;  %v1254_v62 = vld [vmem:[#allocation7] ss:$0 sm:$0xff] }
  0x98   : > { %908 = vperm.xlu0 %1506, %v899_v33   ;;  %v1541_v39 = vld [vmem:[#allocation5 + $0xf0] sm:$0xff]   ;;  %v1543_v41 = vld [vmem:[#allocation5 + $0xf8] sm:$0xff]  }
  0x99   : > { %1318 = vmatpush3.bf16.msra.mxu0 %v1514_v7  ;;  %1338 = vmatpush3.bf16.msra.mxu1 %v1515_v8  ;;  %v1546_v42 = vld [vmem:[%s2079_s10 + $0x10] ss:$0 sps:$4 sm:$0xff]  }
  0x9a   : > { %1319 = vmatprep.subr.bf16.mxu0 %v1516_v9  ;;  %1339 = vmatprep.subr.bf16.mxu1 %v1517_v10 }
  0x9d   : > { %1320 = vmatpush3.bf16.msra.mxu0 %v1516_v9  ;;  %1340 = vmatpush3.bf16.msra.mxu1 %v1517_v10 }
  0x9e   : > { %1321 = vmatprep.subr.bf16.mxu0 %v1518_v11  ;;  %1341 = vmatprep.subr.bf16.mxu1 %v1519_v12 }
  0xa1   : > { %1322 = vmatpush3.bf16.msra.mxu0 %v1518_v11  ;;  %1342 = vmatpush3.bf16.msra.mxu1 %v1519_v12 }
  0xa2   : > { %1323 = vmatprep.subr.bf16.mxu0 %v1520_v15  ;;  %1343 = vmatprep.subr.bf16.mxu1 %v1521_v16 }
  0xa5   : > { %1324 = vmatpush3.bf16.msra.mxu0 %v1520_v15  ;;  %1344 = vmatpush3.bf16.msra.mxu1 %v1521_v16 }
  0xa6   : > { %1325 = vmatprep.subr.bf16.mxu0 %v1522_v17  ;;  %1345 = vmatprep.subr.bf16.mxu1 %v1523_v18 }
  0xa9   : > { %1326 = vmatpush3.bf16.msra.mxu0 %v1522_v17  ;;  %1346 = vmatpush3.bf16.msra.mxu1 %v1523_v18 }
  0xaa   : > { %1351 = vmatprep.subr.bf16.mxu0 %v1528_v19  ;;  %1371 = vmatprep.subr.bf16.mxu1 %v1529_v20 }
  0xac   : > { %1328 = vmatmul.mubr.bf16.vlgmr.msra.gmra.mrb[0].mxu0 %v1526_v21  ;;  %1348 = vmatmul.mubr.bf16.vlgmr.msra.gmra.mrb[0].mxu1 %v1527_v22 }
  0xad   : > { %1352 = vmatpush3.bf16.msra.mxu0 %v1528_v19  ;;  %1372 = vmatpush3.bf16.msra.mxu1 %v1529_v20 }
  0xae   : > { %1353 = vmatprep.subr.bf16.mxu0 %v1530_v23  ;;  %1373 = vmatprep.subr.bf16.mxu1 %v1531_v24 }
  0xaf   : > { %1367 = vmatprep.mubr.bf16.mxu0 %v1544_v26  ;;  %1387 = vmatprep.mubr.bf16.mxu1 %v1545_v28 }
  0xb1   : > { %1354 = vmatpush3.bf16.msra.mxu0 %v1530_v23  ;;  %1374 = vmatpush3.bf16.msra.mxu1 %v1531_v24 }
  0xb2   : > { %1355 = vmatprep.subr.bf16.mxu0 %v1532_v25  ;;  %1375 = vmatprep.subr.bf16.mxu1 %v1533_v27 }
  0xb5   : > { %1356 = vmatpush3.bf16.msra.mxu0 %v1532_v25  ;;  %1376 = vmatpush3.bf16.msra.mxu1 %v1533_v27 }
  0xb6   : > { %1357 = vmatprep.subr.bf16.mxu0 %v1534_v31  ;;  %1377 = vmatprep.subr.bf16.mxu1 %v1535_v32 }
  0xb9   : > { %1358 = vmatpush3.bf16.msra.mxu0 %v1534_v31  ;;  %1378 = vmatpush3.bf16.msra.mxu1 %v1535_v32 }
  0xba   : > { %1359 = vmatprep.subr.bf16.mxu0 %v1536_v34  ;;  %1379 = vmatprep.subr.bf16.mxu1 %v1537_v35 }
  0xbd   : > { %1360 = vmatpush3.bf16.msra.mxu0 %v1536_v34  ;;  %1380 = vmatpush3.bf16.msra.mxu1 %v1537_v35 }
  0xbe   : > { %1361 = vmatprep.subr.bf16.mxu0 %v1538_v36  ;;  %1381 = vmatprep.subr.bf16.mxu1 %v1539_v37 }
  0xc1   : > { %1362 = vmatpush3.bf16.msra.mxu0 %v1538_v36  ;;  %1382 = vmatpush3.bf16.msra.mxu1 %v1539_v37 }
  0xc2   : > { %1363 = vmatprep.subr.bf16.mxu0 %v1540_v38  ;;  %1383 = vmatprep.subr.bf16.mxu1 %v1541_v39 }
  0xc5   : > { %1364 = vmatpush3.bf16.msra.mxu0 %v1540_v38  ;;  %1384 = vmatpush3.bf16.msra.mxu1 %v1541_v39 }
  0xc6   : > { %1365 = vmatprep.subr.bf16.mxu0 %v1542_v40  ;;  %1385 = vmatprep.subr.bf16.mxu1 %v1543_v41 }
  0xc9   : > { %1366 = vmatpush3.bf16.msra.mxu0 %v1542_v40  ;;  %1386 = vmatpush3.bf16.msra.mxu1 %v1543_v41 }
  0xcc   : > { %1368 = vmatmul.mubr.bf16.vlgmr.msra.gmra.mrb[4].mxu0 %v1546_v42  ;;  %1388 = vmatmul.mubr.bf16.vlgmr.msra.gmra.mrb[4].mxu1 %v1547_v43 }
 0x113   : > { %v904_v56 = vpop.permute.xlu0 %903 }
 0x116   : > { %v914_v9 = vpop.permute.xlu1 %913 }
 0x117   : > { %v909_v13 = vpop.permute.xlu0 %908 }
 0x17f   : > { %v1329_v44 = vpop.f32.mrb[0].mxu0  ;;  %v1349_v45 = vpop.f32.mrb[0].mxu1 }
 0x180   : > { %v489_v46 = vpop.f32.mrb[1].mxu0  ;;  %v604_v47 = vadd.f32 %v1349_v45, %v1329_v44  ;;  %v595_v48 = vpop.f32.mrb[1].mxu1 }
 0x181   : > { %v1330_v49 = vpop.f32.mrb[2].mxu0  ;;  %v596_v50 = vadd.f32 %v595_v48, %v489_v46  ;;  %v1350_v51 = vpop.f32.mrb[2].mxu1 }
 0x182   : > { %v492_v52 = vpop.f32.mrb[3].mxu0  ;;  %v598_v53 = vpop.f32.mrb[3].mxu1 }
 0x183   : > { %v599_v54 = vadd.f32 %v598_v53, %v492_v52 }
 0x19f   : > { %v1369_v55 = vpop.f32.mrb[4].mxu0  ;;  %v1389_v58 = vpop.f32.mrb[4].mxu1 }
 0x1a0   : > { %v742_v57 = vadd.f32 %v1369_v55, %v604_v47  ;;  %v726_v59 = vpop.f32.mrb[5].mxu0  ;;  %v860_v61 = vpop.f32.mrb[5].mxu1 }
 0x1a1   : > { %v740_v60 = vadd.f32 %v726_v59, %v596_v50  ;;  %v1370_v63 = vpop.f32.mrb[6].mxu0  ;;  %v1390_v1 = vpop.f32.mrb[6].mxu1 }
 0x1a2   : > { %v876_v0 = vadd.f32 %v1389_v58, %v742_v57  ;;  %v729_v2 = vpop.f32.mrb[7].mxu0  ;;  %v863_v5 = vpop.f32.mrb[7].mxu1 }
 0x1a3   : > { %v874_v3 = vadd.f32 %v860_v61, %v740_v60  ;;  %v741_v4 = vadd.f32 %v729_v2, %v599_v54 }
 0x1a4   : > { %v886_v6 = vadd.f32 %v1254_v62, %v876_v0 }
 0x1a5   : > { %v884_v7 = vadd.f32 %v1254_v62, %v874_v3  ;;  %v875_v8 = vadd.f32 %v863_v5, %v741_v4 }
 0x1a6   : > { %v1265_v10 = vpack.c.bf16 %v886_v6, %v886_v6  ;;  %v918_v16 = vmul.f32 %v914_v9, %v886_v6 }
 0x1a7   : > { %v885_v11 = vadd.f32 %v1254_v62, %v875_v8  ;;  %v916_v12 = vmul.f32 %v904_v56, %v884_v7 }
 0x1a8   : > { %964 = vst [vmem:[%s333_s7 + $0x8] sm:$0xf] %v1265_v10 }
 0x1a9   : > { %v917_v14 = vmul.f32 %v909_v13, %v885_v11  ;;  %v1269_v15 = vpack.c.bf16 %v885_v11, %v884_v7  ;;  %v937_v18 = vmul.f32 %v916_v12, %v916_v12 }
 0x1ab   : > { %v928_v17 = vadd.f32 %v917_v14, %v916_v12  ;;  %v938_v19 = vmul.f32 %v917_v14, %v917_v14  ;;  %1270 = vst [vmem:[%s333_s7] sm:$0xff] %v1269_v15  }
 0x1ac   : > { %1675 = shalt.err (!%p1672_p8)
}
 0x1ad   : > { %s1676_s12 = scalar_lea.hbm %s2108_s14, 192  ;;  %s1680_s7 = scalar_lea.hbm %s2231_s4, 384 }
 0x1ae   : > { %p1677_p12 = scmp.ne.s32.totalorder %s2108_s14, %s1676_s12  ;;  %p1681_p13 = scmp.lt.u32.totalorder %s2108_s14, %s2231_s4 }
 0x1af   : > { %p1682_p6 = scmp.lt.u32.totalorder %s1680_s7, %s1676_s12  ;;  %p1684_p5 = scmp.lt.u32.totalorder %s1676_s12, %s2108_s14 }
 0x1b0   : > { %p1678_p1 = pnand %p1677_p12, %p2016_p10 }
 0x1b1   : > { %p1683_p3 = por %p1682_p6, %p1681_p13 }
 0x1b2   : > { %p1679_p11 = pneg %p1678_p1 }
 0x1b3   : > { %p1685_p7 = por %p1684_p5, %p1683_p3 }
 0x1b5   : > { %p1686_p9 = pnand %p1685_p7, %p1679_p11 }
 0x1b7   : > { %1689 = shalt.err (!%p1686_p9)
}
 0x1b8   : > { %s1824_s8 = smov 64   ;;  %s1825_s16 = smov 4   ;;  %v940_v20 = vadd.f32 %v938_v19, %v937_v18  ;;  %v929_v21 = vadd.f32 %v928_v17, %v918_v16  ;;  %v939_v22 = vmul.f32 %v918_v16, %v918_v16 }
 0x1b9   : > { %1410 = dma.vmem_to_hbm [thread:$0]  (%p2016_p10), %s2103_s13, 192, %s2108_s14, %s966_s21, %s1824_s8, %s1824_s8, %s1825_s16  }
 0x1ba   : > { %v930_v23 = vrot.slane %v929_v21, 4  ;;  %v941_v24 = vadd.f32 %v940_v20, %v939_v22  ;;  %s970_s15 = sand.u32 1, %s1894_s27   ;;  %s1259_s17 = sshll.u32 %s1804_s24, 4 }
 0x1bb   : > { %s339_s28 = scalar_lea.vmem [#allocation11], %s2075_s11  ;;  %s345_s13 = scalar_lea.vmem [#allocation13], %s2075_s11 }
 0x1bc   : > { %v931_v25 = vadd.f32 %v930_v23, %v929_v21  ;;  %v942_v26 = vrot.slane %v941_v24, 4  ;;  %s1006_s12 = sshll.u32 %s339_s28, 4  ;;  %s1020_s14 = sshll.u32 %s345_s13, 4  ;;  %s2145_s12 = int_to_ptr.vmem [resolvable:$true] %s1006_s12  ;;  %s2152_s14 = int_to_ptr.vmem [resolvable:$true] %s1020_s14 }
 0x1bd   : > { %s2143_s29 = scalar_lea.hbm %s2232_s5, %s1259_s17  ;;  %s2150_s7 = scalar_lea.hbm %s2233_s6, %s1259_s17 }
 0x1be   : > { %v932_v27 = vrot.slane %v931_v25, 2  ;;  %v943_v28 = vadd.f32 %v942_v26, %v941_v24  ;;  %s2154_s20 = scalar_lea.sflag [#allocation12], %s970_s15  ;;  %s1690_s30 = scalar_lea.vmem %s2145_s12, 16 }
 0x1bf   : > { %p1691_p0 = scmp.ne.s32.totalorder %s2145_s12, %s1690_s30  ;;  %s1826_s8 = smov [#allocation11]  }
 0x1c0   : > { %v933_v29 = vadd.f32 %v932_v27, %v931_v25  ;;  %v944_v30 = vrot.slane %v943_v28, 2  ;;  %s1694_s16 = sshll.u32 %s1826_s8, 4  ;;  %s1695_s16 = int_to_ptr.vmem [resolvable:$false] %s1694_s16 }
 0x1c1   : > { %p1692_p2 = pnand %p1691_p0, %p2016_p10  ;;  %s1696_s21 = scalar_lea.vmem %s1695_s16, 32 }
 0x1c2   : > { %v934_v31 = vrot.slane %v933_v29, 1  ;;  %v945_v32 = vadd.f32 %v944_v30, %v943_v28  ;;  %p1697_p8 = scmp.lt.s32.totalorder %s2145_s12, %s1695_s16  ;;  %p1698_p12 = scmp.lt.s32.totalorder %s1696_s21, %s1690_s30 }
 0x1c3   : > { %p1693_p4 = pneg %p1692_p2 }
 0x1c4   : > { %v935_v33 = vadd.f32 %v934_v31, %v933_v29  ;;  %v946_v34 = vrot.slane %v945_v32, 1  ;;  %p1699_p1 = por %p1698_p12, %p1697_p8 }
 0x1c6   : > { %v947_v35 = vadd.f32 %v946_v34, %v945_v32  ;;  %936 = vst [vmem:[%s339_s28] sm:$0x1] %v935_v33  ;;  %p1700_p11 = pnand %p1699_p1, %p1693_p4 }
 0x1c8   : > { %1703 = shalt.err (!%p1700_p11)
}
 0x1c9   : > { %s1704_s15 = scalar_lea.hbm %s2143_s29, 16  ;;  %s1708_s10 = scalar_lea.hbm %s2232_s5, 32 }
 0x1ca   : > { %p1705_p13 = scmp.ne.s32.totalorder %s2143_s29, %s1704_s15  ;;  %p1709_p5 = scmp.lt.u32.totalorder %s2143_s29, %s2232_s5 }
 0x1cb   : > { %p1710_p7 = scmp.lt.u32.totalorder %s1708_s10, %s1704_s15  ;;  %p1712_p0 = scmp.lt.u32.totalorder %s1704_s15, %s2143_s29 }
 0x1cc   : > { %p1706_p6 = pnand %p1705_p13, %p2016_p10 }
 0x1cd   : > { %p1711_p9 = por %p1710_p7, %p1709_p5 }
 0x1ce   : > { %p1707_p3 = pneg %p1706_p6 }
 0x1cf   : > { %p1713_p2 = por %p1712_p0, %p1711_p9 }
 0x1d1   : > { %p1714_p4 = pnand %p1713_p2, %p1707_p3 }
 0x1d3   : > { %1717 = shalt.err (!%p1714_p4)
}
 0x1d4   : > { %1411 = dma.vmem_to_hbm [thread:$0]  (%p2016_p10), %s2145_s12, 16, %s2143_s29, %s2154_s20   ;;  %948 = vst [vmem:[%s345_s13] sm:$0x1] %v947_v35 }
 0x1d5   : > { %s1718_s30 = scalar_lea.vmem %s2152_s14, 16  ;;  %s1827_s8 = smov [#allocation13]  }
 0x1d6   : > { %p1719_p8 = scmp.ne.s32.totalorder %s2152_s14, %s1718_s30  ;;  %s1722_s16 = sshll.u32 %s1827_s8, 4  ;;  %s1723_s16 = int_to_ptr.vmem [resolvable:$false] %s1722_s16 }
 0x1d7   : > { %s1724_s21 = scalar_lea.vmem %s1723_s16, 32  ;;  %p1725_p11 = scmp.lt.s32.totalorder %s2152_s14, %s1723_s16 }
 0x1d8   : > { %p1720_p12 = pnand %p1719_p8, %p2016_p10  ;;  %p1726_p13 = scmp.lt.s32.totalorder %s1724_s21, %s1718_s30 }
 0x1da   : > { %p1721_p1 = pneg %p1720_p12  ;;  %p1727_p6 = por %p1726_p13, %p1725_p11 }
 0x1dc   : > { %p1728_p3 = pnand %p1727_p6, %p1721_p1 }
 0x1de   : > { %1731 = shalt.err (!%p1728_p3)
}
 0x1df   : > { %s1732_s11 = scalar_lea.hbm %s2150_s7, 16  ;;  %s1736_s29 = scalar_lea.hbm %s2233_s6, 32 }
 0x1e0   : > { %p1733_p5 = scmp.ne.s32.totalorder %s2150_s7, %s1732_s11  ;;  %p1737_p0 = scmp.lt.u32.totalorder %s2150_s7, %s2233_s6 }
 0x1e1   : > { %p1738_p2 = scmp.lt.u32.totalorder %s1736_s29, %s1732_s11  ;;  %p1740_p8 = scmp.lt.u32.totalorder %s1732_s11, %s2150_s7 }
 0x1e2   : > { %p1734_p7 = pnand %p1733_p5, %p2016_p10 }
 0x1e3   : > { %p1739_p4 = por %p1738_p2, %p1737_p0 }
 0x1e4   : > { %p1735_p9 = pneg %p1734_p7 }
 0x1e5   : > { %p1741_p12 = por %p1740_p8, %p1739_p4 }
 0x1e7   : > { %p1742_p1 = pnand %p1741_p12, %p1735_p9 }
 0x1e9   : > { %1745 = shalt.err (!%p1742_p1)
}
 0x1ea   : > { %1412 = dma.vmem_to_hbm [thread:$0]  (%p2016_p10), %s2152_s14, 16, %s2150_s7, %s2154_s20  }
 0x1eb PF: > { %s2260_s28 = sld [smem:[#allocation19_spill]]  ;;  %s2261_s10 = sld [smem:[#allocation20_spill]] }
 0x1ec   : > { %p2263_p13 = scmp.ge.s32.totalorder %s1812_s26, 2 }
 0x1f1   : > { %s1032_s24 = sand.u32 1, %s2260_s28   ;;  %p2262_p11 = scmp.ne.s32.totalorder %s2261_s10, 0 }
 0x1f2   : > { %s1033_s27 = scalar_lea.sflag [#allocation4], %s1032_s24 }
 0x1f3   : > { %p1431_p6 = pnand %p2263_p13, %p2262_p11 }
 0x1f5   : > { %1783 = dma.done.wait (!%p1431_p6), %s1033_s27, 192  }
 0x1f6   : > { %1785 = vsyncadd (!%p1431_p6), %s1033_s27, 4294967104  ;;  %s2264_s30 = sadd.s32 4294967294, %s1812_s26  }
 0x1f7   : > { %s1041_s8 = sand.u32 1, %s2264_s30  }
 0x1f8   : > { %s1042_s16 = scalar_lea.sflag [#allocation12], %s1041_s8 }
 0x1f9   : > { %1787 = dma.done.wait (!%p1431_p6), %s1042_s16, 32  }
 0x1fa   : > { %1789 = vsyncadd (!%p1431_p6), %s1042_s16, 4294967264  ;;  %s28_s26 = sadd.s32 1, %s1812_s26   ;;  %s2265_s21 = smov %s1796_s22 }
 0x1fb   : > { %p25_p10 = scmp.ge.s32.totalorder %s28_s26, 4   ;;  %s2266_s22 = smov %s1800_s23 }
 0x1fc   : > { %s2267_s23 = smov %s2032_s9  ;;  %s2268_s24 = smov %s1808_s25 }
 0x1fd   : > { %s2269_s25 = smov %s2271_s18  ;;  %27 = sbr.rel (!%p25_p10) target bundleno = 10 (0xa), region = 132 }
 0x204   :  { %1054 = vsyncpa [#allocation3], 1 }
 0x205   :  { %1056 = vsyncpa [#allocation3 + $0x1], 1 }
 0x206   :  { %1057 = vsyncpa [#allocation6], 1 }
 0x207   :  { %1058 = vsyncpa [#allocation9], 1 }
 0x208   :  { %1059 = vsyncpa [#allocation4], 1 }
 0x209   :  { %1061 = vsyncpa [#allocation4 + $0x1], 1 }
 0x20a   :  { %1062 = vsyncpa [#allocation12], 1 }
 0x20b   :  { %1064 = vsyncpa [#allocation12 + $0x1], 1 }

// kernel: discriminator_forward.9
= control target key start
LH: loop header
LB: loop body
LE: loop exit
PB: predicated region body
PF: predicated region fallthrough
CT: control target
= control target key end

     0   :  { %8 = vsyncpa [#allocation3], 0  ;;  %s1990_s0 = inlined_call_operand.hbm [shape: bf16[2,40,256], index: 0, kind: input, shape index: {}]   ;;  %s1991_s1 = inlined_call_operand.hbm [shape: bf16[4,256,128], index: 1, kind: input, shape index: {}]   ;;  %s1992_s2 = inlined_call_operand.hbm [shape: f32[1,128], index: 2, kind: input, shape index: {}]   ;;  %s1993_s3 = inlined_call_operand.hbm [shape: bf16[2,16,128], index: 3, kind: output, shape index: {}]  }
   0x1   :  { %10 = vsyncpa [#allocation3 + $0x1], 0 }
   0x2   :  { %11 = vsyncpa [#allocation6], 0 }
   0x3   :  { %12 = vsyncpa [#allocation4], 0 }
   0x4   :  { %14 = vsyncpa [#allocation4 + $0x1], 0  ;;  %s1722_s12 = smov 0   ;;  %s1724_s13 = smov 0  }
   0x5   :  { %s1726_s14 = smov 0   ;;  %s1728_s15 = smov 0  }
   0x6   :  { %s1730_s16 = smov 0   ;;  %s1732_s17 = smov 0  }
   0x7 LB: > { %s1153_s18 = sadd.s32 4294967295, %s1690_s17   ;;  %s1154_s19 = sadd.s32 4294967294, %s1690_s17   ;;  %s1690_s17 = sphi %s1732_s17, %s20_s17   ;;  %s1686_s16 = sphi %s1730_s16, %s2015_s16   ;;  %s1682_s15 = sphi %s1728_s15, %s2014_s15   ;;  %s1678_s14 = sphi %s1726_s14, %s2013_s14   ;;  %s1674_s13 = sphi %s1724_s13, %s2012_s13   ;;  %s1670_s12 = sphi %s1722_s12, %s2011_s12  }
   0x8   : > { %p52_p0 = scmp.ne.s32.totalorder %s1674_s13, %s1670_s12  ;;  %p1756_p1 = scmp.eq.s32.totalorder %s1153_s18, 0 }
   0x9   : > { %p1760_p2 = scmp.eq.s32.totalorder %s1153_s18, 1  ;;  %p126_p3 = scmp.eq.s32.totalorder %s1154_s19, 1 }
   0xa   : > { %s1998_s20 = scalar_select %p1756_p1, 1, 0 }
   0xb   : > { %p1766_p4 = por %p1756_p1, %p52_p0  ;;  %p1155_p5 = scmp.ge.s32.totalorder %s1690_s17, 1 }
   0xc   : > { %p1771_p6 = por %p126_p3, %p52_p0  ;;  %p133_p7 = scmp.lt.s32.totalorder %s1690_s17, 3 }
   0xd   : > { %s2000_s22 = scalar_select %p1766_p4, 1, 0 }
   0xe   : > { %s2001_s23 = scalar_select %p1771_p6, 1, 0 }
   0xf   : > { %p1776_p8 = pnand %p1155_p5, %p133_p7  ;;  %s1692_s25 = smov [#allocation5]  }
  0x10   : > { %s145_s26 = sshll.u32 %s1692_s25, 4  ;;  %s1693_s28 = smov [#allocation7]   ;;  %s1780_s26 = int_to_ptr.vmem [resolvable:$true] %s145_s26 }
  0x11   : > { %p1361_p9 = pneg %p1776_p8  ;;  %s159_s29 = sshll.u32 %s1693_s28, 4  ;;  %s1791_s29 = int_to_ptr.vmem [resolvable:$true] %s159_s29 }
  0x12   : > { %s1518_s5 = scalar_lea.hbm %s1991_s1, 8192 }
  0x13   : > { %p1787_p11 = pnand %p1361_p9, %p1756_p1  ;;  %p1519_p12 = scmp.ne.s32.totalorder %s1991_s1, %s1518_s5 }
  0x14   : > { %p1525_p5 = scmp.lt.u32.totalorder %s1518_s5, %s1991_s1 }
  0x15   : > { %p1520_p13 = pneg %p1787_p11 }
  0x17   : > { %p1521_p0 = pnand %p1520_p13, %p1519_p12 }
  0x19   : > { %p1522_p3 = pneg %p1521_p0 }
  0x1b   : > { %p1527_p7 = pnand %p1525_p5, %p1522_p3 }
  0x1d   : > { %1530 = shalt.err (!%p1527_p7)
}
  0x1e   : > { %s1531_s10 = scalar_lea.vmem %s1780_s26, 8192  ;;  %p1539_p1 = scmp.lt.s32.totalorder %s1780_s26, %s1780_s26 }
  0x1f   : > { %p1532_p9 = scmp.ne.s32.totalorder %s1780_s26, %s1531_s10  ;;  %p1540_p12 = scmp.lt.s32.totalorder %s1531_s10, %s1531_s10 }
  0x21   : > { %p1534_p10 = pnand %p1532_p9, %p1520_p13  ;;  %p1541_p0 = por %p1540_p12, %p1539_p1 }
  0x23   : > { %p1535_p6 = pneg %p1534_p10 }
  0x25   : > { %p1542_p4 = pnand %p1541_p0, %p1535_p6 }
  0x27   : > { %1545 = shalt.err (!%p1542_p4)
}
  0x28   : > { %s1694_s11 = smov 64   ;;  %s1695_s18 = smov 4  }
  0x29   : > { %1364 = dma.hbm_to_vmem [thread:$0]  (!%p1787_p11), %s1991_s1, 8192, %s1780_s26, [#allocation6], %s1694_s11, %s1694_s11, %s1695_s18  }
  0x2a   : > { %s1546_s4 = scalar_lea.hbm %s1992_s2, 16 }
  0x2b   : > { %p1547_p1 = scmp.ne.s32.totalorder %s1992_s2, %s1546_s4  ;;  %p1553_p10 = scmp.lt.u32.totalorder %s1546_s4, %s1992_s2 }
  0x2d   : > { %p1549_p4 = pnand %p1547_p1, %p1520_p13 }
  0x2f   : > { %p1550_p6 = pneg %p1549_p4 }
  0x31   : > { %p1555_p3 = pnand %p1553_p10, %p1550_p6 }
  0x33   : > { %1558 = shalt.err (!%p1555_p3)
}
  0x34   : > { %s1559_s26 = scalar_lea.vmem %s1791_s29, 16  ;;  %s1566_s9 = scalar_lea.vmem %s1791_s29, 32 }
  0x35   : > { %p1560_p5 = scmp.ne.s32.totalorder %s1791_s29, %s1559_s26  ;;  %p1567_p12 = scmp.lt.s32.totalorder %s1791_s29, %s1791_s29 }
  0x36   : > { %p1568_p0 = scmp.lt.s32.totalorder %s1566_s9, %s1559_s26 }
  0x37   : > { %p1562_p7 = pnand %p1560_p5, %p1520_p13 }
  0x38   : > { %p1569_p1 = por %p1568_p0, %p1567_p12 }
  0x39   : > { %p1563_p9 = pneg %p1562_p7 }
  0x3b   : > { %p1570_p4 = pnand %p1569_p1, %p1563_p9 }
  0x3d   : > { %1573 = shalt.err (!%p1570_p4)
}
  0x3e   : > { %1367 = dma.hbm_to_vmem [thread:$0]  (!%p1787_p11), %s1992_s2, 16, %s1791_s29, [#allocation6]  }
  0x3f   : > { %s32_s18 = sadd.s32 1, %s1686_s16  ;;  %s39_s19 = sadd.s32 1, %s1678_s14 }
  0x40   : > { %p34_p13 = scmp.ge.s32.totalorder %s32_s18, 2  ;;  %p46_p6 = scmp.ne.s32.totalorder %s1678_s14, %s1674_s13 }
  0x41   : > { %p47_p10 = scmp.eq.s32.totalorder %s1690_s17, 0  ;;  %p1378_p3 = scmp.lt.s32.totalorder %s1690_s17, 2 }
  0x42   : > { %s2017_s18 = smov (%p34_p13, %s32_s18), 0  ;;  %p1856_p7 = por %p1760_p2, %p46_p6 }
  0x43   : > { %p48_p5 = por %p47_p10, %p46_p6  ;;  %s36_s25 = ssub.s32 %s1686_s16, %s2017_s18 }
  0x44   : > { %s2004_s27 = scalar_select %p1856_p7, 1, 0 }
  0x45   : > { %s170_s28 = sand.u32 1, %s1678_s14   ;;  %p37_p9 = scmp.eq.s32.totalorder %s36_s25, 0 }
  0x46   : > { %s1346_s29 = smul.u32 40, %s170_s28  ;;  %p1863_p11 = pnand %p1378_p3, %p48_p5 }
  0x47   : > { %s1868_s4 = scalar_select %p37_p9, %s1678_s14, %s39_s19  }
  0x48   : > { %s1347_s5 = smul.u32 640, %s1686_s16  ;;  %s174_s6 = scalar_lea.vmem [#allocation2], %s1346_s29 }
  0x49   : > { %s181_s7 = sshll.u32 %s174_s6, 4  ;;  %s1878_s9 = scalar_lea.sflag [#allocation3], %s170_s28  ;;  %s1876_s7 = int_to_ptr.vmem [resolvable:$true] %s181_s7 }
  0x4a   : > { %s1874_s26 = scalar_lea.hbm %s1990_s0, %s1347_s5  ;;  %p1576_p12 = pneg %p1863_p11 }
  0x4b   : > { %s1574_s10 = scalar_lea.hbm %s1874_s26, 640  ;;  %s1579_s25 = scalar_lea.hbm %s1990_s0, 1280 }
  0x4c   : > { %p1575_p2 = scmp.ne.s32.totalorder %s1874_s26, %s1574_s10  ;;  %p1580_p4 = scmp.lt.u32.totalorder %s1874_s26, %s1990_s0 }
  0x4d   : > { %p1581_p13 = scmp.lt.u32.totalorder %s1579_s25, %s1574_s10  ;;  %p1583_p10 = scmp.lt.u32.totalorder %s1574_s10, %s1874_s26 }
  0x4e   : > { %p1577_p0 = pnand %p1576_p12, %p1575_p2 }
  0x4f   : > { %p1582_p6 = por %p1581_p13, %p1580_p4 }
  0x50   : > { %p1578_p1 = pneg %p1577_p0 }
  0x51   : > { %p1584_p3 = por %p1583_p10, %p1582_p6 }
  0x53   : > { %p1585_p5 = pnand %p1584_p3, %p1578_p1 }
  0x55   : > { %1588 = shalt.err (!%p1585_p5)
}
  0x56   : > { %s1589_s28 = scalar_lea.vmem %s1876_s7, 640  ;;  %s1696_s6 = smov [#allocation2]  }
  0x57   : > { %p1590_p9 = scmp.ne.s32.totalorder %s1876_s7, %s1589_s28  ;;  %s1594_s21 = sshll.u32 %s1696_s6, 4  ;;  %s1595_s21 = int_to_ptr.vmem [resolvable:$false] %s1594_s21 }
  0x58   : > { %s1596_s8 = scalar_lea.vmem %s1595_s21, 1280  ;;  %p1597_p7 = scmp.lt.s32.totalorder %s1876_s7, %s1595_s21 }
  0x59   : > { %p1592_p2 = pnand %p1590_p9, %p1576_p12  ;;  %p1598_p4 = scmp.lt.s32.totalorder %s1596_s8, %s1589_s28 }
  0x5b   : > { %p1593_p0 = pneg %p1592_p2  ;;  %p1599_p13 = por %p1598_p4, %p1597_p7 }
  0x5d   : > { %p1600_p6 = pnand %p1599_p13, %p1593_p0 }
  0x5f   : > { %1603 = shalt.err (!%p1600_p6)
}
  0x60   : > { %s1697_s10 = smov 128   ;;  %s1698_s11 = smov 8  }
  0x61   : > { %1371 = dma.hbm_to_vmem [thread:$0]  (!%p1863_p11), %s1874_s26, 640, %s1876_s7, %s1878_s9, %s1697_s10, %s1697_s10, %s1698_s11  }
  0x62   : > { %193 = sbr.rel (%p1776_p8) target bundleno = 448 (0x1c0), region = 32  ;;  %s1909_s19 = sand.u32 (!%p1776_p8), 1, %s1674_s13  }
  0x63   : > { %s1348_s25 = smul.u32 (!%p1776_p8), 40, %s1909_s19  ;;  %s196_s29 = scalar_lea.sflag (!%p1776_p8), [#allocation3], %s1909_s19 }
  0x64   : > { %p2006_p7 = scmp.ne.s32.totalorder (!%p1776_p8), %s2000_s22, 0 }
  0x65   : > { %s1913_s5 = scalar_lea.vmem (!%p1776_p8), [#allocation2], %s1348_s25 }
  0x69   : > { %1657 = dma.done.wait (%p2006_p7), %s196_s29, 640  }
  0x6a   : > { %1659 = vsyncadd (%p2006_p7), %s196_s29, 4294966656  ;;  %p2007_p11 = scmp.ne.s32.totalorder %s1998_s20, 0 }
  0x6c   : > { %1661 = dma.done.wait (%p2007_p11), [#allocation6], 8208  }
  0x6d   : > { %1663 = vsyncadd (%p2007_p11), [#allocation6], 4294959088  ;;  %v1438_v0 = vld [vmem:[#allocation5 + $0xc0] sm:$0xff]   ;;  %v1442_v4 = vld [vmem:[#allocation5 + $0xc8] sm:$0xff]   ;;  %s1163_s20 = sshll.u32 %s1909_s19, 3  ;;  %s1252_s22 = sshll.u32 %s1682_s15, 7 }
  0x6e   : > { %v1439_v1 = vld [vmem:[#allocation5 + $0x40] sm:$0xff]   ;;  %1258 = vmatprep.subr.bf16.mxu0 %v1438_v0  ;;  %v1443_v5 = vld [vmem:[#allocation5 + $0x48] sm:$0xff]   ;;  %v1446_v8 = vld [vmem:[#allocation5 + $0xd0] sm:$0xff]   ;;  %s229_s24 = scalar_lea.vmem [#allocation8], %s1163_s20  ;;  %s1939_s9 = scalar_lea.hbm %s1993_s3, %s1252_s22 }
  0x6f   : > { %v1440_v2 = vld [vmem:[#allocation5 + $0x80] sm:$0xff]   ;;  %1280 = vmatprep.subr.bf16.mxu1 %v1439_v1  ;;  %v1444_v6 = vld [vmem:[#allocation5 + $0x88] sm:$0xff]   ;;  %v1447_v9 = vld [vmem:[#allocation5 + $0x50] sm:$0xff]   ;;  %s1042_s30 = sshll.u32 %s229_s24, 4  ;;  %s1027_s15 = scalar_lea.sflag [#allocation4], %s1909_s19  ;;  %s1941_s30 = int_to_ptr.vmem [resolvable:$true] %s1042_s30 }
  0x70   : > { %v1441_v3 = vld [vmem:[#allocation5] sm:$0xff]   ;;  %1259 = vmatpush3.bf16.msra.mxu0 %v1440_v2  ;;  %v1445_v7 = vld [vmem:[#allocation5 + $0x8] sm:$0xff]   ;;  %v1448_v10 = vld [vmem:[#allocation5 + $0x90] sm:$0xff]   ;;  %s1604_s28 = scalar_lea.vmem %s1941_s30, 128  ;;  %p2008_p12 = scmp.ne.s32.totalorder %s2004_s27, 0 }
  0x71   : > { %1281 = vmatpush3.bf16.msra.mxu1 %v1441_v3  ;;  %1260 = vmatprep.subr.bf16.mxu0 %v1442_v4  ;;  %v1449_v11 = vld [vmem:[#allocation5 + $0x10] sm:$0xff]   ;;  %v1450_v12 = vld [vmem:[#allocation5 + $0xd8] sm:$0xff]   ;;  %v1454_v16 = vld [vmem:[#allocation5 + $0xe0] sm:$0xff]   ;;  %p1605_p8 = scmp.ne.s32.totalorder %s1941_s30, %s1604_s28  ;;  %s1699_s6 = smov [#allocation8]  }
  0x72   : > { %1282 = vmatprep.subr.bf16.mxu1 %v1443_v5  ;;  %v1451_v13 = vld [vmem:[#allocation5 + $0x58] sm:$0xff]   ;;  %v1455_v17 = vld [vmem:[#allocation5 + $0x60] sm:$0xff]   ;;  %v1458_v20 = vld [vmem:[#allocation5 + $0xe8] sm:$0xff]   ;;  %s1608_s21 = sshll.u32 %s1699_s6, 4  ;;  %s1609_s21 = int_to_ptr.vmem [resolvable:$false] %s1608_s21 }
  0x73   : > { %v1452_v14 = vld [vmem:[#allocation5 + $0x98] sm:$0xff]   ;;  %v1456_v18 = vld [vmem:[#allocation5 + $0xa0] sm:$0xff]   ;;  %v1459_v21 = vld [vmem:[#allocation5 + $0x68] sm:$0xff]   ;;  %p1606_p1 = pnand %p1605_p8, %p2008_p12  ;;  %s1610_s8 = scalar_lea.vmem %s1609_s21, 256 }
  0x74   : > { %1261 = vmatpush3.bf16.msra.mxu0 %v1444_v6  ;;  %v1453_v15 = vld [vmem:[#allocation5 + $0x18] sm:$0xff]   ;;  %v1457_v19 = vld [vmem:[#allocation5 + $0x20] sm:$0xff]   ;;  %v1460_v22 = vld [vmem:[#allocation5 + $0xa8] sm:$0xff]   ;;  %p1611_p3 = scmp.lt.s32.totalorder %s1941_s30, %s1609_s21  ;;  %p1612_p5 = scmp.lt.s32.totalorder %s1610_s8, %s1604_s28 }
  0x75   : > { %1283 = vmatpush3.bf16.msra.mxu1 %v1445_v7  ;;  %1262 = vmatprep.subr.bf16.mxu0 %v1446_v8  ;;  %v1461_v23 = vld [vmem:[#allocation5 + $0x28] sm:$0xff]   ;;  %v1462_v24 = vld [vmem:[#allocation5 + $0xf0] sm:$0xff]   ;;  %v1466_v28 = vld [vmem:[#allocation5 + $0xf8] sm:$0xff]   ;;  %p1607_p10 = pneg %p1606_p1 }
  0x76   : > { %1284 = vmatprep.subr.bf16.mxu1 %v1447_v9  ;;  %v1463_v25 = vld [vmem:[#allocation5 + $0x70] sm:$0xff]   ;;  %v1467_v29 = vld [vmem:[#allocation5 + $0x78] sm:$0xff]   ;;  %v1925_v33 = vld [vmem:[%s1913_s5 + $0x10] sm:$0xff]  ;;  %p1613_p9 = por %p1612_p5, %p1611_p3 }
  0x77   : > { %v1464_v26 = vld [vmem:[#allocation5 + $0xb0] sm:$0xff]   ;;  %v1468_v30 = vld [vmem:[#allocation5 + $0xb8] sm:$0xff]   ;;  %v1474_v39 = vld [vmem:[#allocation5 + $0x140] sm:$0xff]  }
  0x78   : > { %1263 = vmatpush3.bf16.msra.mxu0 %v1448_v10  ;;  %v1465_v27 = vld [vmem:[#allocation5 + $0x30] sm:$0xff]   ;;  %v1469_v31 = vld [vmem:[#allocation5 + $0x38] sm:$0xff]   ;;  %v1475_v40 = vld [vmem:[#allocation5 + $0x1c0] sm:$0xff]   ;;  %p1614_p2 = pnand %p1613_p9, %p1607_p10 }
  0x79   : > { %1285 = vmatpush3.bf16.msra.mxu1 %v1449_v11  ;;  %1264 = vmatprep.subr.bf16.mxu0 %v1450_v12  ;;  %v1164_v32 = vld [vmem:[%s1913_s5 + $0x8] sm:$0xff]  ;;  %v238_v34 = vld [vmem:[%s1913_s5] sm:$0xff]  ;;  %v1478_v43 = vld [vmem:[#allocation5 + $0x148] sm:$0xff]  }
  0x7a   : > { %1286 = vmatprep.subr.bf16.mxu1 %v1451_v13  ;;  %v1166_v35 = vcombine.low %v1164_v32, %v1925_v33  ;;  %v1167_v36 = vcombine.high %v1164_v32, %v1925_v33  ;;  %v1184_v37 = vcombine.low %v238_v34, %v1164_v32  ;;  %v1185_v38 = vcombine.high %v238_v34, %v1164_v32  ;;  %v1476_v41 = vld [vmem:[#allocation5 + $0x100] sm:$0xff]   ;;  %v1479_v44 = vld [vmem:[#allocation5 + $0x1c8] sm:$0xff]   ;;  %v1482_v47 = vld [vmem:[#allocation5 + $0x150] sm:$0xff]  }
  0x7b   : > { %v1477_v42 = vld [vmem:[#allocation5 + $0x180] sm:$0xff]   ;;  %v1480_v45 = vld [vmem:[#allocation5 + $0x108] sm:$0xff]   ;;  %v1483_v48 = vld [vmem:[#allocation5 + $0x1d0] sm:$0xff]  }
  0x7c   : > { %1265 = vmatpush3.bf16.msra.mxu0 %v1452_v14  ;;  %451 = vmatprep.mubr.bf16.mxu0 %v1167_v36  ;;  %v1481_v46 = vld [vmem:[#allocation5 + $0x188] sm:$0xff]   ;;  %v1484_v49 = vld [vmem:[#allocation5 + $0x110] sm:$0xff]   ;;  %v1486_v51 = vld [vmem:[#allocation5 + $0x158] sm:$0xff]  }
  0x7d   : > { %1287 = vmatpush3.bf16.msra.mxu1 %v1453_v15  ;;  %1266 = vmatprep.subr.bf16.mxu0 %v1454_v16  ;;  %v1485_v50 = vld [vmem:[#allocation5 + $0x190] sm:$0xff]   ;;  %v1487_v52 = vld [vmem:[#allocation5 + $0x1d8] sm:$0xff]   ;;  %v1490_v55 = vld [vmem:[#allocation5 + $0x160] sm:$0xff]  }
  0x7e   : > { %1288 = vmatprep.subr.bf16.mxu1 %v1455_v17  ;;  %598 = vmatprep.mubr.bf16.mxu1 %v1185_v38  ;;  %v1488_v53 = vld [vmem:[#allocation5 + $0x118] sm:$0xff]   ;;  %v1491_v56 = vld [vmem:[#allocation5 + $0x1e0] sm:$0xff]   ;;  %v1494_v59 = vld [vmem:[#allocation5 + $0x168] sm:$0xff]  }
  0x7f   : > { %v1489_v54 = vld [vmem:[#allocation5 + $0x198] sm:$0xff]   ;;  %v1492_v57 = vld [vmem:[#allocation5 + $0x120] sm:$0xff]   ;;  %v1495_v60 = vld [vmem:[#allocation5 + $0x1e8] sm:$0xff]  }
  0x80   : > { %1267 = vmatpush3.bf16.msra.mxu0 %v1456_v18  ;;  %v1493_v58 = vld [vmem:[#allocation5 + $0x1a0] sm:$0xff]   ;;  %v1496_v61 = vld [vmem:[#allocation5 + $0x128] sm:$0xff]   ;;  %v1498_v63 = vld [vmem:[#allocation5 + $0x170] sm:$0xff]  }
  0x81   : > { %1289 = vmatpush3.bf16.msra.mxu1 %v1457_v19  ;;  %1268 = vmatprep.subr.bf16.mxu0 %v1458_v20  ;;  %v1497_v62 = vld [vmem:[#allocation5 + $0x1a8] sm:$0xff]   ;;  %v1499_v0 = vld [vmem:[#allocation5 + $0x1f0] sm:$0xff]   ;;  %v1502_v3 = vld [vmem:[#allocation5 + $0x178] sm:$0xff]  }
  0x82   : > { %1290 = vmatprep.subr.bf16.mxu1 %v1459_v21  ;;  %v1500_v1 = vld [vmem:[#allocation5 + $0x130] sm:$0xff]   ;;  %v1503_v4 = vld [vmem:[#allocation5 + $0x1f8] sm:$0xff]  }
  0x83   : > { %v1501_v2 = vld [vmem:[#allocation5 + $0x1b0] sm:$0xff]   ;;  %v1504_v5 = vld [vmem:[#allocation5 + $0x138] sm:$0xff]  }
  0x84   : > { %1269 = vmatpush3.bf16.msra.mxu0 %v1460_v22  ;;  %v1505_v6 = vld [vmem:[#allocation5 + $0x1b8] sm:$0xff]   ;;  %v1203_v7 = vld [vmem:[%s1913_s5 + $0x18] sm:$0xff] }
  0x85   : > { %1291 = vmatpush3.bf16.msra.mxu1 %v1461_v23  ;;  %1270 = vmatprep.subr.bf16.mxu0 %v1462_v24  ;;  %v1223_v8 = vld [vmem:[%s1913_s5 + $0x20] sm:$0xff]  ;;  %v1204_v9 = vcombine.low %v1925_v33, %v1203_v7  ;;  %v1205_v10 = vcombine.high %v1925_v33, %v1203_v7 }
  0x86   : > { %1292 = vmatprep.subr.bf16.mxu1 %v1463_v25  ;;  %v1224_v11 = vcombine.low %v1203_v7, %v1223_v8  ;;  %v1225_v12 = vcombine.high %v1203_v7, %v1223_v8 }
  0x88   : > { %1271 = vmatpush3.bf16.msra.mxu0 %v1464_v26 }
  0x89   : > { %1293 = vmatpush3.bf16.msra.mxu1 %v1465_v27  ;;  %1272 = vmatprep.subr.bf16.mxu0 %v1466_v28 }
  0x8a   : > { %1294 = vmatprep.subr.bf16.mxu1 %v1467_v29 }
  0x8c   : > { %1273 = vmatpush3.bf16.msra.mxu0 %v1468_v30 }
  0x8d   : > { %1295 = vmatpush3.bf16.msra.mxu1 %v1469_v31  ;;  %1302 = vmatprep.subr.bf16.mxu0 %v1474_v39  ;;  %v1242_v39 = vld [vmem:[#allocation7] ss:$0 sm:$0xff] }
  0x8e   : > { %1324 = vmatprep.subr.bf16.mxu1 %v1475_v40 }
  0x8f   : > { %452 = vmatmul.mubr.bf16.vlgmr.msra.gmra.mrb[0].mxu0 %v1166_v35 }
  0x90   : > { %599 = vmatmul.mubr.bf16.vlgmr.msra.gmra.mrb[0].mxu1 %v1184_v37  ;;  %1303 = vmatpush3.bf16.msra.mxu0 %v1476_v41 }
  0x91   : > { %1325 = vmatpush3.bf16.msra.mxu1 %v1477_v42  ;;  %1304 = vmatprep.subr.bf16.mxu0 %v1478_v43 }
  0x92   : > { %1326 = vmatprep.subr.bf16.mxu1 %v1479_v44  ;;  %786 = vmatprep.mubr.bf16.mxu0 %v1205_v10 }
  0x93   : > { %976 = vmatprep.mubr.bf16.mxu1 %v1225_v12 }
  0x94   : > { %1305 = vmatpush3.bf16.msra.mxu0 %v1480_v45 }
  0x95   : > { %1327 = vmatpush3.bf16.msra.mxu1 %v1481_v46  ;;  %1306 = vmatprep.subr.bf16.mxu0 %v1482_v47 }
  0x96   : > { %1328 = vmatprep.subr.bf16.mxu1 %v1483_v48 }
  0x98   : > { %1307 = vmatpush3.bf16.msra.mxu0 %v1484_v49 }
  0x99   : > { %1329 = vmatpush3.bf16.msra.mxu1 %v1485_v50  ;;  %1308 = vmatprep.subr.bf16.mxu0 %v1486_v51 }
  0x9a   : > { %1330 = vmatprep.subr.bf16.mxu1 %v1487_v52 }
  0x9c   : > { %1309 = vmatpush3.bf16.msra.mxu0 %v1488_v53 }
  0x9d   : > { %1331 = vmatpush3.bf16.msra.mxu1 %v1489_v54  ;;  %1310 = vmatprep.subr.bf16.mxu0 %v1490_v55 }
  0x9e   : > { %1332 = vmatprep.subr.bf16.mxu1 %v1491_v56 }
  0xa0   : > { %1311 = vmatpush3.bf16.msra.mxu0 %v1492_v57 }
  0xa1   : > { %1333 = vmatpush3.bf16.msra.mxu1 %v1493_v58  ;;  %1312 = vmatprep.subr.bf16.mxu0 %v1494_v59 }
  0xa2   : > { %1334 = vmatprep.subr.bf16.mxu1 %v1495_v60 }
  0xa4   : > { %1313 = vmatpush3.bf16.msra.mxu0 %v1496_v61 }
  0xa5   : > { %1335 = vmatpush3.bf16.msra.mxu1 %v1497_v62  ;;  %1314 = vmatprep.subr.bf16.mxu0 %v1498_v63 }
  0xa6   : > { %1336 = vmatprep.subr.bf16.mxu1 %v1499_v0 }
  0xa8   : > { %1315 = vmatpush3.bf16.msra.mxu0 %v1500_v1 }
  0xa9   : > { %1337 = vmatpush3.bf16.msra.mxu1 %v1501_v2  ;;  %1316 = vmatprep.subr.bf16.mxu0 %v1502_v3 }
  0xaa   : > { %1338 = vmatprep.subr.bf16.mxu1 %v1503_v4 }
  0xac   : > { %1317 = vmatpush3.bf16.msra.mxu0 %v1504_v5 }
  0xad   : > { %1339 = vmatpush3.bf16.msra.mxu1 %v1505_v6 }
  0xaf   : > { %787 = vmatmul.mubr.bf16.vlgmr.msra.gmra.mrb[4].mxu0 %v1204_v9 }
  0xb0   : > { %977 = vmatmul.mubr.bf16.vlgmr.msra.gmra.mrb[4].mxu1 %v1224_v11 }
 0x162   : > { %v1274_v13 = vpop.f32.mrb[0].mxu0 }
 0x163   : > { %v1296_v14 = vpop.f32.mrb[0].mxu1  ;;  %v1275_v15 = vpop.f32.mrb[1].mxu0 }
 0x164   : > { %v1297_v16 = vpop.f32.mrb[1].mxu1  ;;  %v1276_v17 = vadd.f32 %v1275_v15, %v1274_v13  ;;  %v1277_v19 = vpop.f32.mrb[2].mxu0 }
 0x165   : > { %v1298_v18 = vadd.f32 %v1297_v16, %v1296_v14  ;;  %v1299_v20 = vpop.f32.mrb[2].mxu1  ;;  %v1278_v21 = vpop.f32.mrb[3].mxu0 }
 0x166   : > { %v1300_v22 = vpop.f32.mrb[3].mxu1  ;;  %v1279_v24 = vadd.f32 %v1278_v21, %v1277_v19 }
 0x167   : > { %v601_v23 = vadd.f32 %v1298_v18, %v1276_v17  ;;  %v1301_v25 = vadd.f32 %v1300_v22, %v1299_v20 }
 0x169   : > { %v604_v26 = vadd.f32 %v1301_v25, %v1279_v24 }
 0x182   : > { %v1318_v27 = vpop.f32.mrb[4].mxu0 }
 0x183   : > { %v1340_v28 = vpop.f32.mrb[4].mxu1  ;;  %v1319_v29 = vpop.f32.mrb[5].mxu0 }
 0x184   : > { %v1320_v30 = vadd.f32 %v1319_v29, %v1318_v27  ;;  %v1341_v31 = vpop.f32.mrb[5].mxu1  ;;  %v1321_v32 = vpop.f32.mrb[6].mxu0 }
 0x185   : > { %v1342_v33 = vadd.f32 %v1341_v31, %v1340_v28  ;;  %v1343_v34 = vpop.f32.mrb[6].mxu1  ;;  %v1322_v35 = vpop.f32.mrb[7].mxu0 }
 0x186   : > { %v795_v36 = vadd.f32 %v1320_v30, %v601_v23  ;;  %v1323_v37 = vadd.f32 %v1322_v35, %v1321_v32  ;;  %v1344_v38 = vpop.f32.mrb[7].mxu1 }
 0x187   : > { %v1345_v40 = vadd.f32 %v1344_v38, %v1343_v34 }
 0x188   : > { %v985_v41 = vadd.f32 %v1342_v33, %v795_v36  ;;  %v796_v42 = vadd.f32 %v1323_v37, %v604_v26 }
 0x18a   : > { %v994_v43 = vadd.f32 %v1242_v39, %v985_v41  ;;  %v986_v44 = vadd.f32 %v1345_v40, %v796_v42 }
 0x18c   : > { %v996_v45 = vand.u32 2147483647, %v994_v43  ;;  %v995_v46 = vadd.f32 %v1242_v39, %v986_v44  ;;  %vm1010_vm0 = vcmp.ge.f32.partialorder %v994_v43, 0.0 }
 0x18e   : > { %v998_v47 = vsub.f32 0.0, %v996_v45  ;;  %v997_v48 = vand.u32 2147483647, %v995_v46  ;;  %vm1011_vm1 = vcmp.ge.f32.partialorder %v995_v46, 0.0 }
 0x190   : > { %v1000_v49 = vmul.f32 1.442695, %v998_v47  ;;  %v999_v50 = vsub.f32 0.0, %v997_v48 }
 0x192   : > { %1510 = vpow2.f32 %v1000_v49  ;;  %v1002_v51 = vmul.f32 1.442695, %v999_v50 }
 0x194   : > { %1512 = vpow2.f32 %v1002_v51 }
 0x19c   : > { %v1511_v52 = vpop.eup %1510 }
 0x19d   : > { %v1004_v53 = vadd.f32 1.0, %v1511_v52 }
 0x19e   : > { %v1513_v54 = vpop.eup %1512 }
 0x19f   : > { %1514 = vrcp.f32 %v1004_v53  ;;  %v1005_v55 = vadd.f32 1.0, %v1513_v54 }
 0x1a1   : > { %1516 = vrcp.f32 %v1005_v55 }
 0x1a9   : > { %v1515_v56 = vpop.eup %1514 }
 0x1aa   : > { %v1012_v57 = vsub.f32 1.0, %v1515_v56 }
 0x1ab   : > { %v1517_v58 = vpop.eup %1516 }
 0x1ac   : > { %v1013_v59 = vsub.f32 1.0, %v1517_v58  ;;  %v1014_v60 = vsel %vm1010_vm0, %v1515_v56, %v1012_v57 }
 0x1ae   : > { %v1015_v61 = vsel %vm1011_vm1, %v1517_v58, %v1013_v59 }
 0x1af   : > { %v1256_v62 = vpack.c.bf16 %v1015_v61, %v1014_v60 }
 0x1b1   : > { %1257 = vst [vmem:[%s229_s24] sm:$0xff] %v1256_v62  }
 0x1b2   : > { %1617 = shalt.err (!%p1614_p2)
}
 0x1b3   : > { %s1618_s10 = scalar_lea.hbm %s1939_s9, 128  ;;  %s1622_s29 = scalar_lea.hbm %s1993_s3, 256 }
 0x1b4   : > { %p1619_p0 = scmp.ne.s32.totalorder %s1939_s9, %s1618_s10  ;;  %p1623_p6 = scmp.lt.u32.totalorder %s1939_s9, %s1993_s3 }
 0x1b5   : > { %p1624_p7 = scmp.lt.u32.totalorder %s1622_s29, %s1618_s10  ;;  %p1626_p8 = scmp.lt.u32.totalorder %s1618_s10, %s1939_s9 }
 0x1b6   : > { %p1620_p4 = pnand %p1619_p0, %p2008_p12 }
 0x1b7   : > { %p1625_p11 = por %p1624_p7, %p1623_p6 }
 0x1b8   : > { %p1621_p13 = pneg %p1620_p4 }
 0x1b9   : > { %p1627_p1 = por %p1626_p8, %p1625_p11 }
 0x1bb   : > { %p1628_p10 = pnand %p1627_p1, %p1621_p13 }
 0x1bd   : > { %1631 = shalt.err (!%p1628_p10)
}
 0x1be   : > { %s1700_s22 = smov 64   ;;  %s1701_s24 = smov 4  }
 0x1bf   : > { %1359 = dma.vmem_to_hbm [thread:$0]  (%p2008_p12), %s1941_s30, 128, %s1939_s9, %s1027_s15, %s1700_s22, %s1700_s22, %s1701_s24  }
 0x1c0 PF: > { %s1057_s7 = sand.u32 1, %s1670_s12   ;;  %p2009_p3 = scmp.ne.s32.totalorder %s2001_s23, 0 }
 0x1c1   : > { %p2010_p5 = scmp.ge.s32.totalorder %s1690_s17, 2  ;;  %s1058_s26 = scalar_lea.sflag [#allocation4], %s1057_s7 }
 0x1c3   : > { %p1373_p9 = pnand %p2010_p5, %p2009_p3 }
 0x1c5   : > { %1665 = dma.done.wait (!%p1373_p9), %s1058_s26, 128  }
 0x1c6   : > { %1667 = vsyncadd (!%p1373_p9), %s1058_s26, 4294967168  ;;  %s20_s17 = sadd.s32 1, %s1690_s17   ;;  %s2011_s12 = smov %s1674_s13 }
 0x1c7   : > { %p17_p2 = scmp.ge.s32.totalorder %s20_s17, 4   ;;  %s2012_s13 = smov %s1678_s14 }
 0x1c8   : > { %s2013_s14 = smov %s1868_s4  ;;  %s2014_s15 = smov %s1686_s16 }
 0x1c9   : > { %s2015_s16 = smov %s2017_s18  ;;  %19 = sbr.rel (!%p17_p2) target bundleno = 7 (0x7), region = 92 }
 0x1d0   :  { %1063 = vsyncpa [#allocation3], 1 }
 0x1d1   :  { %1065 = vsyncpa [#allocation3 + $0x1], 1 }
 0x1d2   :  { %1066 = vsyncpa [#allocation6], 1 }
 0x1d3   :  { %1067 = vsyncpa [#allocation4], 1 }
 0x1d4   :  { %1069 = vsyncpa [#allocation4 + $0x1], 1 }

</bundles_post_ra>
